<compile_context>
chip_gen: v5e
topology: v5e:2x2
jax: 0.10.0
libtpu: 0.0.40
codegen_flags: <defaults>
</compile_context>

<pallas_src>
import functools

import jax
import jax.numpy as jnp
from jax.experimental import pallas as pl
from jax.experimental.pallas import tpu as pltpu


# -----------------------------------------------------------------------------
# Tiling helpers
# -----------------------------------------------------------------------------
def _round_up(v, m):
    return (v + m - 1) // m * m


def _pick_tile(dim, unit, cap):
    """Return (padded_dim, tile) with padded_dim % tile == 0, tile % unit == 0."""
    if dim <= cap:
        p = _round_up(dim, unit)
        return p, p
    p = _round_up(dim, cap)
    return p, cap


# -----------------------------------------------------------------------------
# Tiled GEMM kernel with fused epilogue (bias / pre-ReLU / ReLU / residual)
# -----------------------------------------------------------------------------
def _gemm_kernel(*refs, act, pre_act, final_act, has_res):
    if has_res:
        x_ref, w_ref, b_ref, r_ref, o_ref, acc_ref = refs
    else:
        x_ref, w_ref, b_ref, o_ref, acc_ref = refs
        r_ref = None

    k = pl.program_id(2)

    @pl.when(k == 0)
    def _():
        acc_ref[...] = jnp.zeros_like(acc_ref)

    xt = x_ref[...]
    if pre_act == "relu":
        xt = jnp.maximum(xt, 0)
    acc_ref[...] += jnp.dot(xt, w_ref[...], preferred_element_type=jnp.float32)

    @pl.when(k == pl.num_programs(2) - 1)
    def _():
        out = acc_ref[...] + b_ref[...]
        if act == "relu":
            out = jnp.maximum(out, 0.0)
        if has_res:
            out = out + r_ref[...].astype(jnp.float32)
        if final_act == "relu":
            out = jnp.maximum(out, 0.0)
        o_ref[...] = out.astype(o_ref.dtype)


def pallas_matmul(x, w, b, act=None, pre_act=None, residual=None, final_act=None,
                  out_dtype=jnp.bfloat16):
    """o = epilogue(x @ w + b).  x:(M,K)  w:(K,N)  b:(N,).  bf16 MXU, f32 acc."""
    M, K = x.shape
    _, N = w.shape

    Mp, tm = _pick_tile(M, 8, 256)
    Kp, tk = _pick_tile(K, 128, 512)
    Np, tn = _pick_tile(N, 128, 256)

    xpad = jnp.pad(x.astype(jnp.bfloat16), ((0, Mp - M), (0, Kp - K)))
    wpad = jnp.pad(w.astype(jnp.bfloat16), ((0, Kp - K), (0, Np - N)))
    bpad = jnp.pad(b.astype(jnp.float32).reshape(1, N), ((0, 0), (0, Np - N)))

    has_res = residual is not None
    in_specs = [
        pl.BlockSpec((tm, tk), lambda i, j, k: (i, k)),
        pl.BlockSpec((tk, tn), lambda i, j, k: (k, j)),
        pl.BlockSpec((1, tn), lambda i, j, k: (0, j)),
    ]
    args = [xpad, wpad, bpad]
    if has_res:
        rpad = jnp.pad(residual.astype(jnp.bfloat16), ((0, Mp - M), (0, Np - N)))
        in_specs.append(pl.BlockSpec((tm, tn), lambda i, j, k: (i, j)))
        args.append(rpad)

    out = pl.pallas_call(
        functools.partial(_gemm_kernel, act=act, pre_act=pre_act,
                          final_act=final_act, has_res=has_res),
        out_shape=jax.ShapeDtypeStruct((Mp, Np), out_dtype),
        grid=(Mp // tm, Np // tn, Kp // tk),
        in_specs=in_specs,
        out_specs=pl.BlockSpec((tm, tn), lambda i, j, k: (i, j)),
        scratch_shapes=[pltpu.VMEM((tm, tn), jnp.float32)],
        compiler_params=pltpu.CompilerParams(
            dimension_semantics=("parallel", "parallel", "arbitrary"),
            vmem_limit_bytes=32 * 1024 * 1024),
    )(*args)

    if Mp != M or Np != N:
        out = out[:M, :N]
    return out


# -----------------------------------------------------------------------------
# Fused attention block kernel (GN affine folded, q/k/v, softmax, out-proj, +z)
# -----------------------------------------------------------------------------
def _attn_kernel(z_ref, m_ref, rstd_ref, t_ref, wq_ref, bq_ref, wk_ref, bk_ref,
                 wv_ref, bv_ref, wo_ref, bo_ref, o_ref):
    z = z_ref[0].astype(jnp.float32)                     # (HW, C)
    zn = (z - m_ref[0]) * rstd_ref[0]                    # group-normed (affine folded)
    # 1/sqrt(C) scale is folded into wq/bq at init time.
    q = jnp.dot(zn, wq_ref[...], preferred_element_type=jnp.float32) + bq_ref[...]
    t = t_ref[0]                                         # (1, E)
    k = jnp.dot(t, wk_ref[...], preferred_element_type=jnp.float32) + bk_ref[...]
    v = jnp.dot(t, wv_ref[...], preferred_element_type=jnp.float32) + bv_ref[...]
    s = jax.lax.dot_general(q, k, (((1,), (1,)), ((), ())),
                            preferred_element_type=jnp.float32)      # (HW, T)
    s = s - jnp.max(s, axis=-1, keepdims=True)
    p = jnp.exp(s)
    p = p * pl.reciprocal(jnp.sum(p, axis=-1, keepdims=True), approx=True)
    a = jnp.dot(p, v, preferred_element_type=jnp.float32)            # (HW, C)
    out = jnp.dot(a, wo_ref[...], preferred_element_type=jnp.float32) + bo_ref[...]
    o_ref[0] = (z + out).astype(o_ref.dtype)


def attn_block_nhwc(z, t_emb, p, groups=8):
    """z: (B,H,W,C) bf16 NHWC, t_emb: (B,E).  One fused Pallas call, grid over B."""
    B, H, W, C = z.shape
    HW = H * W
    zf = z.reshape(B, HW, C)

    # GroupNorm statistics (tiny) in XLA; scale/shift folded into wq/bq already.
    z32 = zf.astype(jnp.float32).reshape(B, HW, groups, C // groups)
    mean = z32.mean(axis=(1, 3), keepdims=True)
    var = z32.var(axis=(1, 3), keepdims=True)
    rstd = 1.0 / jnp.sqrt(var + 1e-5)
    mean_c = jnp.broadcast_to(mean, (B, 1, groups, C // groups)).reshape(B, 1, C)
    rstd_c = jnp.broadcast_to(rstd, (B, 1, groups, C // groups)).reshape(B, 1, C)
    t3 = t_emb.astype(jnp.float32).reshape(B, 1, -1)

    def _full(arr):
        nd = arr.ndim
        return pl.BlockSpec(arr.shape, lambda i, _nd=nd: (0,) * _nd)

    def _batched(arr):
        nd = arr.ndim
        return pl.BlockSpec((1,) + arr.shape[1:], lambda i, _nd=nd: (i,) + (0,) * (_nd - 1))

    out = pl.pallas_call(
        _attn_kernel,
        grid=(B,),
        in_specs=[_batched(zf), _batched(mean_c), _batched(rstd_c), _batched(t3),
                  _full(p["wq"]), _full(p["bq"]), _full(p["wk"]), _full(p["bk"]),
                  _full(p["wv"]), _full(p["bv"]), _full(p["wo"]), _full(p["bo"])],
        out_specs=pl.BlockSpec((1, HW, C), lambda i: (i, 0, 0)),
        out_shape=jax.ShapeDtypeStruct((B, HW, C), jnp.bfloat16),
        compiler_params=pltpu.CompilerParams(dimension_semantics=("parallel",)),
    )(zf, mean_c, rstd_c, t3, p["wq"], p["bq"], p["wk"], p["bk"],
      p["wv"], p["bv"], p["wo"], p["bo"])
    return out.reshape(B, H, W, C)


# -----------------------------------------------------------------------------
# Vector quantization kernel (codebook resident, tiled over rows)
# -----------------------------------------------------------------------------
def _vq_kernel(z_ref, e_ref, e2_ref, zq_ref, loss_ref, perp_ref, cnt_ref, sse_ref,
               *, beta, n_valid):
    step = pl.program_id(0)

    @pl.when(step == 0)
    def _():
        cnt_ref[...] = jnp.zeros_like(cnt_ref)
        sse_ref[...] = jnp.zeros_like(sse_ref)

    z = z_ref[...]                                     # (TN, D) f32
    e = e_ref[...]                                     # (K, D)
    e2 = e2_ref[...]                                   # (1, K)
    TN, D = z.shape
    K = e.shape[0]

    z2 = jnp.sum(z * z, axis=1, keepdims=True)
    cross = jax.lax.dot_general(z, e, (((1,), (1,)), ((), ())),
                                preferred_element_type=jnp.float32)   # (TN, K)
    d = z2 + e2 - 2.0 * cross

    col = jax.lax.broadcasted_iota(jnp.int32, d.shape, 1)
    dmin = jnp.min(d, axis=1, keepdims=True)
    cand = jnp.where(d <= dmin, col, K)                # first index achieving min
    amin = jnp.min(cand, axis=1, keepdims=True)
    onehot = (col == amin).astype(jnp.float32)         # (TN, K)

    row = jax.lax.broadcasted_iota(jnp.int32, (TN, 1), 0) + step * TN
    valid = (row < n_valid).astype(jnp.float32)        # (TN, 1) padded-row mask

    zq = jnp.dot(onehot, e, preferred_element_type=jnp.float32)       # (TN, D)
    diff = (zq - z) * valid
    sse_ref[...] += jnp.sum(diff * diff, axis=(0, 1), keepdims=True)
    cnt_ref[...] += jnp.sum(onehot * valid, axis=0, keepdims=True)
    zq_ref[...] = zq                                   # straight-through forward value

    @pl.when(step == pl.num_programs(0) - 1)
    def _():
        mse = sse_ref[...] * (1.0 / float(n_valid * D))
        loss_ref[...] = (1.0 + beta) * mse             # mean||sg(zq)-z||^2 + beta*mean||zq-sg(z)||^2
        avg = cnt_ref[...] * (1.0 / float(n_valid))
        ent = jnp.sum(avg * jnp.log(avg + 1e-10), axis=(0, 1), keepdims=True)
        perp_ref[...] = jnp.exp(-ent)


def pallas_vq(z_flat, codebook, beta):
    N, D = z_flat.shape
    K = codebook.shape[0]
    Np, TN = _pick_tile(N, 8, 512)
    zp = jnp.pad(z_flat.astype(jnp.float32), ((0, Np - N), (0, 0)))
    e = codebook.astype(jnp.float32)
    e2 = jnp.sum(e * e, axis=1).reshape(1, K)

    zq, loss, perp = pl.pallas_call(
        functools.partial(_vq_kernel, beta=float(beta), n_valid=N),
        grid=(Np // TN,),
        in_specs=[pl.BlockSpec((TN, D), lambda i: (i, 0)),
                  pl.BlockSpec((K, D), lambda i: (0, 0)),
                  pl.BlockSpec((1, K), lambda i: (0, 0))],
        out_specs=(pl.BlockSpec((TN, D), lambda i: (i, 0)),
                   pl.BlockSpec((1, 1), lambda i: (0, 0)),
                   pl.BlockSpec((1, 1), lambda i: (0, 0))),
        out_shape=(jax.ShapeDtypeStruct((Np, D), jnp.float32),
                   jax.ShapeDtypeStruct((1, 1), jnp.float32),
                   jax.ShapeDtypeStruct((1, 1), jnp.float32)),
        scratch_shapes=[pltpu.VMEM((1, K), jnp.float32),
                        pltpu.VMEM((1, 1), jnp.float32)],
        compiler_params=pltpu.CompilerParams(dimension_semantics=("arbitrary",)),
    )(zp, e, e2)
    return zq[:N], loss[0, 0], perp[0, 0]


# -----------------------------------------------------------------------------
# Convolution glue (NHWC throughout; im2col in XLA, GEMM + epilogue in Pallas)
# -----------------------------------------------------------------------------
def _im2col_nhwc(x, kh, kw, stride, pad):
    B, H, W, C = x.shape
    Ho = (H + 2 * pad - kh) // stride + 1
    Wo = (W + 2 * pad - kw) // stride + 1
    xp = jnp.pad(x, ((0, 0), (pad, pad), (pad, pad), (0, 0))) if pad else x
    cols = []
    for i in range(kh):
        for j in range(kw):
            cols.append(xp[:, i:i + stride * Ho:stride, j:j + stride * Wo:stride, :])
    if kh * kw == 1:
        return cols[0].reshape(B * Ho * Wo, C), Ho, Wo
    patches = jnp.stack(cols, axis=3)                    # (B,Ho,Wo,kh*kw,C)
    return patches.reshape(B * Ho * Wo, kh * kw * C), Ho, Wo


def conv2d_nhwc(x, w_mat, b, kh, kw, stride, pad, act=None, pre_act=None,
                residual=None, final_act=None):
    B = x.shape[0]
    patches, Ho, Wo = _im2col_nhwc(x, kh, kw, stride, pad)
    cout = b.shape[0]
    r2 = residual.reshape(B * Ho * Wo, cout) if residual is not None else None
    out = pallas_matmul(patches, w_mat, b, act=act, pre_act=pre_act,
                        residual=r2, final_act=final_act)
    return out.reshape(B, Ho, Wo, cout)


def conv_transpose_subpixel(x, wc, b4, act=None):
    """ConvTranspose2d(k=4, stride=2, pad=1) as one sub-pixel GEMM (no zero-fill)."""
    B, H, W, _ = x.shape
    cout = b4.shape[0] // 4
    patches, _, _ = _im2col_nhwc(x, 3, 3, 1, 1)          # (B*H*W, 9*Cin)
    out = pallas_matmul(patches, wc, b4, act=act)        # (B*H*W, 4*Cout)
    out = out.reshape(B, H, W, 2, 2, cout)
    out = out.transpose(0, 1, 3, 2, 4, 5).reshape(B, 2 * H, 2 * W, cout)
    return out


def residual_stack_nhwc(x, layers):
    # ResidualLayer = Sequential(ReLU, Conv3x3, ReLU, Conv1x1) + skip; ReLU after stack.
    n = len(layers)
    for li, p in enumerate(layers):
        h = conv2d_nhwc(x, p["w1"], p["b1"], 3, 3, 1, 1, act="relu", pre_act="relu")
        x = conv2d_nhwc(h, p["w2"], p["b2"], 1, 1, 1, 0, residual=x,
                        final_act="relu" if li == n - 1 else None)
    return x


# -----------------------------------------------------------------------------
# TSVAE forward (NHWC internally, NCHW at the module boundary)
# -----------------------------------------------------------------------------
def tsvae_forward(params, s_x, t_xy, cfg):
    x = jnp.transpose(s_x, (0, 2, 3, 1)).astype(jnp.bfloat16)   # NCHW -> NHWC

    # ---- Encoder ----
    for (wm, b) in params["enc"]["down"]:
        x = conv2d_nhwc(x, wm, b, 4, 4, 2, 1, act="relu")
    x = conv2d_nhwc(x, *params["enc"]["conv3"], 3, 3, 1, 1)
    z = residual_stack_nhwc(x, params["enc"]["res"])

    # ---- Time embedding ----
    t = t_xy.reshape(t_xy.shape[0], -1)
    t_emb = pallas_matmul(t, params["time"]["w"], params["time"]["b"])

    # ---- Cross-attention heads (fused kernel per head) ----
    for ap in params["attn"]:
        z = attn_block_nhwc(z, t_emb, ap, groups=8)

    # ---- Pre-quantization 1x1 conv ----
    z = conv2d_nhwc(z, *params["pre_quant"], 1, 1, 1, 0)

    # ---- Vector quantization ----
    B, H, W, C = z.shape
    z_flat = z.reshape(B * H * W, C).astype(jnp.float32)
    zq_flat, embed_loss, perp = pallas_vq(z_flat, params["codebook"], cfg["beta"])
    z_q = zq_flat.reshape(B, H, W, C).astype(jnp.bfloat16)

    # ---- Decoder ----
    d = conv2d_nhwc(z_q, *params["dec"]["conv1"], 3, 3, 1, 1)
    d = residual_stack_nhwc(d, params["dec"]["res"])
    ups = params["dec"]["up"]
    for li, (wc, b4) in enumerate(ups):
        act = "relu" if li < len(ups) - 1 else None
        d = conv_transpose_subpixel(d, wc, b4, act=act)

    s_y = jnp.transpose(d, (0, 3, 1, 2)).astype(jnp.float32)
    z_ret = jnp.transpose(z, (0, 3, 1, 2)).astype(jnp.float32)
    return embed_loss, s_y, perp, z_ret


# -----------------------------------------------------------------------------
# Parameter init (weights pre-packed into GEMM layouts)
# -----------------------------------------------------------------------------
class _PRNG:
    def __init__(self, key):
        self._key = key

    def take(self, shape, scale=0.05):
        self._key, sub = jax.random.split(self._key)
        return (scale * jax.random.normal(sub, shape)).astype(jnp.float32)

    def uniform(self, shape, lo, hi):
        self._key, sub = jax.random.split(self._key)
        return jax.random.uniform(sub, shape, jnp.float32, lo, hi)


def _conv_w_to_gemm(w):
    """(Cout, Cin, kh, kw) PyTorch conv weight -> (kh*kw*Cin, Cout) GEMM matrix."""
    cout, cin, kh, kw = w.shape
    return w.transpose(2, 3, 1, 0).reshape(kh * kw * cin, cout)


def _make_subpixel_weight(w):
    """ConvTranspose2d (Cin,Cout,4,4), stride=2, pad=1 -> (9*Cin, 4*Cout) GEMM
    weight over a 3x3 window of the 1-padded input; columns = parity p=2r+s."""
    cin, cout = w.shape[0], w.shape[1]
    wc = jnp.zeros((3, 3, cin, 4 * cout), w.dtype)
    for r in (0, 1):
        for s in (0, 1):
            p = 2 * r + s
            dis = (0, 1) if r == 0 else (1, 2)
            djs = (0, 1) if s == 0 else (1, 2)
            for di in dis:
                kh = 3 - 2 * di if r == 0 else 4 - 2 * di
                for dj in djs:
                    kw = 3 - 2 * dj if s == 0 else 4 - 2 * dj
                    wc = wc.at[di, dj, :, p * cout:(p + 1) * cout].set(w[:, :, kh, kw])
    return wc.reshape(9 * cin, 4 * cout)


def init_params(cfg, key):
    rng = _PRNG(key)
    in_dim, h_dim = cfg["in_dim"], cfg["h_dim"]
    res_h, nres, stacks = cfg["res_h_dim"], cfg["n_res_layers"], cfg["stacks"]
    e_dim, heads = cfg["e_dim"], cfg["heads"]
    n_emb, emb_dim = cfg["n_embeddings"], cfg["embedding_dim"]
    C = e_dim  # latent channel count seen by attention blocks (== h_dim)

    def conv_gemm(cout, cin, k):
        w = rng.take((cout, cin, k, k))
        b = rng.take((cout,), scale=0.01)
        return (_conv_w_to_gemm(w).astype(jnp.bfloat16), b.astype(jnp.float32))

    def res_layers(ch):
        out = []
        for _ in range(nres):
            w1 = rng.take((res_h, ch, 3, 3))
            w2 = rng.take((ch, res_h, 1, 1))
            out.append(dict(
                w1=_conv_w_to_gemm(w1).astype(jnp.bfloat16),
                b1=jnp.zeros((res_h,), jnp.float32),
                w2=_conv_w_to_gemm(w2).astype(jnp.bfloat16),
                b2=jnp.zeros((ch,), jnp.float32)))
        return out

    enc_chs = [in_dim] + [h_dim // 2] * (stacks - 1) + [h_dim]
    enc = dict(
        down=[conv_gemm(enc_chs[i + 1], enc_chs[i], 4) for i in range(stacks)],
        conv3=conv_gemm(h_dim, h_dim, 3),
        res=res_layers(h_dim),
    )

    time = dict(w=rng.take((e_dim, 10)).T.astype(jnp.bfloat16),
                b=rng.take((e_dim,), scale=0.01).astype(jnp.float32))

    attn = []
    scale = 1.0 / (C ** 0.5)
    for _ in range(heads):
        gn_g = jnp.ones((C,), jnp.float32)
        gn_b = jnp.zeros((C,), jnp.float32)
        wq = rng.take((C, C, 1, 1)).reshape(C, C).T            # (Cin, Cout)
        bq = rng.take((C,), scale=0.01)
        # Fold GroupNorm affine and 1/sqrt(C) into the q projection.
        wq_eff = (gn_g[:, None] * wq) * scale
        bq_eff = (gn_b @ wq + bq) * scale
        wk = rng.take((C, e_dim)).T
        bk = rng.take((C,), scale=0.01)
        wv = rng.take((C, e_dim)).T
        bv = rng.take((C,), scale=0.01)
        wo = rng.take((C, C, 1, 1)).reshape(C, C).T
        bo = rng.take((C,), scale=0.01)
        attn.append(dict(
            wq=wq_eff.astype(jnp.float32), bq=bq_eff.reshape(1, C).astype(jnp.float32),
            wk=wk.astype(jnp.float32), bk=bk.reshape(1, C).astype(jnp.float32),
            wv=wv.astype(jnp.float32), bv=bv.reshape(1, C).astype(jnp.float32),
            wo=wo.astype(jnp.float32), bo=bo.reshape(1, C).astype(jnp.float32)))

    pre_quant = conv_gemm(emb_dim, h_dim, 1)
    codebook = rng.uniform((n_emb, emb_dim), -1.0 / n_emb, 1.0 / n_emb)

    dec_chs = [h_dim] + [h_dim // 2] * (stacks - 1) + [in_dim]
    up = []
    for i in range(stacks):
        cin, cout = dec_chs[i], dec_chs[i + 1]
        w = rng.take((cin, cout, 4, 4))                        # ConvT: (Cin,Cout,k,k)
        b = rng.take((cout,), scale=0.01)
        up.append((_make_subpixel_weight(w).astype(jnp.bfloat16),
                   jnp.tile(b, 4).astype(jnp.float32)))
    dec = dict(conv1=conv_gemm(h_dim, emb_dim, 3), res=res_layers(h_dim), up=up)

    return dict(enc=enc, time=time, attn=attn, pre_quant=pre_quant,
                codebook=codebook, dec=dec)


# -----------------------------------------------------------------------------
# Main
# -----------------------------------------------------------------------------
if __name__ == "__main__":
    cfg = dict(in_dim=3, h_dim=32, res_h_dim=16, n_res_layers=2, stacks=2,
               e_dim=32, heads=2, n_embeddings=32, embedding_dim=16, beta=0.25)

    key = jax.random.PRNGKey(0)
    k_param, k_x, k_t = jax.random.split(key, 3)

    params = init_params(cfg, k_param)
    s_x = jax.random.normal(k_x, (2, cfg["in_dim"], 16, 16), jnp.float32)
    t_xy = jax.random.normal(k_t, (2, 5, 2), jnp.float32)   # .flatten(1) -> (2, 10)

    fwd = jax.jit(functools.partial(tsvae_forward, cfg=cfg))
    embed_loss, s_y, perp, z_pre = fwd(params, s_x, t_xy)
    jax.block_until_ready((embed_loss, s_y, perp, z_pre))

    assert s_y.shape == s_x.shape
    assert z_pre.shape == (2, cfg["embedding_dim"], 4, 4)
    assert embed_loss.shape == () and perp.shape == ()
    assert bool(jnp.isfinite(s_y).all()) and bool(jnp.isfinite(embed_loss))
    print("KERNEL_OK")
</pallas_src>

<mosaic_0001>
module attributes {stable_mosaic.version = 11 : i64} {
  func.func @_gemm_kernel(%arg0: i32, %arg1: i32, %arg2: i32, %arg3: memref<128x128xbf16, #tpu.memory_space<vmem>>, %arg4: memref<128x128xbf16, #tpu.memory_space<vmem>>, %arg5: memref<1x128xf32, #tpu.memory_space<vmem>>, %arg6: memref<128x128xbf16, #tpu.memory_space<vmem>>, %arg7: memref<128x128xf32, #tpu.memory_space<vmem>>) attributes {dimension_semantics = [#tpu.dimension_semantics<parallel>, #tpu.dimension_semantics<parallel>, #tpu.dimension_semantics<arbitrary>], iteration_bounds = array<i64: 1, 1, 1>, scalar_prefetch = 0 : i64, scratch_operands = 1 : i64, tpu.core_type = #tpu.core_type<tc>, window_params = [{transform_indices = @transform_0, window_bounds = array<i64: 128, 128>}, {transform_indices = @transform_1, window_bounds = array<i64: 128, 128>}, {transform_indices = @transform_2, window_bounds = array<i64: 1, 128>}, {transform_indices = @transform_3, window_bounds = array<i64: 128, 128>}]} {
    %c0_i32 = arith.constant 0 : i32
    %0 = arith.cmpi eq, %arg2, %c0_i32 : i32
    %1 = arith.extui %0 : i1 to i32
    %c0_i32_0 = arith.constant 0 : i32
    %2 = arith.cmpi ne, %1, %c0_i32_0 : i32
    scf.if %2 {
      %cst_10 = arith.constant 0.000000e+00 : f32
      %12 = vector.broadcast %cst_10 : f32 to vector<128x128xf32>
      %c0_11 = arith.constant 0 : index
      %c0_12 = arith.constant 0 : index
      %13 = vector.load %arg7[%c0_11, %c0_12] : memref<128x128xf32, #tpu.memory_space<vmem>>, vector<128x128xf32>
      tpu.vector_store %arg7[%c0_11, %c0_12], %12 {strides = array<i32>} : memref<128x128xf32, #tpu.memory_space<vmem>>, vector<128x128xf32>,
    } else {
    }
    %c0 = arith.constant 0 : index
    %c0_1 = arith.constant 0 : index
    %3 = vector.load %arg3[%c0, %c0_1] : memref<128x128xbf16, #tpu.memory_space<vmem>>, vector<128x128xbf16>
    %c0_2 = arith.constant 0 : index
    %c0_3 = arith.constant 0 : index
    %4 = vector.load %arg7[%c0_2, %c0_3] : memref<128x128xf32, #tpu.memory_space<vmem>>, vector<128x128xf32>
    %c0_4 = arith.constant 0 : index
    %c0_5 = arith.constant 0 : index
    %5 = vector.load %arg4[%c0_4, %c0_5] : memref<128x128xbf16, #tpu.memory_space<vmem>>, vector<128x128xbf16>
    %cst = arith.constant dense<0.000000e+00> : vector<128x128xf32>
    %6 = tpu.matmul %3, %5, %cst {dimension_numbers = #tpu.dot_dimension_numbers<[1], [0], [0], [1], [0, 0, 1, 1], [], []>} : vector<128x128xbf16>, vector<128x128xbf16>, vector<128x128xf32> -> vector<128x128xf32>
    %7 = arith.addf %4, %6 : vector<128x128xf32>
    %c0_6 = arith.constant 0 : index
    %c0_7 = arith.constant 0 : index
    %8 = vector.load %arg7[%c0_6, %c0_7] : memref<128x128xf32, #tpu.memory_space<vmem>>, vector<128x128xf32>
    tpu.vector_store %arg7[%c0_6, %c0_7], %7 {strides = array<i32>} : memref<128x128xf32, #tpu.memory_space<vmem>>, vector<128x128xf32>,
    %c0_i32_8 = arith.constant 0 : i32
    %9 = arith.cmpi eq, %arg2, %c0_i32_8 : i32
    %10 = arith.extui %9 : i1 to i32
    %c0_i32_9 = arith.constant 0 : i32
    %11 = arith.cmpi ne, %10, %c0_i32_9 : i32
    scf.if %11 {
      %c0_10 = arith.constant 0 : index
      %c0_11 = arith.constant 0 : index
      %12 = vector.load %arg7[%c0_10, %c0_11] : memref<128x128xf32, #tpu.memory_space<vmem>>, vector<128x128xf32>
      %c0_12 = arith.constant 0 : index
      %c0_13 = arith.constant 0 : index
      %13 = vector.load %arg5[%c0_12, %c0_13] : memref<1x128xf32, #tpu.memory_space<vmem>>, vector<1x128xf32>
      %14 = vector.broadcast %13 : vector<1x128xf32> to vector<128x128xf32>
      %15 = arith.addf %12, %14 : vector<128x128xf32>
      %cst_14 = arith.constant 0.000000e+00 : f32
      %16 = vector.broadcast %cst_14 : f32 to vector<128x128xf32>
      %17 = arith.maximumf %15, %16 : vector<128x128xf32>
      %18 = arith.truncf %17 : vector<128x128xf32> to vector<128x128xbf16>
      %c0_15 = arith.constant 0 : index
      %c0_16 = arith.constant 0 : index
      %19 = vector.load %arg6[%c0_15, %c0_16] : memref<128x128xbf16, #tpu.memory_space<vmem>>, vector<128x128xbf16>
      tpu.vector_store %arg6[%c0_15, %c0_16], %18 {strides = array<i32>} : memref<128x128xbf16, #tpu.memory_space<vmem>>, vector<128x128xbf16>,
    } else {
    }
    return
  }
  func.func @transform_0(%arg0: i32, %arg1: i32, %arg2: i32) -> (i32, i32) {
    %c0_i32 = arith.constant 0 : i32
    return %arg0, %arg2 : i32, i32
  }
  func.func @transform_1(%arg0: i32, %arg1: i32, %arg2: i32) -> (i32, i32) {
    %c0_i32 = arith.constant 0 : i32
    return %arg2, %arg1 : i32, i32
  }
  func.func @transform_2(%arg0: i32, %arg1: i32, %arg2: i32) -> (i32, i32) {
    %c0_i32 = arith.constant 0 : i32
    %c0_i32_0 = arith.constant 0 : i32
    return %c0_i32, %arg1 : i32, i32
  }
  func.func @transform_3(%arg0: i32, %arg1: i32, %arg2: i32) -> (i32, i32) {
    %c0_i32 = arith.constant 0 : i32
    return %arg0, %arg1 : i32, i32
  }
}

module attributes {stable_mosaic.version = 11 : i64} {
  func.func @_gemm_kernel(%arg0: i32, %arg1: i32, %arg2: i32, %arg3: memref<32x256xbf16, #tpu.memory_space<vmem>>, %arg4: memref<256x128xbf16, #tpu.memory_space<vmem>>, %arg5: memref<1x128xf32, #tpu.memory_space<vmem>>, %arg6: memref<32x128xbf16, #tpu.memory_space<vmem>>, %arg7: memref<32x128xf32, #tpu.memory_space<vmem>>) attributes {dimension_semantics = [#tpu.dimension_semantics<parallel>, #tpu.dimension_semantics<parallel>, #tpu.dimension_semantics<arbitrary>], iteration_bounds = array<i64: 1, 1, 1>, scalar_prefetch = 0 : i64, scratch_operands = 1 : i64, tpu.core_type = #tpu.core_type<tc>, window_params = [{transform_indices = @transform_0, window_bounds = array<i64: 32, 256>}, {transform_indices = @transform_1, window_bounds = array<i64: 256, 128>}, {transform_indices = @transform_2, window_bounds = array<i64: 1, 128>}, {transform_indices = @transform_3, window_bounds = array<i64: 32, 128>}]} {
    %c0_i32 = arith.constant 0 : i32
    %0 = arith.cmpi eq, %arg2, %c0_i32 : i32
    %1 = arith.extui %0 : i1 to i32
    %c0_i32_0 = arith.constant 0 : i32
    %2 = arith.cmpi ne, %1, %c0_i32_0 : i32
    scf.if %2 {
      %cst_10 = arith.constant 0.000000e+00 : f32
      %12 = vector.broadcast %cst_10 : f32 to vector<32x128xf32>
      %c0_11 = arith.constant 0 : index
      %c0_12 = arith.constant 0 : index
      %13 = vector.load %arg7[%c0_11, %c0_12] : memref<32x128xf32, #tpu.memory_space<vmem>>, vector<32x128xf32>
      tpu.vector_store %arg7[%c0_11, %c0_12], %12 {strides = array<i32>} : memref<32x128xf32, #tpu.memory_space<vmem>>, vector<32x128xf32>,
    } else {
    }
    %c0 = arith.constant 0 : index
    %c0_1 = arith.constant 0 : index
    %3 = vector.load %arg3[%c0, %c0_1] : memref<32x256xbf16, #tpu.memory_space<vmem>>, vector<32x256xbf16>
    %c0_2 = arith.constant 0 : index
    %c0_3 = arith.constant 0 : index
    %4 = vector.load %arg7[%c0_2, %c0_3] : memref<32x128xf32, #tpu.memory_space<vmem>>, vector<32x128xf32>
    %c0_4 = arith.constant 0 : index
    %c0_5 = arith.constant 0 : index
    %5 = vector.load %arg4[%c0_4, %c0_5] : memref<256x128xbf16, #tpu.memory_space<vmem>>, vector<256x128xbf16>
    %cst = arith.constant dense<0.000000e+00> : vector<32x128xf32>
    %6 = tpu.matmul %3, %5, %cst {dimension_numbers = #tpu.dot_dimension_numbers<[1], [0], [0], [1], [0, 0, 1, 1], [], []>} : vector<32x256xbf16>, vector<256x128xbf16>, vector<32x128xf32> -> vector<32x128xf32>
    %7 = arith.addf %4, %6 : vector<32x128xf32>
    %c0_6 = arith.constant 0 : index
    %c0_7 = arith.constant 0 : index
    %8 = vector.load %arg7[%c0_6, %c0_7] : memref<32x128xf32, #tpu.memory_space<vmem>>, vector<32x128xf32>
    tpu.vector_store %arg7[%c0_6, %c0_7], %7 {strides = array<i32>} : memref<32x128xf32, #tpu.memory_space<vmem>>, vector<32x128xf32>,
    %c0_i32_8 = arith.constant 0 : i32
    %9 = arith.cmpi eq, %arg2, %c0_i32_8 : i32
    %10 = arith.extui %9 : i1 to i32
    %c0_i32_9 = arith.constant 0 : i32
    %11 = arith.cmpi ne, %10, %c0_i32_9 : i32
    scf.if %11 {
      %c0_10 = arith.constant 0 : index
      %c0_11 = arith.constant 0 : index
      %12 = vector.load %arg7[%c0_10, %c0_11] : memref<32x128xf32, #tpu.memory_space<vmem>>, vector<32x128xf32>
      %c0_12 = arith.constant 0 : index
      %c0_13 = arith.constant 0 : index
      %13 = vector.load %arg5[%c0_12, %c0_13] : memref<1x128xf32, #tpu.memory_space<vmem>>, vector<1x128xf32>
      %14 = vector.broadcast %13 : vector<1x128xf32> to vector<32x128xf32>
      %15 = arith.addf %12, %14 : vector<32x128xf32>
      %cst_14 = arith.constant 0.000000e+00 : f32
      %16 = vector.broadcast %cst_14 : f32 to vector<32x128xf32>
      %17 = arith.maximumf %15, %16 : vector<32x128xf32>
      %18 = arith.truncf %17 : vector<32x128xf32> to vector<32x128xbf16>
      %c0_15 = arith.constant 0 : index
      %c0_16 = arith.constant 0 : index
      %19 = vector.load %arg6[%c0_15, %c0_16] : memref<32x128xbf16, #tpu.memory_space<vmem>>, vector<32x128xbf16>
      tpu.vector_store %arg6[%c0_15, %c0_16], %18 {strides = array<i32>} : memref<32x128xbf16, #tpu.memory_space<vmem>>, vector<32x128xbf16>,
    } else {
    }
    return
  }
  func.func @transform_0(%arg0: i32, %arg1: i32, %arg2: i32) -> (i32, i32) {
    %c0_i32 = arith.constant 0 : i32
    return %arg0, %arg2 : i32, i32
  }
  func.func @transform_1(%arg0: i32, %arg1: i32, %arg2: i32) -> (i32, i32) {
    %c0_i32 = arith.constant 0 : i32
    return %arg2, %arg1 : i32, i32
  }
  func.func @transform_2(%arg0: i32, %arg1: i32, %arg2: i32) -> (i32, i32) {
    %c0_i32 = arith.constant 0 : i32
    %c0_i32_0 = arith.constant 0 : i32
    return %c0_i32, %arg1 : i32, i32
  }
  func.func @transform_3(%arg0: i32, %arg1: i32, %arg2: i32) -> (i32, i32) {
    %c0_i32 = arith.constant 0 : i32
    return %arg0, %arg1 : i32, i32
  }
}

module attributes {stable_mosaic.version = 11 : i64} {
  func.func @_gemm_kernel(%arg0: i32, %arg1: i32, %arg2: i32, %arg3: memref<32x384xbf16, #tpu.memory_space<vmem>>, %arg4: memref<384x128xbf16, #tpu.memory_space<vmem>>, %arg5: memref<1x128xf32, #tpu.memory_space<vmem>>, %arg6: memref<32x128xbf16, #tpu.memory_space<vmem>>, %arg7: memref<32x128xf32, #tpu.memory_space<vmem>>) attributes {dimension_semantics = [#tpu.dimension_semantics<parallel>, #tpu.dimension_semantics<parallel>, #tpu.dimension_semantics<arbitrary>], iteration_bounds = array<i64: 1, 1, 1>, scalar_prefetch = 0 : i64, scratch_operands = 1 : i64, tpu.core_type = #tpu.core_type<tc>, window_params = [{transform_indices = @transform_0, window_bounds = array<i64: 32, 384>}, {transform_indices = @transform_1, window_bounds = array<i64: 384, 128>}, {transform_indices = @transform_2, window_bounds = array<i64: 1, 128>}, {transform_indices = @transform_3, window_bounds = array<i64: 32, 128>}]} {
    %c0_i32 = arith.constant 0 : i32
    %0 = arith.cmpi eq, %arg2, %c0_i32 : i32
    %1 = arith.extui %0 : i1 to i32
    %c0_i32_0 = arith.constant 0 : i32
    %2 = arith.cmpi ne, %1, %c0_i32_0 : i32
    scf.if %2 {
      %cst_10 = arith.constant 0.000000e+00 : f32
      %12 = vector.broadcast %cst_10 : f32 to vector<32x128xf32>
      %c0_11 = arith.constant 0 : index
      %c0_12 = arith.constant 0 : index
      %13 = vector.load %arg7[%c0_11, %c0_12] : memref<32x128xf32, #tpu.memory_space<vmem>>, vector<32x128xf32>
      tpu.vector_store %arg7[%c0_11, %c0_12], %12 {strides = array<i32>} : memref<32x128xf32, #tpu.memory_space<vmem>>, vector<32x128xf32>,
    } else {
    }
    %c0 = arith.constant 0 : index
    %c0_1 = arith.constant 0 : index
    %3 = vector.load %arg3[%c0, %c0_1] : memref<32x384xbf16, #tpu.memory_space<vmem>>, vector<32x384xbf16>
    %c0_2 = arith.constant 0 : index
    %c0_3 = arith.constant 0 : index
    %4 = vector.load %arg7[%c0_2, %c0_3] : memref<32x128xf32, #tpu.memory_space<vmem>>, vector<32x128xf32>
    %c0_4 = arith.constant 0 : index
    %c0_5 = arith.constant 0 : index
    %5 = vector.load %arg4[%c0_4, %c0_5] : memref<384x128xbf16, #tpu.memory_space<vmem>>, vector<384x128xbf16>
    %cst = arith.constant dense<0.000000e+00> : vector<32x128xf32>
    %6 = tpu.matmul %3, %5, %cst {dimension_numbers = #tpu.dot_dimension_numbers<[1], [0], [0], [1], [0, 0, 1, 1], [], []>} : vector<32x384xbf16>, vector<384x128xbf16>, vector<32x128xf32> -> vector<32x128xf32>
    %7 = arith.addf %4, %6 : vector<32x128xf32>
    %c0_6 = arith.constant 0 : index
    %c0_7 = arith.constant 0 : index
    %8 = vector.load %arg7[%c0_6, %c0_7] : memref<32x128xf32, #tpu.memory_space<vmem>>, vector<32x128xf32>
    tpu.vector_store %arg7[%c0_6, %c0_7], %7 {strides = array<i32>} : memref<32x128xf32, #tpu.memory_space<vmem>>, vector<32x128xf32>,
    %c0_i32_8 = arith.constant 0 : i32
    %9 = arith.cmpi eq, %arg2, %c0_i32_8 : i32
    %10 = arith.extui %9 : i1 to i32
    %c0_i32_9 = arith.constant 0 : i32
    %11 = arith.cmpi ne, %10, %c0_i32_9 : i32
    scf.if %11 {
      %c0_10 = arith.constant 0 : index
      %c0_11 = arith.constant 0 : index
      %12 = vector.load %arg7[%c0_10, %c0_11] : memref<32x128xf32, #tpu.memory_space<vmem>>, vector<32x128xf32>
      %c0_12 = arith.constant 0 : index
      %c0_13 = arith.constant 0 : index
      %13 = vector.load %arg5[%c0_12, %c0_13] : memref<1x128xf32, #tpu.memory_space<vmem>>, vector<1x128xf32>
      %14 = vector.broadcast %13 : vector<1x128xf32> to vector<32x128xf32>
      %15 = arith.addf %12, %14 : vector<32x128xf32>
      %16 = arith.truncf %15 : vector<32x128xf32> to vector<32x128xbf16>
      %c0_14 = arith.constant 0 : index
      %c0_15 = arith.constant 0 : index
      %17 = vector.load %arg6[%c0_14, %c0_15] : memref<32x128xbf16, #tpu.memory_space<vmem>>, vector<32x128xbf16>
      tpu.vector_store %arg6[%c0_14, %c0_15], %16 {strides = array<i32>} : memref<32x128xbf16, #tpu.memory_space<vmem>>, vector<32x128xbf16>,
    } else {
    }
    return
  }
  func.func @transform_0(%arg0: i32, %arg1: i32, %arg2: i32) -> (i32, i32) {
    %c0_i32 = arith.constant 0 : i32
    return %arg0, %arg2 : i32, i32
  }
  func.func @transform_1(%arg0: i32, %arg1: i32, %arg2: i32) -> (i32, i32) {
    %c0_i32 = arith.constant 0 : i32
    return %arg2, %arg1 : i32, i32
  }
  func.func @transform_2(%arg0: i32, %arg1: i32, %arg2: i32) -> (i32, i32) {
    %c0_i32 = arith.constant 0 : i32
    %c0_i32_0 = arith.constant 0 : i32
    return %c0_i32, %arg1 : i32, i32
  }
  func.func @transform_3(%arg0: i32, %arg1: i32, %arg2: i32) -> (i32, i32) {
    %c0_i32 = arith.constant 0 : i32
    return %arg0, %arg1 : i32, i32
  }
}

module attributes {stable_mosaic.version = 11 : i64} {
  func.func @_gemm_kernel(%arg0: i32, %arg1: i32, %arg2: i32, %arg3: memref<32x128xbf16, #tpu.memory_space<vmem>>, %arg4: memref<128x128xbf16, #tpu.memory_space<vmem>>, %arg5: memref<1x128xf32, #tpu.memory_space<vmem>>, %arg6: memref<32x128xbf16, #tpu.memory_space<vmem>>, %arg7: memref<32x128xbf16, #tpu.memory_space<vmem>>, %arg8: memref<32x128xf32, #tpu.memory_space<vmem>>) attributes {dimension_semantics = [#tpu.dimension_semantics<parallel>, #tpu.dimension_semantics<parallel>, #tpu.dimension_semantics<arbitrary>], iteration_bounds = array<i64: 1, 1, 1>, scalar_prefetch = 0 : i64, scratch_operands = 1 : i64, tpu.core_type = #tpu.core_type<tc>, window_params = [{transform_indices = @transform_0, window_bounds = array<i64: 32, 128>}, {transform_indices = @transform_1, window_bounds = array<i64: 128, 128>}, {transform_indices = @transform_2, window_bounds = array<i64: 1, 128>}, {transform_indices = @transform_3, window_bounds = array<i64: 32, 128>}, {transform_indices = @transform_4, window_bounds = array<i64: 32, 128>}]} {
    %c0_i32 = arith.constant 0 : i32
    %0 = arith.cmpi eq, %arg2, %c0_i32 : i32
    %1 = arith.extui %0 : i1 to i32
    %c0_i32_0 = arith.constant 0 : i32
    %2 = arith.cmpi ne, %1, %c0_i32_0 : i32
    scf.if %2 {
      %cst_10 = arith.constant 0.000000e+00 : f32
      %12 = vector.broadcast %cst_10 : f32 to vector<32x128xf32>
      %c0_11 = arith.constant 0 : index
      %c0_12 = arith.constant 0 : index
      %13 = vector.load %arg8[%c0_11, %c0_12] : memref<32x128xf32, #tpu.memory_space<vmem>>, vector<32x128xf32>
      tpu.vector_store %arg8[%c0_11, %c0_12], %12 {strides = array<i32>} : memref<32x128xf32, #tpu.memory_space<vmem>>, vector<32x128xf32>,
    } else {
    }
    %c0 = arith.constant 0 : index
    %c0_1 = arith.constant 0 : index
    %3 = vector.load %arg3[%c0, %c0_1] : memref<32x128xbf16, #tpu.memory_space<vmem>>, vector<32x128xbf16>
    %c0_2 = arith.constant 0 : index
    %c0_3 = arith.constant 0 : index
    %4 = vector.load %arg8[%c0_2, %c0_3] : memref<32x128xf32, #tpu.memory_space<vmem>>, vector<32x128xf32>
    %c0_4 = arith.constant 0 : index
    %c0_5 = arith.constant 0 : index
    %5 = vector.load %arg4[%c0_4, %c0_5] : memref<128x128xbf16, #tpu.memory_space<vmem>>, vector<128x128xbf16>
    %cst = arith.constant dense<0.000000e+00> : vector<32x128xf32>
    %6 = tpu.matmul %3, %5, %cst {dimension_numbers = #tpu.dot_dimension_numbers<[1], [0], [0], [1], [0, 0, 1, 1], [], []>} : vector<32x128xbf16>, vector<128x128xbf16>, vector<32x128xf32> -> vector<32x128xf32>
    %7 = arith.addf %4, %6 : vector<32x128xf32>
    %c0_6 = arith.constant 0 : index
    %c0_7 = arith.constant 0 : index
    %8 = vector.load %arg8[%c0_6, %c0_7] : memref<32x128xf32, #tpu.memory_space<vmem>>, vector<32x128xf32>
    tpu.vector_store %arg8[%c0_6, %c0_7], %7 {strides = array<i32>} : memref<32x128xf32, #tpu.memory_space<vmem>>, vector<32x128xf32>,
    %c0_i32_8 = arith.constant 0 : i32
    %9 = arith.cmpi eq, %arg2, %c0_i32_8 : i32
    %10 = arith.extui %9 : i1 to i32
    %c0_i32_9 = arith.constant 0 : i32
    %11 = arith.cmpi ne, %10, %c0_i32_9 : i32
    scf.if %11 {
      %c0_10 = arith.constant 0 : index
      %c0_11 = arith.constant 0 : index
      %12 = vector.load %arg8[%c0_10, %c0_11] : memref<32x128xf32, #tpu.memory_space<vmem>>, vector<32x128xf32>
      %c0_12 = arith.constant 0 : index
      %c0_13 = arith.constant 0 : index
      %13 = vector.load %arg5[%c0_12, %c0_13] : memref<1x128xf32, #tpu.memory_space<vmem>>, vector<1x128xf32>
      %14 = vector.broadcast %13 : vector<1x128xf32> to vector<32x128xf32>
      %15 = arith.addf %12, %14 : vector<32x128xf32>
      %c0_14 = arith.constant 0 : index
      %c0_15 = arith.constant 0 : index
      %16 = vector.load %arg6[%c0_14, %c0_15] : memref<32x128xbf16, #tpu.memory_space<vmem>>, vector<32x128xbf16>
      %17 = arith.extf %16 : vector<32x128xbf16> to vector<32x128xf32>
      %18 = arith.addf %15, %17 : vector<32x128xf32>
      %cst_16 = arith.constant 0.000000e+00 : f32
      %19 = vector.broadcast %cst_16 : f32 to vector<32x128xf32>
      %20 = arith.maximumf %18, %19 : vector<32x128xf32>
      %21 = arith.truncf %20 : vector<32x128xf32> to vector<32x128xbf16>
      %c0_17 = arith.constant 0 : index
      %c0_18 = arith.constant 0 : index
      %22 = vector.load %arg7[%c0_17, %c0_18] : memref<32x128xbf16, #tpu.memory_space<vmem>>, vector<32x128xbf16>
      tpu.vector_store %arg7[%c0_17, %c0_18], %21 {strides = array<i32>} : memref<32x128xbf16, #tpu.memory_space<vmem>>, vector<32x128xbf16>,
    } else {
    }
    return
  }
  func.func @transform_0(%arg0: i32, %arg1: i32, %arg2: i32) -> (i32, i32) {
    %c0_i32 = arith.constant 0 : i32
    return %arg0, %arg2 : i32, i32
  }
  func.func @transform_1(%arg0: i32, %arg1: i32, %arg2: i32) -> (i32, i32) {
    %c0_i32 = arith.constant 0 : i32
    return %arg2, %arg1 : i32, i32
  }
  func.func @transform_2(%arg0: i32, %arg1: i32, %arg2: i32) -> (i32, i32) {
    %c0_i32 = arith.constant 0 : i32
    %c0_i32_0 = arith.constant 0 : i32
    return %c0_i32, %arg1 : i32, i32
  }
  func.func @transform_3(%arg0: i32, %arg1: i32, %arg2: i32) -> (i32, i32) {
    %c0_i32 = arith.constant 0 : i32
    return %arg0, %arg1 : i32, i32
  }
  func.func @transform_4(%arg0: i32, %arg1: i32, %arg2: i32) -> (i32, i32) {
    %c0_i32 = arith.constant 0 : i32
    return %arg0, %arg1 : i32, i32
  }
}

module attributes {stable_mosaic.version = 11 : i64} {
  func.func @_gemm_kernel(%arg0: i32, %arg1: i32, %arg2: i32, %arg3: memref<32x384xbf16, #tpu.memory_space<vmem>>, %arg4: memref<384x128xbf16, #tpu.memory_space<vmem>>, %arg5: memref<1x128xf32, #tpu.memory_space<vmem>>, %arg6: memref<32x128xbf16, #tpu.memory_space<vmem>>, %arg7: memref<32x128xf32, #tpu.memory_space<vmem>>) attributes {dimension_semantics = [#tpu.dimension_semantics<parallel>, #tpu.dimension_semantics<parallel>, #tpu.dimension_semantics<arbitrary>], iteration_bounds = array<i64: 1, 1, 1>, scalar_prefetch = 0 : i64, scratch_operands = 1 : i64, tpu.core_type = #tpu.core_type<tc>, window_params = [{transform_indices = @transform_0, window_bounds = array<i64: 32, 384>}, {transform_indices = @transform_1, window_bounds = array<i64: 384, 128>}, {transform_indices = @transform_2, window_bounds = array<i64: 1, 128>}, {transform_indices = @transform_3, window_bounds = array<i64: 32, 128>}]} {
    %c0_i32 = arith.constant 0 : i32
    %0 = arith.cmpi eq, %arg2, %c0_i32 : i32
    %1 = arith.extui %0 : i1 to i32
    %c0_i32_0 = arith.constant 0 : i32
    %2 = arith.cmpi ne, %1, %c0_i32_0 : i32
    scf.if %2 {
      %cst_11 = arith.constant 0.000000e+00 : f32
      %14 = vector.broadcast %cst_11 : f32 to vector<32x128xf32>
      %c0_12 = arith.constant 0 : index
      %c0_13 = arith.constant 0 : index
      %15 = vector.load %arg7[%c0_12, %c0_13] : memref<32x128xf32, #tpu.memory_space<vmem>>, vector<32x128xf32>
      tpu.vector_store %arg7[%c0_12, %c0_13], %14 {strides = array<i32>} : memref<32x128xf32, #tpu.memory_space<vmem>>, vector<32x128xf32>,
    } else {
    }
    %c0 = arith.constant 0 : index
    %c0_1 = arith.constant 0 : index
    %3 = vector.load %arg3[%c0, %c0_1] : memref<32x384xbf16, #tpu.memory_space<vmem>>, vector<32x384xbf16>
    %cst = arith.constant 0.000000e+00 : bf16
    %4 = vector.broadcast %cst : bf16 to vector<32x384xbf16>
    %5 = arith.maximumf %3, %4 : vector<32x384xbf16>
    %c0_2 = arith.constant 0 : index
    %c0_3 = arith.constant 0 : index
    %6 = vector.load %arg7[%c0_2, %c0_3] : memref<32x128xf32, #tpu.memory_space<vmem>>, vector<32x128xf32>
    %c0_4 = arith.constant 0 : index
    %c0_5 = arith.constant 0 : index
    %7 = vector.load %arg4[%c0_4, %c0_5] : memref<384x128xbf16, #tpu.memory_space<vmem>>, vector<384x128xbf16>
    %cst_6 = arith.constant dense<0.000000e+00> : vector<32x128xf32>
    %8 = tpu.matmul %5, %7, %cst_6 {dimension_numbers = #tpu.dot_dimension_numbers<[1], [0], [0], [1], [0, 0, 1, 1], [], []>} : vector<32x384xbf16>, vector<384x128xbf16>, vector<32x128xf32> -> vector<32x128xf32>
    %9 = arith.addf %6, %8 : vector<32x128xf32>
    %c0_7 = arith.constant 0 : index
    %c0_8 = arith.constant 0 : index
    %10 = vector.load %arg7[%c0_7, %c0_8] : memref<32x128xf32, #tpu.memory_space<vmem>>, vector<32x128xf32>
    tpu.vector_store %arg7[%c0_7, %c0_8], %9 {strides = array<i32>} : memref<32x128xf32, #tpu.memory_space<vmem>>, vector<32x128xf32>,
    %c0_i32_9 = arith.constant 0 : i32
    %11 = arith.cmpi eq, %arg2, %c0_i32_9 : i32
    %12 = arith.extui %11 : i1 to i32
    %c0_i32_10 = arith.constant 0 : i32
    %13 = arith.cmpi ne, %12, %c0_i32_10 : i32
    scf.if %13 {
      %c0_11 = arith.constant 0 : index
      %c0_12 = arith.constant 0 : index
      %14 = vector.load %arg7[%c0_11, %c0_12] : memref<32x128xf32, #tpu.memory_space<vmem>>, vector<32x128xf32>
      %c0_13 = arith.constant 0 : index
      %c0_14 = arith.constant 0 : index
      %15 = vector.load %arg5[%c0_13, %c0_14] : memref<1x128xf32, #tpu.memory_space<vmem>>, vector<1x128xf32>
      %16 = vector.broadcast %15 : vector<1x128xf32> to vector<32x128xf32>
      %17 = arith.addf %14, %16 : vector<32x128xf32>
      %cst_15 = arith.constant 0.000000e+00 : f32
      %18 = vector.broadcast %cst_15 : f32 to vector<32x128xf32>
      %19 = arith.maximumf %17, %18 : vector<32x128xf32>
      %20 = arith.truncf %19 : vector<32x128xf32> to vector<32x128xbf16>
      %c0_16 = arith.constant 0 : index
      %c0_17 = arith.constant 0 : index
      %21 = vector.load %arg6[%c0_16, %c0_17] : memref<32x128xbf16, #tpu.memory_space<vmem>>, vector<32x128xbf16>
      tpu.vector_store %arg6[%c0_16, %c0_17], %20 {strides = array<i32>} : memref<32x128xbf16, #tpu.memory_space<vmem>>, vector<32x128xbf16>,
    } else {
    }
    return
  }
  func.func @transform_0(%arg0: i32, %arg1: i32, %arg2: i32) -> (i32, i32) {
    %c0_i32 = arith.constant 0 : i32
    return %arg0, %arg2 : i32, i32
  }
  func.func @transform_1(%arg0: i32, %arg1: i32, %arg2: i32) -> (i32, i32) {
    %c0_i32 = arith.constant 0 : i32
    return %arg2, %arg1 : i32, i32
  }
  func.func @transform_2(%arg0: i32, %arg1: i32, %arg2: i32) -> (i32, i32) {
    %c0_i32 = arith.constant 0 : i32
    %c0_i32_0 = arith.constant 0 : i32
    return %c0_i32, %arg1 : i32, i32
  }
  func.func @transform_3(%arg0: i32, %arg1: i32, %arg2: i32) -> (i32, i32) {
    %c0_i32 = arith.constant 0 : i32
    return %arg0, %arg1 : i32, i32
  }
}

module attributes {stable_mosaic.version = 11 : i64} {
  func.func @_gemm_kernel(%arg0: i32, %arg1: i32, %arg2: i32, %arg3: memref<32x128xbf16, #tpu.memory_space<vmem>>, %arg4: memref<128x128xbf16, #tpu.memory_space<vmem>>, %arg5: memref<1x128xf32, #tpu.memory_space<vmem>>, %arg6: memref<32x128xbf16, #tpu.memory_space<vmem>>, %arg7: memref<32x128xbf16, #tpu.memory_space<vmem>>, %arg8: memref<32x128xf32, #tpu.memory_space<vmem>>) attributes {dimension_semantics = [#tpu.dimension_semantics<parallel>, #tpu.dimension_semantics<parallel>, #tpu.dimension_semantics<arbitrary>], iteration_bounds = array<i64: 1, 1, 1>, scalar_prefetch = 0 : i64, scratch_operands = 1 : i64, tpu.core_type = #tpu.core_type<tc>, window_params = [{transform_indices = @transform_0, window_bounds = array<i64: 32, 128>}, {transform_indices = @transform_1, window_bounds = array<i64: 128, 128>}, {transform_indices = @transform_2, window_bounds = array<i64: 1, 128>}, {transform_indices = @transform_3, window_bounds = array<i64: 32, 128>}, {transform_indices = @transform_4, window_bounds = array<i64: 32, 128>}]} {
    %c0_i32 = arith.constant 0 : i32
    %0 = arith.cmpi eq, %arg2, %c0_i32 : i32
    %1 = arith.extui %0 : i1 to i32
    %c0_i32_0 = arith.constant 0 : i32
    %2 = arith.cmpi ne, %1, %c0_i32_0 : i32
    scf.if %2 {
      %cst_10 = arith.constant 0.000000e+00 : f32
      %12 = vector.broadcast %cst_10 : f32 to vector<32x128xf32>
      %c0_11 = arith.constant 0 : index
      %c0_12 = arith.constant 0 : index
      %13 = vector.load %arg8[%c0_11, %c0_12] : memref<32x128xf32, #tpu.memory_space<vmem>>, vector<32x128xf32>
      tpu.vector_store %arg8[%c0_11, %c0_12], %12 {strides = array<i32>} : memref<32x128xf32, #tpu.memory_space<vmem>>, vector<32x128xf32>,
    } else {
    }
    %c0 = arith.constant 0 : index
    %c0_1 = arith.constant 0 : index
    %3 = vector.load %arg3[%c0, %c0_1] : memref<32x128xbf16, #tpu.memory_space<vmem>>, vector<32x128xbf16>
    %c0_2 = arith.constant 0 : index
    %c0_3 = arith.constant 0 : index
    %4 = vector.load %arg8[%c0_2, %c0_3] : memref<32x128xf32, #tpu.memory_space<vmem>>, vector<32x128xf32>
    %c0_4 = arith.constant 0 : index
    %c0_5 = arith.constant 0 : index
    %5 = vector.load %arg4[%c0_4, %c0_5] : memref<128x128xbf16, #tpu.memory_space<vmem>>, vector<128x128xbf16>
    %cst = arith.constant dense<0.000000e+00> : vector<32x128xf32>
    %6 = tpu.matmul %3, %5, %cst {dimension_numbers = #tpu.dot_dimension_numbers<[1], [0], [0], [1], [0, 0, 1, 1], [], []>} : vector<32x128xbf16>, vector<128x128xbf16>, vector<32x128xf32> -> vector<32x128xf32>
    %7 = arith.addf %4, %6 : vector<32x128xf32>
    %c0_6 = arith.constant 0 : index
    %c0_7 = arith.constant 0 : index
    %8 = vector.load %arg8[%c0_6, %c0_7] : memref<32x128xf32, #tpu.memory_space<vmem>>, vector<32x128xf32>
    tpu.vector_store %arg8[%c0_6, %c0_7], %7 {strides = array<i32>} : memref<32x128xf32, #tpu.memory_space<vmem>>, vector<32x128xf32>,
    %c0_i32_8 = arith.constant 0 : i32
    %9 = arith.cmpi eq, %arg2, %c0_i32_8 : i32
    %10 = arith.extui %9 : i1 to i32
    %c0_i32_9 = arith.constant 0 : i32
    %11 = arith.cmpi ne, %10, %c0_i32_9 : i32
    scf.if %11 {
      %c0_10 = arith.constant 0 : index
      %c0_11 = arith.constant 0 : index
      %12 = vector.load %arg8[%c0_10, %c0_11] : memref<32x128xf32, #tpu.memory_space<vmem>>, vector<32x128xf32>
      %c0_12 = arith.constant 0 : index
      %c0_13 = arith.constant 0 : index
      %13 = vector.load %arg5[%c0_12, %c0_13] : memref<1x128xf32, #tpu.memory_space<vmem>>, vector<1x128xf32>
      %14 = vector.broadcast %13 : vector<1x128xf32> to vector<32x128xf32>
      %15 = arith.addf %12, %14 : vector<32x128xf32>
      %c0_14 = arith.constant 0 : index
      %c0_15 = arith.constant 0 : index
      %16 = vector.load %arg6[%c0_14, %c0_15] : memref<32x128xbf16, #tpu.memory_space<vmem>>, vector<32x128xbf16>
      %17 = arith.extf %16 : vector<32x128xbf16> to vector<32x128xf32>
      %18 = arith.addf %15, %17 : vector<32x128xf32>
      %19 = arith.truncf %18 : vector<32x128xf32> to vector<32x128xbf16>
      %c0_16 = arith.constant 0 : index
      %c0_17 = arith.constant 0 : index
      %20 = vector.load %arg7[%c0_16, %c0_17] : memref<32x128xbf16, #tpu.memory_space<vmem>>, vector<32x128xbf16>
      tpu.vector_store %arg7[%c0_16, %c0_17], %19 {strides = array<i32>} : memref<32x128xbf16, #tpu.memory_space<vmem>>, vector<32x128xbf16>,
    } else {
    }
    return
  }
  func.func @transform_0(%arg0: i32, %arg1: i32, %arg2: i32) -> (i32, i32) {
    %c0_i32 = arith.constant 0 : i32
    return %arg0, %arg2 : i32, i32
  }
  func.func @transform_1(%arg0: i32, %arg1: i32, %arg2: i32) -> (i32, i32) {
    %c0_i32 = arith.constant 0 : i32
    return %arg2, %arg1 : i32, i32
  }
  func.func @transform_2(%arg0: i32, %arg1: i32, %arg2: i32) -> (i32, i32) {
    %c0_i32 = arith.constant 0 : i32
    %c0_i32_0 = arith.constant 0 : i32
    return %c0_i32, %arg1 : i32, i32
  }
  func.func @transform_3(%arg0: i32, %arg1: i32, %arg2: i32) -> (i32, i32) {
    %c0_i32 = arith.constant 0 : i32
    return %arg0, %arg1 : i32, i32
  }
  func.func @transform_4(%arg0: i32, %arg1: i32, %arg2: i32) -> (i32, i32) {
    %c0_i32 = arith.constant 0 : i32
    return %arg0, %arg1 : i32, i32
  }
}

module attributes {stable_mosaic.version = 11 : i64} {
  func.func @_gemm_kernel(%arg0: i32, %arg1: i32, %arg2: i32, %arg3: memref<8x128xbf16, #tpu.memory_space<vmem>>, %arg4: memref<128x128xbf16, #tpu.memory_space<vmem>>, %arg5: memref<1x128xf32, #tpu.memory_space<vmem>>, %arg6: memref<8x128xbf16, #tpu.memory_space<vmem>>, %arg7: memref<8x128xf32, #tpu.memory_space<vmem>>) attributes {dimension_semantics = [#tpu.dimension_semantics<parallel>, #tpu.dimension_semantics<parallel>, #tpu.dimension_semantics<arbitrary>], iteration_bounds = array<i64: 1, 1, 1>, scalar_prefetch = 0 : i64, scratch_operands = 1 : i64, tpu.core_type = #tpu.core_type<tc>, window_params = [{transform_indices = @transform_0, window_bounds = array<i64: 8, 128>}, {transform_indices = @transform_1, window_bounds = array<i64: 128, 128>}, {transform_indices = @transform_2, window_bounds = array<i64: 1, 128>}, {transform_indices = @transform_3, window_bounds = array<i64: 8, 128>}]} {
    %c0_i32 = arith.constant 0 : i32
    %0 = arith.cmpi eq, %arg2, %c0_i32 : i32
    %1 = arith.extui %0 : i1 to i32
    %c0_i32_0 = arith.constant 0 : i32
    %2 = arith.cmpi ne, %1, %c0_i32_0 : i32
    scf.if %2 {
      %cst_10 = arith.constant 0.000000e+00 : f32
      %12 = vector.broadcast %cst_10 : f32 to vector<8x128xf32>
      %c0_11 = arith.constant 0 : index
      %c0_12 = arith.constant 0 : index
      %13 = vector.load %arg7[%c0_11, %c0_12] : memref<8x128xf32, #tpu.memory_space<vmem>>, vector<8x128xf32>
      tpu.vector_store %arg7[%c0_11, %c0_12], %12 {strides = array<i32>} : memref<8x128xf32, #tpu.memory_space<vmem>>, vector<8x128xf32>,
    } else {
    }
    %c0 = arith.constant 0 : index
    %c0_1 = arith.constant 0 : index
    %3 = vector.load %arg3[%c0, %c0_1] : memref<8x128xbf16, #tpu.memory_space<vmem>>, vector<8x128xbf16>
    %c0_2 = arith.constant 0 : index
    %c0_3 = arith.constant 0 : index
    %4 = vector.load %arg7[%c0_2, %c0_3] : memref<8x128xf32, #tpu.memory_space<vmem>>, vector<8x128xf32>
    %c0_4 = arith.constant 0 : index
    %c0_5 = arith.constant 0 : index
    %5 = vector.load %arg4[%c0_4, %c0_5] : memref<128x128xbf16, #tpu.memory_space<vmem>>, vector<128x128xbf16>
    %cst = arith.constant dense<0.000000e+00> : vector<8x128xf32>
    %6 = tpu.matmul %3, %5, %cst {dimension_numbers = #tpu.dot_dimension_numbers<[1], [0], [0], [1], [0, 0, 1, 1], [], []>} : vector<8x128xbf16>, vector<128x128xbf16>, vector<8x128xf32> -> vector<8x128xf32>
    %7 = arith.addf %4, %6 : vector<8x128xf32>
    %c0_6 = arith.constant 0 : index
    %c0_7 = arith.constant 0 : index
    %8 = vector.load %arg7[%c0_6, %c0_7] : memref<8x128xf32, #tpu.memory_space<vmem>>, vector<8x128xf32>
    tpu.vector_store %arg7[%c0_6, %c0_7], %7 {strides = array<i32>} : memref<8x128xf32, #tpu.memory_space<vmem>>, vector<8x128xf32>,
    %c0_i32_8 = arith.constant 0 : i32
    %9 = arith.cmpi eq, %arg2, %c0_i32_8 : i32
    %10 = arith.extui %9 : i1 to i32
    %c0_i32_9 = arith.constant 0 : i32
    %11 = arith.cmpi ne, %10, %c0_i32_9 : i32
    scf.if %11 {
      %c0_10 = arith.constant 0 : index
      %c0_11 = arith.constant 0 : index
      %12 = vector.load %arg7[%c0_10, %c0_11] : memref<8x128xf32, #tpu.memory_space<vmem>>, vector<8x128xf32>
      %c0_12 = arith.constant 0 : index
      %c0_13 = arith.constant 0 : index
      %13 = vector.load %arg5[%c0_12, %c0_13] : memref<1x128xf32, #tpu.memory_space<vmem>>, vector<1x128xf32>
      %14 = vector.broadcast %13 : vector<1x128xf32> to vector<8x128xf32>
      %15 = arith.addf %12, %14 : vector<8x128xf32>
      %16 = arith.truncf %15 : vector<8x128xf32> to vector<8x128xbf16>
      %c0_14 = arith.constant 0 : index
      %c0_15 = arith.constant 0 : index
      %17 = vector.load %arg6[%c0_14, %c0_15] : memref<8x128xbf16, #tpu.memory_space<vmem>>, vector<8x128xbf16>
      tpu.vector_store %arg6[%c0_14, %c0_15], %16 {strides = array<i32>} : memref<8x128xbf16, #tpu.memory_space<vmem>>, vector<8x128xbf16>,
    } else {
    }
    return
  }
  func.func @transform_0(%arg0: i32, %arg1: i32, %arg2: i32) -> (i32, i32) {
    %c0_i32 = arith.constant 0 : i32
    return %arg0, %arg2 : i32, i32
  }
  func.func @transform_1(%arg0: i32, %arg1: i32, %arg2: i32) -> (i32, i32) {
    %c0_i32 = arith.constant 0 : i32
    return %arg2, %arg1 : i32, i32
  }
  func.func @transform_2(%arg0: i32, %arg1: i32, %arg2: i32) -> (i32, i32) {
    %c0_i32 = arith.constant 0 : i32
    %c0_i32_0 = arith.constant 0 : i32
    return %c0_i32, %arg1 : i32, i32
  }
  func.func @transform_3(%arg0: i32, %arg1: i32, %arg2: i32) -> (i32, i32) {
    %c0_i32 = arith.constant 0 : i32
    return %arg0, %arg1 : i32, i32
  }
}

module attributes {stable_mosaic.version = 11 : i64} {
  func.func @_attn_kernel(%arg0: i32, %arg1: memref<1x16x32xbf16, #tpu.memory_space<vmem>>, %arg2: memref<1x1x32xf32, #tpu.memory_space<vmem>>, %arg3: memref<1x1x32xf32, #tpu.memory_space<vmem>>, %arg4: memref<1x1x32xf32, #tpu.memory_space<vmem>>, %arg5: memref<32x32xf32, #tpu.memory_space<vmem>>, %arg6: memref<1x32xf32, #tpu.memory_space<vmem>>, %arg7: memref<32x32xf32, #tpu.memory_space<vmem>>, %arg8: memref<1x32xf32, #tpu.memory_space<vmem>>, %arg9: memref<32x32xf32, #tpu.memory_space<vmem>>, %arg10: memref<1x32xf32, #tpu.memory_space<vmem>>, %arg11: memref<32x32xf32, #tpu.memory_space<vmem>>, %arg12: memref<1x32xf32, #tpu.memory_space<vmem>>, %arg13: memref<1x16x32xbf16, #tpu.memory_space<vmem>>) attributes {dimension_semantics = [#tpu.dimension_semantics<parallel>], iteration_bounds = array<i64: 2>, scalar_prefetch = 0 : i64, scratch_operands = 0 : i64, tpu.core_type = #tpu.core_type<tc>, window_params = [{transform_indices = @transform_0, window_bounds = array<i64: 1, 16, 32>}, {transform_indices = @transform_1, window_bounds = array<i64: 1, 1, 32>}, {transform_indices = @transform_2, window_bounds = array<i64: 1, 1, 32>}, {transform_indices = @transform_3, window_bounds = array<i64: 1, 1, 32>}, {pipeline_mode = #tpu.pipeline_mode<synchronous>, transform_indices = @transform_4, window_bounds = array<i64: 32, 32>}, {pipeline_mode = #tpu.pipeline_mode<synchronous>, transform_indices = @transform_5, window_bounds = array<i64: 1, 32>}, {pipeline_mode = #tpu.pipeline_mode<synchronous>, transform_indices = @transform_6, window_bounds = array<i64: 32, 32>}, {pipeline_mode = #tpu.pipeline_mode<synchronous>, transform_indices = @transform_7, window_bounds = array<i64: 1, 32>}, {pipeline_mode = #tpu.pipeline_mode<synchronous>, transform_indices = @transform_8, window_bounds = array<i64: 32, 32>}, {pipeline_mode = #tpu.pipeline_mode<synchronous>, transform_indices = @transform_9, window_bounds = array<i64: 1, 32>}, {pipeline_mode = #tpu.pipeline_mode<synchronous>, transform_indices = @transform_10, window_bounds = array<i64: 32, 32>}, {pipeline_mode = #tpu.pipeline_mode<synchronous>, transform_indices = @transform_11, window_bounds = array<i64: 1, 32>}, {transform_indices = @transform_12, window_bounds = array<i64: 1, 16, 32>}]} {
    %c0 = arith.constant 0 : index
    %c0_0 = arith.constant 0 : index
    %c0_1 = arith.constant 0 : index
    %0 = vector.load %arg1[%c0, %c0_0, %c0_1] : memref<1x16x32xbf16, #tpu.memory_space<vmem>>, vector<1x16x32xbf16>
    %1 = vector.shape_cast %0 : vector<1x16x32xbf16> to vector<16x32xbf16>
    %2 = arith.extf %1 : vector<16x32xbf16> to vector<16x32xf32>
    %c0_2 = arith.constant 0 : index
    %c0_3 = arith.constant 0 : index
    %c0_4 = arith.constant 0 : index
    %3 = vector.load %arg2[%c0_2, %c0_3, %c0_4] : memref<1x1x32xf32, #tpu.memory_space<vmem>>, vector<1x1x32xf32>
    %4 = vector.shape_cast %3 : vector<1x1x32xf32> to vector<1x32xf32>
    %5 = vector.broadcast %4 : vector<1x32xf32> to vector<16x32xf32>
    %6 = arith.subf %2, %5 : vector<16x32xf32>
    %c0_5 = arith.constant 0 : index
    %c0_6 = arith.constant 0 : index
    %c0_7 = arith.constant 0 : index
    %7 = vector.load %arg3[%c0_5, %c0_6, %c0_7] : memref<1x1x32xf32, #tpu.memory_space<vmem>>, vector<1x1x32xf32>
    %8 = vector.shape_cast %7 : vector<1x1x32xf32> to vector<1x32xf32>
    %9 = vector.broadcast %8 : vector<1x32xf32> to vector<16x32xf32>
    %10 = arith.mulf %6, %9 : vector<16x32xf32>
    %c0_8 = arith.constant 0 : index
    %c0_9 = arith.constant 0 : index
    %11 = vector.load %arg5[%c0_8, %c0_9] : memref<32x32xf32, #tpu.memory_space<vmem>>, vector<32x32xf32>
    %cst = arith.constant dense<0.000000e+00> : vector<16x32xf32>
    %12 = tpu.matmul %10, %11, %cst {dimension_numbers = #tpu.dot_dimension_numbers<[1], [0], [0], [1], [0, 0, 1, 1], [], []>} : vector<16x32xf32>, vector<32x32xf32>, vector<16x32xf32> -> vector<16x32xf32>
    %c0_10 = arith.constant 0 : index
    %c0_11 = arith.constant 0 : index
    %13 = vector.load %arg6[%c0_10, %c0_11] : memref<1x32xf32, #tpu.memory_space<vmem>>, vector<1x32xf32>
    %14 = vector.broadcast %13 : vector<1x32xf32> to vector<16x32xf32>
    %15 = arith.addf %12, %14 : vector<16x32xf32>
    %c0_12 = arith.constant 0 : index
    %c0_13 = arith.constant 0 : index
    %c0_14 = arith.constant 0 : index
    %16 = vector.load %arg4[%c0_12, %c0_13, %c0_14] : memref<1x1x32xf32, #tpu.memory_space<vmem>>, vector<1x1x32xf32>
    %17 = vector.shape_cast %16 : vector<1x1x32xf32> to vector<1x32xf32>
    %c0_15 = arith.constant 0 : index
    %c0_16 = arith.constant 0 : index
    %18 = vector.load %arg7[%c0_15, %c0_16] : memref<32x32xf32, #tpu.memory_space<vmem>>, vector<32x32xf32>
    %cst_17 = arith.constant dense<0.000000e+00> : vector<1x32xf32>
    %19 = tpu.matmul %17, %18, %cst_17 {dimension_numbers = #tpu.dot_dimension_numbers<[1], [0], [0], [1], [0, 0, 1, 1], [], []>} : vector<1x32xf32>, vector<32x32xf32>, vector<1x32xf32> -> vector<1x32xf32>
    %c0_18 = arith.constant 0 : index
    %c0_19 = arith.constant 0 : index
    %20 = vector.load %arg8[%c0_18, %c0_19] : memref<1x32xf32, #tpu.memory_space<vmem>>, vector<1x32xf32>
    %21 = arith.addf %19, %20 : vector<1x32xf32>
    %c0_20 = arith.constant 0 : index
    %c0_21 = arith.constant 0 : index
    %22 = vector.load %arg9[%c0_20, %c0_21] : memref<32x32xf32, #tpu.memory_space<vmem>>, vector<32x32xf32>
    %cst_22 = arith.constant dense<0.000000e+00> : vector<1x32xf32>
    %23 = tpu.matmul %17, %22, %cst_22 {dimension_numbers = #tpu.dot_dimension_numbers<[1], [0], [0], [1], [0, 0, 1, 1], [], []>} : vector<1x32xf32>, vector<32x32xf32>, vector<1x32xf32> -> vector<1x32xf32>
    %c0_23 = arith.constant 0 : index
    %c0_24 = arith.constant 0 : index
    %24 = vector.load %arg10[%c0_23, %c0_24] : memref<1x32xf32, #tpu.memory_space<vmem>>, vector<1x32xf32>
    %25 = arith.addf %23, %24 : vector<1x32xf32>
    %cst_25 = arith.constant dense<0.000000e+00> : vector<16x1xf32>
    %26 = tpu.matmul %15, %21, %cst_25 {dimension_numbers = #tpu.dot_dimension_numbers<[1], [1], [0], [0], [0, 0, 1, 0], [], []>} : vector<16x32xf32>, vector<1x32xf32>, vector<16x1xf32> -> vector<16x1xf32>
    %cst_26 = arith.constant dense<0xFF800000> : vector<16xf32>
    %27 = vector.multi_reduction <maximumf>, %26, %cst_26 [1] : vector<16x1xf32> to vector<16xf32>
    %28 = vector.shape_cast %27 : vector<16xf32> to vector<16x1xf32>
    %29 = arith.subf %26, %28 : vector<16x1xf32>
    %30 = math.exp %29 : vector<16x1xf32>
    %cst_27 = arith.constant dense<0.000000e+00> : vector<16xf32>
    %31 = vector.multi_reduction <add>, %30, %cst_27 [1] : vector<16x1xf32> to vector<16xf32>
    %32 = vector.shape_cast %31 : vector<16xf32> to vector<16x1xf32>
    %33 = tpu.reciprocal %32 {approx = true} : vector<16x1xf32> -> vector<16x1xf32>
    %34 = arith.mulf %30, %33 : vector<16x1xf32>
    %cst_28 = arith.constant dense<0.000000e+00> : vector<16x32xf32>
    %35 = tpu.matmul %34, %25, %cst_28 {dimension_numbers = #tpu.dot_dimension_numbers<[1], [0], [0], [1], [0, 0, 1, 1], [], []>} : vector<16x1xf32>, vector<1x32xf32>, vector<16x32xf32> -> vector<16x32xf32>
    %c0_29 = arith.constant 0 : index
    %c0_30 = arith.constant 0 : index
    %36 = vector.load %arg11[%c0_29, %c0_30] : memref<32x32xf32, #tpu.memory_space<vmem>>, vector<32x32xf32>
    %cst_31 = arith.constant dense<0.000000e+00> : vector<16x32xf32>
    %37 = tpu.matmul %35, %36, %cst_31 {dimension_numbers = #tpu.dot_dimension_numbers<[1], [0], [0], [1], [0, 0, 1, 1], [], []>} : vector<16x32xf32>, vector<32x32xf32>, vector<16x32xf32> -> vector<16x32xf32>
    %c0_32 = arith.constant 0 : index
    %c0_33 = arith.constant 0 : index
    %38 = vector.load %arg12[%c0_32, %c0_33] : memref<1x32xf32, #tpu.memory_space<vmem>>, vector<1x32xf32>
    %39 = vector.broadcast %38 : vector<1x32xf32> to vector<16x32xf32>
    %40 = arith.addf %37, %39 : vector<16x32xf32>
    %41 = arith.addf %2, %40 : vector<16x32xf32>
    %42 = arith.truncf %41 : vector<16x32xf32> to vector<16x32xbf16>
    %c0_34 = arith.constant 0 : index
    %c0_35 = arith.constant 0 : index
    %c0_36 = arith.constant 0 : index
    %43 = vector.load %arg13[%c0_34, %c0_35, %c0_36] : memref<1x16x32xbf16, #tpu.memory_space<vmem>>, vector<1x16x32xbf16>
    %44 = vector.shape_cast %43 : vector<1x16x32xbf16> to vector<16x32xbf16>
    %45 = vector.shape_cast %42 : vector<16x32xbf16> to vector<1x16x32xbf16>
    tpu.vector_store %arg13[%c0_34, %c0_35, %c0_36], %45 {strides = array<i32>} : memref<1x16x32xbf16, #tpu.memory_space<vmem>>, vector<1x16x32xbf16>,
    return
  }
  func.func @transform_0(%arg0: i32) -> (i32, i32, i32) {
    %c0_i32 = arith.constant 0 : i32
    %c0_i32_0 = arith.constant 0 : i32
    %c0_i32_1 = arith.constant 0 : i32
    return %arg0, %c0_i32, %c0_i32_0 : i32, i32, i32
  }
  func.func @transform_1(%arg0: i32) -> (i32, i32, i32) {
    %c0_i32 = arith.constant 0 : i32
    %c0_i32_0 = arith.constant 0 : i32
    %c0_i32_1 = arith.constant 0 : i32
    return %arg0, %c0_i32, %c0_i32_0 : i32, i32, i32
  }
  func.func @transform_2(%arg0: i32) -> (i32, i32, i32) {
    %c0_i32 = arith.constant 0 : i32
    %c0_i32_0 = arith.constant 0 : i32
    %c0_i32_1 = arith.constant 0 : i32
    return %arg0, %c0_i32, %c0_i32_0 : i32, i32, i32
  }
  func.func @transform_3(%arg0: i32) -> (i32, i32, i32) {
    %c0_i32 = arith.constant 0 : i32
    %c0_i32_0 = arith.constant 0 : i32
    %c0_i32_1 = arith.constant 0 : i32
    return %arg0, %c0_i32, %c0_i32_0 : i32, i32, i32
  }
  func.func @transform_4(%arg0: i32) -> (i32, i32) {
    %c0_i32 = arith.constant 0 : i32
    %c0_i32_0 = arith.constant 0 : i32
    %c0_i32_1 = arith.constant 0 : i32
    return %c0_i32, %c0_i32_0 : i32, i32
  }
  func.func @transform_5(%arg0: i32) -> (i32, i32) {
    %c0_i32 = arith.constant 0 : i32
    %c0_i32_0 = arith.constant 0 : i32
    %c0_i32_1 = arith.constant 0 : i32
    return %c0_i32, %c0_i32_0 : i32, i32
  }
  func.func @transform_6(%arg0: i32) -> (i32, i32) {
    %c0_i32 = arith.constant 0 : i32
    %c0_i32_0 = arith.constant 0 : i32
    %c0_i32_1 = arith.constant 0 : i32
    return %c0_i32, %c0_i32_0 : i32, i32
  }
  func.func @transform_7(%arg0: i32) -> (i32, i32) {
    %c0_i32 = arith.constant 0 : i32
    %c0_i32_0 = arith.constant 0 : i32
    %c0_i32_1 = arith.constant 0 : i32
    return %c0_i32, %c0_i32_0 : i32, i32
  }
  func.func @transform_8(%arg0: i32) -> (i32, i32) {
    %c0_i32 = arith.constant 0 : i32
    %c0_i32_0 = arith.constant 0 : i32
    %c0_i32_1 = arith.constant 0 : i32
    return %c0_i32, %c0_i32_0 : i32, i32
  }
  func.func @transform_9(%arg0: i32) -> (i32, i32) {
    %c0_i32 = arith.constant 0 : i32
    %c0_i32_0 = arith.constant 0 : i32
    %c0_i32_1 = arith.constant 0 : i32
    return %c0_i32, %c0_i32_0 : i32, i32
  }
  func.func @transform_10(%arg0: i32) -> (i32, i32) {
    %c0_i32 = arith.constant 0 : i32
    %c0_i32_0 = arith.constant 0 : i32
    %c0_i32_1 = arith.constant 0 : i32
    return %c0_i32, %c0_i32_0 : i32, i32
  }
  func.func @transform_11(%arg0: i32) -> (i32, i32) {
    %c0_i32 = arith.constant 0 : i32
    %c0_i32_0 = arith.constant 0 : i32
    %c0_i32_1 = arith.constant 0 : i32
    return %c0_i32, %c0_i32_0 : i32, i32
  }
  func.func @transform_12(%arg0: i32) -> (i32, i32, i32) {
    %c0_i32 = arith.constant 0 : i32
    %c0_i32_0 = arith.constant 0 : i32
    %c0_i32_1 = arith.constant 0 : i32
    return %arg0, %c0_i32, %c0_i32_0 : i32, i32, i32
  }
}

module attributes {stable_mosaic.version = 11 : i64} {
  func.func @_gemm_kernel(%arg0: i32, %arg1: i32, %arg2: i32, %arg3: memref<32x128xbf16, #tpu.memory_space<vmem>>, %arg4: memref<128x128xbf16, #tpu.memory_space<vmem>>, %arg5: memref<1x128xf32, #tpu.memory_space<vmem>>, %arg6: memref<32x128xbf16, #tpu.memory_space<vmem>>, %arg7: memref<32x128xf32, #tpu.memory_space<vmem>>) attributes {dimension_semantics = [#tpu.dimension_semantics<parallel>, #tpu.dimension_semantics<parallel>, #tpu.dimension_semantics<arbitrary>], iteration_bounds = array<i64: 1, 1, 1>, scalar_prefetch = 0 : i64, scratch_operands = 1 : i64, tpu.core_type = #tpu.core_type<tc>, window_params = [{transform_indices = @transform_0, window_bounds = array<i64: 32, 128>}, {transform_indices = @transform_1, window_bounds = array<i64: 128, 128>}, {transform_indices = @transform_2, window_bounds = array<i64: 1, 128>}, {transform_indices = @transform_3, window_bounds = array<i64: 32, 128>}]} {
    %c0_i32 = arith.constant 0 : i32
    %0 = arith.cmpi eq, %arg2, %c0_i32 : i32
    %1 = arith.extui %0 : i1 to i32
    %c0_i32_0 = arith.constant 0 : i32
    %2 = arith.cmpi ne, %1, %c0_i32_0 : i32
    scf.if %2 {
      %cst_10 = arith.constant 0.000000e+00 : f32
      %12 = vector.broadcast %cst_10 : f32 to vector<32x128xf32>
      %c0_11 = arith.constant 0 : index
      %c0_12 = arith.constant 0 : index
      %13 = vector.load %arg7[%c0_11, %c0_12] : memref<32x128xf32, #tpu.memory_space<vmem>>, vector<32x128xf32>
      tpu.vector_store %arg7[%c0_11, %c0_12], %12 {strides = array<i32>} : memref<32x128xf32, #tpu.memory_space<vmem>>, vector<32x128xf32>,
    } else {
    }
    %c0 = arith.constant 0 : index
    %c0_1 = arith.constant 0 : index
    %3 = vector.load %arg3[%c0, %c0_1] : memref<32x128xbf16, #tpu.memory_space<vmem>>, vector<32x128xbf16>
    %c0_2 = arith.constant 0 : index
    %c0_3 = arith.constant 0 : index
    %4 = vector.load %arg7[%c0_2, %c0_3] : memref<32x128xf32, #tpu.memory_space<vmem>>, vector<32x128xf32>
    %c0_4 = arith.constant 0 : index
    %c0_5 = arith.constant 0 : index
    %5 = vector.load %arg4[%c0_4, %c0_5] : memref<128x128xbf16, #tpu.memory_space<vmem>>, vector<128x128xbf16>
    %cst = arith.constant dense<0.000000e+00> : vector<32x128xf32>
    %6 = tpu.matmul %3, %5, %cst {dimension_numbers = #tpu.dot_dimension_numbers<[1], [0], [0], [1], [0, 0, 1, 1], [], []>} : vector<32x128xbf16>, vector<128x128xbf16>, vector<32x128xf32> -> vector<32x128xf32>
    %7 = arith.addf %4, %6 : vector<32x128xf32>
    %c0_6 = arith.constant 0 : index
    %c0_7 = arith.constant 0 : index
    %8 = vector.load %arg7[%c0_6, %c0_7] : memref<32x128xf32, #tpu.memory_space<vmem>>, vector<32x128xf32>
    tpu.vector_store %arg7[%c0_6, %c0_7], %7 {strides = array<i32>} : memref<32x128xf32, #tpu.memory_space<vmem>>, vector<32x128xf32>,
    %c0_i32_8 = arith.constant 0 : i32
    %9 = arith.cmpi eq, %arg2, %c0_i32_8 : i32
    %10 = arith.extui %9 : i1 to i32
    %c0_i32_9 = arith.constant 0 : i32
    %11 = arith.cmpi ne, %10, %c0_i32_9 : i32
    scf.if %11 {
      %c0_10 = arith.constant 0 : index
      %c0_11 = arith.constant 0 : index
      %12 = vector.load %arg7[%c0_10, %c0_11] : memref<32x128xf32, #tpu.memory_space<vmem>>, vector<32x128xf32>
      %c0_12 = arith.constant 0 : index
      %c0_13 = arith.constant 0 : index
      %13 = vector.load %arg5[%c0_12, %c0_13] : memref<1x128xf32, #tpu.memory_space<vmem>>, vector<1x128xf32>
      %14 = vector.broadcast %13 : vector<1x128xf32> to vector<32x128xf32>
      %15 = arith.addf %12, %14 : vector<32x128xf32>
      %16 = arith.truncf %15 : vector<32x128xf32> to vector<32x128xbf16>
      %c0_14 = arith.constant 0 : index
      %c0_15 = arith.constant 0 : index
      %17 = vector.load %arg6[%c0_14, %c0_15] : memref<32x128xbf16, #tpu.memory_space<vmem>>, vector<32x128xbf16>
      tpu.vector_store %arg6[%c0_14, %c0_15], %16 {strides = array<i32>} : memref<32x128xbf16, #tpu.memory_space<vmem>>, vector<32x128xbf16>,
    } else {
    }
    return
  }
  func.func @transform_0(%arg0: i32, %arg1: i32, %arg2: i32) -> (i32, i32) {
    %c0_i32 = arith.constant 0 : i32
    return %arg0, %arg2 : i32, i32
  }
  func.func @transform_1(%arg0: i32, %arg1: i32, %arg2: i32) -> (i32, i32) {
    %c0_i32 = arith.constant 0 : i32
    return %arg2, %arg1 : i32, i32
  }
  func.func @transform_2(%arg0: i32, %arg1: i32, %arg2: i32) -> (i32, i32) {
    %c0_i32 = arith.constant 0 : i32
    %c0_i32_0 = arith.constant 0 : i32
    return %c0_i32, %arg1 : i32, i32
  }
  func.func @transform_3(%arg0: i32, %arg1: i32, %arg2: i32) -> (i32, i32) {
    %c0_i32 = arith.constant 0 : i32
    return %arg0, %arg1 : i32, i32
  }
}

module attributes {stable_mosaic.version = 11 : i64} {
  func.func @_vq_kernel(%arg0: i32, %arg1: memref<32x16xf32, #tpu.memory_space<vmem>>, %arg2: memref<32x16xf32, #tpu.memory_space<vmem>>, %arg3: memref<1x32xf32, #tpu.memory_space<vmem>>, %arg4: memref<32x16xf32, #tpu.memory_space<vmem>>, %arg5: memref<1x1xf32, #tpu.memory_space<vmem>>, %arg6: memref<1x1xf32, #tpu.memory_space<vmem>>, %arg7: memref<1x32xf32, #tpu.memory_space<vmem>>, %arg8: memref<1x1xf32, #tpu.memory_space<vmem>>) attributes {dimension_semantics = [#tpu.dimension_semantics<arbitrary>], iteration_bounds = array<i64: 1>, scalar_prefetch = 0 : i64, scratch_operands = 2 : i64, tpu.core_type = #tpu.core_type<tc>, window_params = [{transform_indices = @transform_0, window_bounds = array<i64: 32, 16>}, {pipeline_mode = #tpu.pipeline_mode<synchronous>, transform_indices = @transform_1, window_bounds = array<i64: 32, 16>}, {pipeline_mode = #tpu.pipeline_mode<synchronous>, transform_indices = @transform_2, window_bounds = array<i64: 1, 32>}, {transform_indices = @transform_3, window_bounds = array<i64: 32, 16>}, {pipeline_mode = #tpu.pipeline_mode<synchronous>, transform_indices = @transform_4, window_bounds = array<i64: 1, 1>}, {pipeline_mode = #tpu.pipeline_mode<synchronous>, transform_indices = @transform_5, window_bounds = array<i64: 1, 1>}]} {
    %c0_i32 = arith.constant 0 : i32
    %0 = arith.cmpi eq, %arg0, %c0_i32 : i32
    %1 = arith.extui %0 : i1 to i32
    %c0_i32_0 = arith.constant 0 : i32
    %2 = arith.cmpi ne, %1, %c0_i32_0 : i32
    scf.if %2 {
      %cst_27 = arith.constant 0.000000e+00 : f32
      %61 = vector.broadcast %cst_27 : f32 to vector<1x32xf32>
      %c0_28 = arith.constant 0 : index
      %c0_29 = arith.constant 0 : index
      %62 = vector.load %arg7[%c0_28, %c0_29] : memref<1x32xf32, #tpu.memory_space<vmem>>, vector<1x32xf32>
      tpu.vector_store %arg7[%c0_28, %c0_29], %61 {strides = array<i32>} : memref<1x32xf32, #tpu.memory_space<vmem>>, vector<1x32xf32>,
      %cst_30 = arith.constant 0.000000e+00 : f32
      %63 = vector.broadcast %cst_30 : f32 to vector<1x1xf32>
      %c0_31 = arith.constant 0 : index
      %c0_32 = arith.constant 0 : index
      %64 = vector.load %arg8[%c0_31, %c0_32] : memref<1x1xf32, #tpu.memory_space<vmem>>, vector<1x1xf32>
      tpu.vector_store %arg8[%c0_31, %c0_32], %63 {strides = array<i32>} : memref<1x1xf32, #tpu.memory_space<vmem>>, vector<1x1xf32>,
    } else {
    }
    %c0 = arith.constant 0 : index
    %c0_1 = arith.constant 0 : index
    %3 = vector.load %arg1[%c0, %c0_1] : memref<32x16xf32, #tpu.memory_space<vmem>>, vector<32x16xf32>
    %c0_2 = arith.constant 0 : index
    %c0_3 = arith.constant 0 : index
    %4 = vector.load %arg2[%c0_2, %c0_3] : memref<32x16xf32, #tpu.memory_space<vmem>>, vector<32x16xf32>
    %c0_4 = arith.constant 0 : index
    %c0_5 = arith.constant 0 : index
    %5 = vector.load %arg3[%c0_4, %c0_5] : memref<1x32xf32, #tpu.memory_space<vmem>>, vector<1x32xf32>
    %6 = arith.mulf %3, %3 : vector<32x16xf32>
    %cst = arith.constant dense<0.000000e+00> : vector<32xf32>
    %7 = vector.multi_reduction <add>, %6, %cst [1] : vector<32x16xf32> to vector<32xf32>
    %8 = vector.shape_cast %7 : vector<32xf32> to vector<32x1xf32>
    %cst_6 = arith.constant dense<0.000000e+00> : vector<32x32xf32>
    %9 = tpu.matmul %3, %4, %cst_6 {dimension_numbers = #tpu.dot_dimension_numbers<[1], [1], [0], [0], [0, 0, 1, 0], [], []>} : vector<32x16xf32>, vector<32x16xf32>, vector<32x32xf32> -> vector<32x32xf32>
    %10 = vector.broadcast %8 : vector<32x1xf32> to vector<32x32xf32>
    %11 = vector.broadcast %5 : vector<1x32xf32> to vector<32x32xf32>
    %12 = arith.addf %10, %11 : vector<32x32xf32>
    %cst_7 = arith.constant 2.000000e+00 : f32
    %13 = vector.broadcast %cst_7 : f32 to vector<32x32xf32>
    %14 = arith.mulf %13, %9 : vector<32x32xf32>
    %15 = arith.subf %12, %14 : vector<32x32xf32>
    %16 = tpu.iota {dimensions = array<i32: 1>} : vector<32x32xi32>
    %cst_8 = arith.constant dense<0x7F800000> : vector<32xf32>
    %17 = vector.multi_reduction <minimumf>, %15, %cst_8 [1] : vector<32x32xf32> to vector<32xf32>
    %18 = vector.shape_cast %17 : vector<32xf32> to vector<32x1xf32>
    %19 = vector.broadcast %18 : vector<32x1xf32> to vector<32x32xf32>
    %20 = arith.cmpf ole, %15, %19 : vector<32x32xf32>
    %c32_i32 = arith.constant 32 : i32
    %21 = vector.broadcast %c32_i32 : i32 to vector<32x32xi32>
    %22 = arith.select %20, %16, %21 : vector<32x32xi1>, vector<32x32xi32>
    %cst_9 = arith.constant dense<2147483647> : vector<32xi32>
    %23 = vector.multi_reduction <minsi>, %22, %cst_9 [1] : vector<32x32xi32> to vector<32xi32>
    %24 = vector.shape_cast %23 : vector<32xi32> to vector<32x1xi32>
    %25 = vector.broadcast %24 : vector<32x1xi32> to vector<32x32xi32>
    %26 = arith.cmpi eq, %16, %25 : vector<32x32xi32>
    %27 = arith.extui %26 : vector<32x32xi1> to vector<32x32xi32>
    %28 = arith.sitofp %27 : vector<32x32xi32> to vector<32x32xf32>
    %29 = tpu.iota {dimensions = array<i32: 0>} : vector<32x1xi32>
    %c32_i32_10 = arith.constant 32 : i32
    %30 = arith.muli %arg0, %c32_i32_10 : i32
    %31 = vector.broadcast %30 : i32 to vector<32x1xi32>
    %32 = arith.addi %29, %31 : vector<32x1xi32>
    %c32_i32_11 = arith.constant 32 : i32
    %33 = vector.broadcast %c32_i32_11 : i32 to vector<32x1xi32>
    %34 = arith.cmpi slt, %32, %33 : vector<32x1xi32>
    %35 = arith.extui %34 : vector<32x1xi1> to vector<32x1xi32>
    %36 = arith.sitofp %35 : vector<32x1xi32> to vector<32x1xf32>
    %cst_12 = arith.constant dense<0.000000e+00> : vector<32x16xf32>
    %37 = tpu.matmul %28, %4, %cst_12 {dimension_numbers = #tpu.dot_dimension_numbers<[1], [0], [0], [1], [0, 0, 1, 1], [], []>} : vector<32x32xf32>, vector<32x16xf32>, vector<32x16xf32> -> vector<32x16xf32>
    %38 = arith.subf %37, %3 : vector<32x16xf32>
    %39 = vector.broadcast %36 : vector<32x1xf32> to vector<32x16xf32>
    %40 = arith.mulf %38, %39 : vector<32x16xf32>
    %c0_13 = arith.constant 0 : index
    %c0_14 = arith.constant 0 : index
    %41 = vector.load %arg8[%c0_13, %c0_14] : memref<1x1xf32, #tpu.memory_space<vmem>>, vector<1x1xf32>
    %42 = arith.mulf %40, %40 : vector<32x16xf32>
    %43 = vector.shape_cast %42 : vector<32x16xf32> to vector<1x32x16xf32>
    %cst_15 = arith.constant dense<0.000000e+00> : vector<1xf32>
    %44 = vector.multi_reduction <add>, %43, %cst_15 [1, 2] : vector<1x32x16xf32> to vector<1xf32>
    %45 = vector.shape_cast %44 : vector<1xf32> to vector<1x1x1xf32>
    %46 = vector.extract %45[0, 0, 0] : f32 from vector<1x1x1xf32>
    %47 = vector.broadcast %46 : f32 to vector<1x1xf32>
    %48 = arith.addf %41, %47 : vector<1x1xf32>
    %c0_16 = arith.constant 0 : index
    %c0_17 = arith.constant 0 : index
    %49 = vector.load %arg8[%c0_16, %c0_17] : memref<1x1xf32, #tpu.memory_space<vmem>>, vector<1x1xf32>
    tpu.vector_store %arg8[%c0_16, %c0_17], %48 {strides = array<i32>} : memref<1x1xf32, #tpu.memory_space<vmem>>, vector<1x1xf32>,
    %c0_18 = arith.constant 0 : index
    %c0_19 = arith.constant 0 : index
    %50 = vector.load %arg7[%c0_18, %c0_19] : memref<1x32xf32, #tpu.memory_space<vmem>>, vector<1x32xf32>
    %51 = vector.broadcast %36 : vector<32x1xf32> to vector<32x32xf32>
    %52 = arith.mulf %28, %51 : vector<32x32xf32>
    %cst_20 = arith.constant dense<0.000000e+00> : vector<32xf32>
    %53 = vector.multi_reduction <add>, %52, %cst_20 [0] : vector<32x32xf32> to vector<32xf32>
    %54 = vector.shape_cast %53 : vector<32xf32> to vector<1x32xf32>
    %55 = arith.addf %50, %54 : vector<1x32xf32>
    %c0_21 = arith.constant 0 : index
    %c0_22 = arith.constant 0 : index
    %56 = vector.load %arg7[%c0_21, %c0_22] : memref<1x32xf32, #tpu.memory_space<vmem>>, vector<1x32xf32>
    tpu.vector_store %arg7[%c0_21, %c0_22], %55 {strides = array<i32>} : memref<1x32xf32, #tpu.memory_space<vmem>>, vector<1x32xf32>,
    %c0_23 = arith.constant 0 : index
    %c0_24 = arith.constant 0 : index
    %57 = vector.load %arg4[%c0_23, %c0_24] : memref<32x16xf32, #tpu.memory_space<vmem>>, vector<32x16xf32>
    tpu.vector_store %arg4[%c0_23, %c0_24], %37 {strides = array<i32>} : memref<32x16xf32, #tpu.memory_space<vmem>>, vector<32x16xf32>,
    %c0_i32_25 = arith.constant 0 : i32
    %58 = arith.cmpi eq, %arg0, %c0_i32_25 : i32
    %59 = arith.extui %58 : i1 to i32
    %c0_i32_26 = arith.constant 0 : i32
    %60 = arith.cmpi ne, %59, %c0_i32_26 : i32
    scf.if %60 {
      %c0_27 = arith.constant 0 : index
      %c0_28 = arith.constant 0 : index
      %61 = vector.load %arg8[%c0_27, %c0_28] : memref<1x1xf32, #tpu.memory_space<vmem>>, vector<1x1xf32>
      %cst_29 = arith.constant 0.001953125 : f32
      %62 = vector.broadcast %cst_29 : f32 to vector<1x1xf32>
      %63 = arith.mulf %61, %62 : vector<1x1xf32>
      %cst_30 = arith.constant 1.250000e+00 : f32
      %64 = vector.broadcast %cst_30 : f32 to vector<1x1xf32>
      %65 = arith.mulf %64, %63 : vector<1x1xf32>
      %c0_31 = arith.constant 0 : index
      %c0_32 = arith.constant 0 : index
      %66 = vector.load %arg5[%c0_31, %c0_32] : memref<1x1xf32, #tpu.memory_space<vmem>>, vector<1x1xf32>
      tpu.vector_store %arg5[%c0_31, %c0_32], %65 {strides = array<i32>} : memref<1x1xf32, #tpu.memory_space<vmem>>, vector<1x1xf32>,
      %c0_33 = arith.constant 0 : index
      %c0_34 = arith.constant 0 : index
      %67 = vector.load %arg7[%c0_33, %c0_34] : memref<1x32xf32, #tpu.memory_space<vmem>>, vector<1x32xf32>
      %cst_35 = arith.constant 3.125000e-02 : f32
      %68 = vector.broadcast %cst_35 : f32 to vector<1x32xf32>
      %69 = arith.mulf %67, %68 : vector<1x32xf32>
      %cst_36 = arith.constant 1.000000e-10 : f32
      %70 = vector.broadcast %cst_36 : f32 to vector<1x32xf32>
      %71 = arith.addf %69, %70 : vector<1x32xf32>
      %72 = math.log %71 : vector<1x32xf32>
      %73 = arith.mulf %69, %72 : vector<1x32xf32>
      %74 = vector.shape_cast %73 : vector<1x32xf32> to vector<1x1x32xf32>
      %cst_37 = arith.constant dense<0.000000e+00> : vector<1xf32>
      %75 = vector.multi_reduction <add>, %74, %cst_37 [1, 2] : vector<1x1x32xf32> to vector<1xf32>
      %76 = vector.shape_cast %75 : vector<1xf32> to vector<1x1x1xf32>
      %77 = vector.extract %76[0, 0, 0] : f32 from vector<1x1x1xf32>
      %78 = vector.broadcast %77 : f32 to vector<1x1xf32>
      %cst_38 = arith.constant 0.000000e+00 : f32
      %79 = vector.broadcast %cst_38 : f32 to vector<1x1xf32>
      %80 = arith.subf %79, %78 : vector<1x1xf32>
      %81 = math.exp %80 : vector<1x1xf32>
      %c0_39 = arith.constant 0 : index
      %c0_40 = arith.constant 0 : index
      %82 = vector.load %arg6[%c0_39, %c0_40] : memref<1x1xf32, #tpu.memory_space<vmem>>, vector<1x1xf32>
      tpu.vector_store %arg6[%c0_39, %c0_40], %81 {strides = array<i32>} : memref<1x1xf32, #tpu.memory_space<vmem>>, vector<1x1xf32>,
    } else {
    }
    return
  }
  func.func @transform_0(%arg0: i32) -> (i32, i32) {
    %c0_i32 = arith.constant 0 : i32
    %c0_i32_0 = arith.constant 0 : i32
    return %arg0, %c0_i32 : i32, i32
  }
  func.func @transform_1(%arg0: i32) -> (i32, i32) {
    %c0_i32 = arith.constant 0 : i32
    %c0_i32_0 = arith.constant 0 : i32
    %c0_i32_1 = arith.constant 0 : i32
    return %c0_i32, %c0_i32_0 : i32, i32
  }
  func.func @transform_2(%arg0: i32) -> (i32, i32) {
    %c0_i32 = arith.constant 0 : i32
    %c0_i32_0 = arith.constant 0 : i32
    %c0_i32_1 = arith.constant 0 : i32
    return %c0_i32, %c0_i32_0 : i32, i32
  }
  func.func @transform_3(%arg0: i32) -> (i32, i32) {
    %c0_i32 = arith.constant 0 : i32
    %c0_i32_0 = arith.constant 0 : i32
    return %arg0, %c0_i32 : i32, i32
  }
  func.func @transform_4(%arg0: i32) -> (i32, i32) {
    %c0_i32 = arith.constant 0 : i32
    %c0_i32_0 = arith.constant 0 : i32
    %c0_i32_1 = arith.constant 0 : i32
    return %c0_i32, %c0_i32_0 : i32, i32
  }
  func.func @transform_5(%arg0: i32) -> (i32, i32) {
    %c0_i32 = arith.constant 0 : i32
    %c0_i32_0 = arith.constant 0 : i32
    %c0_i32_1 = arith.constant 0 : i32
    return %c0_i32, %c0_i32_0 : i32, i32
  }
}

module attributes {stable_mosaic.version = 11 : i64} {
  func.func @_gemm_kernel(%arg0: i32, %arg1: i32, %arg2: i32, %arg3: memref<32x256xbf16, #tpu.memory_space<vmem>>, %arg4: memref<256x128xbf16, #tpu.memory_space<vmem>>, %arg5: memref<1x128xf32, #tpu.memory_space<vmem>>, %arg6: memref<32x128xbf16, #tpu.memory_space<vmem>>, %arg7: memref<32x128xf32, #tpu.memory_space<vmem>>) attributes {dimension_semantics = [#tpu.dimension_semantics<parallel>, #tpu.dimension_semantics<parallel>, #tpu.dimension_semantics<arbitrary>], iteration_bounds = array<i64: 1, 1, 1>, scalar_prefetch = 0 : i64, scratch_operands = 1 : i64, tpu.core_type = #tpu.core_type<tc>, window_params = [{transform_indices = @transform_0, window_bounds = array<i64: 32, 256>}, {transform_indices = @transform_1, window_bounds = array<i64: 256, 128>}, {transform_indices = @transform_2, window_bounds = array<i64: 1, 128>}, {transform_indices = @transform_3, window_bounds = array<i64: 32, 128>}]} {
    %c0_i32 = arith.constant 0 : i32
    %0 = arith.cmpi eq, %arg2, %c0_i32 : i32
    %1 = arith.extui %0 : i1 to i32
    %c0_i32_0 = arith.constant 0 : i32
    %2 = arith.cmpi ne, %1, %c0_i32_0 : i32
    scf.if %2 {
      %cst_10 = arith.constant 0.000000e+00 : f32
      %12 = vector.broadcast %cst_10 : f32 to vector<32x128xf32>
      %c0_11 = arith.constant 0 : index
      %c0_12 = arith.constant 0 : index
      %13 = vector.load %arg7[%c0_11, %c0_12] : memref<32x128xf32, #tpu.memory_space<vmem>>, vector<32x128xf32>
      tpu.vector_store %arg7[%c0_11, %c0_12], %12 {strides = array<i32>} : memref<32x128xf32, #tpu.memory_space<vmem>>, vector<32x128xf32>,
    } else {
    }
    %c0 = arith.constant 0 : index
    %c0_1 = arith.constant 0 : index
    %3 = vector.load %arg3[%c0, %c0_1] : memref<32x256xbf16, #tpu.memory_space<vmem>>, vector<32x256xbf16>
    %c0_2 = arith.constant 0 : index
    %c0_3 = arith.constant 0 : index
    %4 = vector.load %arg7[%c0_2, %c0_3] : memref<32x128xf32, #tpu.memory_space<vmem>>, vector<32x128xf32>
    %c0_4 = arith.constant 0 : index
    %c0_5 = arith.constant 0 : index
    %5 = vector.load %arg4[%c0_4, %c0_5] : memref<256x128xbf16, #tpu.memory_space<vmem>>, vector<256x128xbf16>
    %cst = arith.constant dense<0.000000e+00> : vector<32x128xf32>
    %6 = tpu.matmul %3, %5, %cst {dimension_numbers = #tpu.dot_dimension_numbers<[1], [0], [0], [1], [0, 0, 1, 1], [], []>} : vector<32x256xbf16>, vector<256x128xbf16>, vector<32x128xf32> -> vector<32x128xf32>
    %7 = arith.addf %4, %6 : vector<32x128xf32>
    %c0_6 = arith.constant 0 : index
    %c0_7 = arith.constant 0 : index
    %8 = vector.load %arg7[%c0_6, %c0_7] : memref<32x128xf32, #tpu.memory_space<vmem>>, vector<32x128xf32>
    tpu.vector_store %arg7[%c0_6, %c0_7], %7 {strides = array<i32>} : memref<32x128xf32, #tpu.memory_space<vmem>>, vector<32x128xf32>,
    %c0_i32_8 = arith.constant 0 : i32
    %9 = arith.cmpi eq, %arg2, %c0_i32_8 : i32
    %10 = arith.extui %9 : i1 to i32
    %c0_i32_9 = arith.constant 0 : i32
    %11 = arith.cmpi ne, %10, %c0_i32_9 : i32
    scf.if %11 {
      %c0_10 = arith.constant 0 : index
      %c0_11 = arith.constant 0 : index
      %12 = vector.load %arg7[%c0_10, %c0_11] : memref<32x128xf32, #tpu.memory_space<vmem>>, vector<32x128xf32>
      %c0_12 = arith.constant 0 : index
      %c0_13 = arith.constant 0 : index
      %13 = vector.load %arg5[%c0_12, %c0_13] : memref<1x128xf32, #tpu.memory_space<vmem>>, vector<1x128xf32>
      %14 = vector.broadcast %13 : vector<1x128xf32> to vector<32x128xf32>
      %15 = arith.addf %12, %14 : vector<32x128xf32>
      %16 = arith.truncf %15 : vector<32x128xf32> to vector<32x128xbf16>
      %c0_14 = arith.constant 0 : index
      %c0_15 = arith.constant 0 : index
      %17 = vector.load %arg6[%c0_14, %c0_15] : memref<32x128xbf16, #tpu.memory_space<vmem>>, vector<32x128xbf16>
      tpu.vector_store %arg6[%c0_14, %c0_15], %16 {strides = array<i32>} : memref<32x128xbf16, #tpu.memory_space<vmem>>, vector<32x128xbf16>,
    } else {
    }
    return
  }
  func.func @transform_0(%arg0: i32, %arg1: i32, %arg2: i32) -> (i32, i32) {
    %c0_i32 = arith.constant 0 : i32
    return %arg0, %arg2 : i32, i32
  }
  func.func @transform_1(%arg0: i32, %arg1: i32, %arg2: i32) -> (i32, i32) {
    %c0_i32 = arith.constant 0 : i32
    return %arg2, %arg1 : i32, i32
  }
  func.func @transform_2(%arg0: i32, %arg1: i32, %arg2: i32) -> (i32, i32) {
    %c0_i32 = arith.constant 0 : i32
    %c0_i32_0 = arith.constant 0 : i32
    return %c0_i32, %arg1 : i32, i32
  }
  func.func @transform_3(%arg0: i32, %arg1: i32, %arg2: i32) -> (i32, i32) {
    %c0_i32 = arith.constant 0 : i32
    return %arg0, %arg1 : i32, i32
  }
}

module attributes {stable_mosaic.version = 11 : i64} {
  func.func @_gemm_kernel(%arg0: i32, %arg1: i32, %arg2: i32, %arg3: memref<32x384xbf16, #tpu.memory_space<vmem>>, %arg4: memref<384x128xbf16, #tpu.memory_space<vmem>>, %arg5: memref<1x128xf32, #tpu.memory_space<vmem>>, %arg6: memref<32x128xbf16, #tpu.memory_space<vmem>>, %arg7: memref<32x128xf32, #tpu.memory_space<vmem>>) attributes {dimension_semantics = [#tpu.dimension_semantics<parallel>, #tpu.dimension_semantics<parallel>, #tpu.dimension_semantics<arbitrary>], iteration_bounds = array<i64: 1, 1, 1>, scalar_prefetch = 0 : i64, scratch_operands = 1 : i64, tpu.core_type = #tpu.core_type<tc>, window_params = [{transform_indices = @transform_0, window_bounds = array<i64: 32, 384>}, {transform_indices = @transform_1, window_bounds = array<i64: 384, 128>}, {transform_indices = @transform_2, window_bounds = array<i64: 1, 128>}, {transform_indices = @transform_3, window_bounds = array<i64: 32, 128>}]} {
    %c0_i32 = arith.constant 0 : i32
    %0 = arith.cmpi eq, %arg2, %c0_i32 : i32
    %1 = arith.extui %0 : i1 to i32
    %c0_i32_0 = arith.constant 0 : i32
    %2 = arith.cmpi ne, %1, %c0_i32_0 : i32
    scf.if %2 {
      %cst_10 = arith.constant 0.000000e+00 : f32
      %12 = vector.broadcast %cst_10 : f32 to vector<32x128xf32>
      %c0_11 = arith.constant 0 : index
      %c0_12 = arith.constant 0 : index
      %13 = vector.load %arg7[%c0_11, %c0_12] : memref<32x128xf32, #tpu.memory_space<vmem>>, vector<32x128xf32>
      tpu.vector_store %arg7[%c0_11, %c0_12], %12 {strides = array<i32>} : memref<32x128xf32, #tpu.memory_space<vmem>>, vector<32x128xf32>,
    } else {
    }
    %c0 = arith.constant 0 : index
    %c0_1 = arith.constant 0 : index
    %3 = vector.load %arg3[%c0, %c0_1] : memref<32x384xbf16, #tpu.memory_space<vmem>>, vector<32x384xbf16>
    %c0_2 = arith.constant 0 : index
    %c0_3 = arith.constant 0 : index
    %4 = vector.load %arg7[%c0_2, %c0_3] : memref<32x128xf32, #tpu.memory_space<vmem>>, vector<32x128xf32>
    %c0_4 = arith.constant 0 : index
    %c0_5 = arith.constant 0 : index
    %5 = vector.load %arg4[%c0_4, %c0_5] : memref<384x128xbf16, #tpu.memory_space<vmem>>, vector<384x128xbf16>
    %cst = arith.constant dense<0.000000e+00> : vector<32x128xf32>
    %6 = tpu.matmul %3, %5, %cst {dimension_numbers = #tpu.dot_dimension_numbers<[1], [0], [0], [1], [0, 0, 1, 1], [], []>} : vector<32x384xbf16>, vector<384x128xbf16>, vector<32x128xf32> -> vector<32x128xf32>
    %7 = arith.addf %4, %6 : vector<32x128xf32>
    %c0_6 = arith.constant 0 : index
    %c0_7 = arith.constant 0 : index
    %8 = vector.load %arg7[%c0_6, %c0_7] : memref<32x128xf32, #tpu.memory_space<vmem>>, vector<32x128xf32>
    tpu.vector_store %arg7[%c0_6, %c0_7], %7 {strides = array<i32>} : memref<32x128xf32, #tpu.memory_space<vmem>>, vector<32x128xf32>,
    %c0_i32_8 = arith.constant 0 : i32
    %9 = arith.cmpi eq, %arg2, %c0_i32_8 : i32
    %10 = arith.extui %9 : i1 to i32
    %c0_i32_9 = arith.constant 0 : i32
    %11 = arith.cmpi ne, %10, %c0_i32_9 : i32
    scf.if %11 {
      %c0_10 = arith.constant 0 : index
      %c0_11 = arith.constant 0 : index
      %12 = vector.load %arg7[%c0_10, %c0_11] : memref<32x128xf32, #tpu.memory_space<vmem>>, vector<32x128xf32>
      %c0_12 = arith.constant 0 : index
      %c0_13 = arith.constant 0 : index
      %13 = vector.load %arg5[%c0_12, %c0_13] : memref<1x128xf32, #tpu.memory_space<vmem>>, vector<1x128xf32>
      %14 = vector.broadcast %13 : vector<1x128xf32> to vector<32x128xf32>
      %15 = arith.addf %12, %14 : vector<32x128xf32>
      %cst_14 = arith.constant 0.000000e+00 : f32
      %16 = vector.broadcast %cst_14 : f32 to vector<32x128xf32>
      %17 = arith.maximumf %15, %16 : vector<32x128xf32>
      %18 = arith.truncf %17 : vector<32x128xf32> to vector<32x128xbf16>
      %c0_15 = arith.constant 0 : index
      %c0_16 = arith.constant 0 : index
      %19 = vector.load %arg6[%c0_15, %c0_16] : memref<32x128xbf16, #tpu.memory_space<vmem>>, vector<32x128xbf16>
      tpu.vector_store %arg6[%c0_15, %c0_16], %18 {strides = array<i32>} : memref<32x128xbf16, #tpu.memory_space<vmem>>, vector<32x128xbf16>,
    } else {
    }
    return
  }
  func.func @transform_0(%arg0: i32, %arg1: i32, %arg2: i32) -> (i32, i32) {
    %c0_i32 = arith.constant 0 : i32
    return %arg0, %arg2 : i32, i32
  }
  func.func @transform_1(%arg0: i32, %arg1: i32, %arg2: i32) -> (i32, i32) {
    %c0_i32 = arith.constant 0 : i32
    return %arg2, %arg1 : i32, i32
  }
  func.func @transform_2(%arg0: i32, %arg1: i32, %arg2: i32) -> (i32, i32) {
    %c0_i32 = arith.constant 0 : i32
    %c0_i32_0 = arith.constant 0 : i32
    return %c0_i32, %arg1 : i32, i32
  }
  func.func @transform_3(%arg0: i32, %arg1: i32, %arg2: i32) -> (i32, i32) {
    %c0_i32 = arith.constant 0 : i32
    return %arg0, %arg1 : i32, i32
  }
}

module attributes {stable_mosaic.version = 11 : i64} {
  func.func @_gemm_kernel(%arg0: i32, %arg1: i32, %arg2: i32, %arg3: memref<128x256xbf16, #tpu.memory_space<vmem>>, %arg4: memref<256x128xbf16, #tpu.memory_space<vmem>>, %arg5: memref<1x128xf32, #tpu.memory_space<vmem>>, %arg6: memref<128x128xbf16, #tpu.memory_space<vmem>>, %arg7: memref<128x128xf32, #tpu.memory_space<vmem>>) attributes {dimension_semantics = [#tpu.dimension_semantics<parallel>, #tpu.dimension_semantics<parallel>, #tpu.dimension_semantics<arbitrary>], iteration_bounds = array<i64: 1, 1, 1>, scalar_prefetch = 0 : i64, scratch_operands = 1 : i64, tpu.core_type = #tpu.core_type<tc>, window_params = [{transform_indices = @transform_0, window_bounds = array<i64: 128, 256>}, {transform_indices = @transform_1, window_bounds = array<i64: 256, 128>}, {transform_indices = @transform_2, window_bounds = array<i64: 1, 128>}, {transform_indices = @transform_3, window_bounds = array<i64: 128, 128>}]} {
    %c0_i32 = arith.constant 0 : i32
    %0 = arith.cmpi eq, %arg2, %c0_i32 : i32
    %1 = arith.extui %0 : i1 to i32
    %c0_i32_0 = arith.constant 0 : i32
    %2 = arith.cmpi ne, %1, %c0_i32_0 : i32
    scf.if %2 {
      %cst_10 = arith.constant 0.000000e+00 : f32
      %12 = vector.broadcast %cst_10 : f32 to vector<128x128xf32>
      %c0_11 = arith.constant 0 : index
      %c0_12 = arith.constant 0 : index
      %13 = vector.load %arg7[%c0_11, %c0_12] : memref<128x128xf32, #tpu.memory_space<vmem>>, vector<128x128xf32>
      tpu.vector_store %arg7[%c0_11, %c0_12], %12 {strides = array<i32>} : memref<128x128xf32, #tpu.memory_space<vmem>>, vector<128x128xf32>,
    } else {
    }
    %c0 = arith.constant 0 : index
    %c0_1 = arith.constant 0 : index
    %3 = vector.load %arg3[%c0, %c0_1] : memref<128x256xbf16, #tpu.memory_space<vmem>>, vector<128x256xbf16>
    %c0_2 = arith.constant 0 : index
    %c0_3 = arith.constant 0 : index
    %4 = vector.load %arg7[%c0_2, %c0_3] : memref<128x128xf32, #tpu.memory_space<vmem>>, vector<128x128xf32>
    %c0_4 = arith.constant 0 : index
    %c0_5 = arith.constant 0 : index
    %5 = vector.load %arg4[%c0_4, %c0_5] : memref<256x128xbf16, #tpu.memory_space<vmem>>, vector<256x128xbf16>
    %cst = arith.constant dense<0.000000e+00> : vector<128x128xf32>
    %6 = tpu.matmul %3, %5, %cst {dimension_numbers = #tpu.dot_dimension_numbers<[1], [0], [0], [1], [0, 0, 1, 1], [], []>} : vector<128x256xbf16>, vector<256x128xbf16>, vector<128x128xf32> -> vector<128x128xf32>
    %7 = arith.addf %4, %6 : vector<128x128xf32>
    %c0_6 = arith.constant 0 : index
    %c0_7 = arith.constant 0 : index
    %8 = vector.load %arg7[%c0_6, %c0_7] : memref<128x128xf32, #tpu.memory_space<vmem>>, vector<128x128xf32>
    tpu.vector_store %arg7[%c0_6, %c0_7], %7 {strides = array<i32>} : memref<128x128xf32, #tpu.memory_space<vmem>>, vector<128x128xf32>,
    %c0_i32_8 = arith.constant 0 : i32
    %9 = arith.cmpi eq, %arg2, %c0_i32_8 : i32
    %10 = arith.extui %9 : i1 to i32
    %c0_i32_9 = arith.constant 0 : i32
    %11 = arith.cmpi ne, %10, %c0_i32_9 : i32
    scf.if %11 {
      %c0_10 = arith.constant 0 : index
      %c0_11 = arith.constant 0 : index
      %12 = vector.load %arg7[%c0_10, %c0_11] : memref<128x128xf32, #tpu.memory_space<vmem>>, vector<128x128xf32>
      %c0_12 = arith.constant 0 : index
      %c0_13 = arith.constant 0 : index
      %13 = vector.load %arg5[%c0_12, %c0_13] : memref<1x128xf32, #tpu.memory_space<vmem>>, vector<1x128xf32>
      %14 = vector.broadcast %13 : vector<1x128xf32> to vector<128x128xf32>
      %15 = arith.addf %12, %14 : vector<128x128xf32>
      %16 = arith.truncf %15 : vector<128x128xf32> to vector<128x128xbf16>
      %c0_14 = arith.constant 0 : index
      %c0_15 = arith.constant 0 : index
      %17 = vector.load %arg6[%c0_14, %c0_15] : memref<128x128xbf16, #tpu.memory_space<vmem>>, vector<128x128xbf16>
      tpu.vector_store %arg6[%c0_14, %c0_15], %16 {strides = array<i32>} : memref<128x128xbf16, #tpu.memory_space<vmem>>, vector<128x128xbf16>,
    } else {
    }
    return
  }
  func.func @transform_0(%arg0: i32, %arg1: i32, %arg2: i32) -> (i32, i32) {
    %c0_i32 = arith.constant 0 : i32
    return %arg0, %arg2 : i32, i32
  }
  func.func @transform_1(%arg0: i32, %arg1: i32, %arg2: i32) -> (i32, i32) {
    %c0_i32 = arith.constant 0 : i32
    return %arg2, %arg1 : i32, i32
  }
  func.func @transform_2(%arg0: i32, %arg1: i32, %arg2: i32) -> (i32, i32) {
    %c0_i32 = arith.constant 0 : i32
    %c0_i32_0 = arith.constant 0 : i32
    return %c0_i32, %arg1 : i32, i32
  }
  func.func @transform_3(%arg0: i32, %arg1: i32, %arg2: i32) -> (i32, i32) {
    %c0_i32 = arith.constant 0 : i32
    return %arg0, %arg1 : i32, i32
  }
}

</mosaic_0001>

<bundles_post_ra>
// kernel: tsvae_forward.19
= control target key start
LH: loop header
LB: loop body
LE: loop exit
PB: predicated region body
PF: predicated region fallthrough
CT: control target
= control target key end

     0   :  { %s597_s1 = inlined_call_operand.vmem [shape: bf16[128,128], index: 1, kind: input, shape index: {}]   ;;  %s598_s2 = inlined_call_operand.vmem [shape: f32[1,128], index: 2, kind: input, shape index: {}]   ;;  %s599_s0 = inlined_call_operand.vmem [shape: bf16[128,128], index: 0, kind: input, shape index: {}]   ;;  %s600_s3 = inlined_call_operand.vmem [shape: bf16[128,128], index: 3, kind: output, shape index: {}]  }
   0x1   :  { %v429_v0 = vld [vmem:[%s597_s1 + $0x38] sm:$0xff]  ;;  %v428_v1 = vld [vmem:[%s597_s1 + $0x30] sm:$0xff]  ;;  %v427_v2 = vld [vmem:[%s597_s1 + $0x28] sm:$0xff] }
   0x2   :  { %178 = vmatpush.bf16.msra.mxu0 %v429_v0  ;;  %477 = vmatpush.bf16.msra.mxu1 %v429_v0  ;;  %v426_v3 = vld [vmem:[%s597_s1 + $0x20] sm:$0xff]  ;;  %v425_v4 = vld [vmem:[%s597_s1 + $0x18] sm:$0xff]  ;;  %v424_v5 = vld [vmem:[%s597_s1 + $0x10] sm:$0xff] }
   0x3   :  { %478 = vmatpush.bf16.msra.mxu2 %v429_v0  ;;  %479 = vmatpush.bf16.msra.mxu3 %v429_v0  ;;  %v423_v6 = vld [vmem:[%s597_s1 + $0x8] sm:$0xff]  ;;  %v422_v7 = vld [vmem:[%s597_s1] sm:$0xff]  ;;  %v416_v9 = vld [vmem:[%s599_s0 + $0x10] sm:$0xff] }
   0x4   :  { %v414_v8 = vld [vmem:[%s599_s0] sm:$0xff]  ;;  %v420_v11 = vld [vmem:[%s599_s0 + $0x30] sm:$0xff]  ;;  %v415_v12 = vld [vmem:[%s599_s0 + $0x8] sm:$0xff] }
   0x5   :  { %v418_v10 = vld [vmem:[%s599_s0 + $0x20] sm:$0xff]  ;;  %v417_v13 = vld [vmem:[%s599_s0 + $0x18] sm:$0xff]  ;;  %v419_v14 = vld [vmem:[%s599_s0 + $0x28] sm:$0xff] }
   0x6   :  { %179 = vmatpush.bf16.msra.mxu0 %v428_v1  ;;  %480 = vmatpush.bf16.msra.mxu1 %v428_v1  ;;  %v421_v15 = vld [vmem:[%s599_s0 + $0x38] sm:$0xff]  ;;  %v501_v18 = vld [vmem:[%s598_s2] ss:$0 sm:$0xff] }
   0x7   :  { %481 = vmatpush.bf16.msra.mxu2 %v428_v1  ;;  %482 = vmatpush.bf16.msra.mxu3 %v428_v1 }
   0xa   :  { %180 = vmatpush.bf16.msra.mxu0 %v427_v2  ;;  %483 = vmatpush.bf16.msra.mxu1 %v427_v2 }
   0xb   :  { %484 = vmatpush.bf16.msra.mxu2 %v427_v2  ;;  %485 = vmatpush.bf16.msra.mxu3 %v427_v2 }
   0xe   :  { %181 = vmatpush.bf16.msra.mxu0 %v426_v3  ;;  %486 = vmatpush.bf16.msra.mxu1 %v426_v3 }
   0xf   :  { %487 = vmatpush.bf16.msra.mxu2 %v426_v3  ;;  %488 = vmatpush.bf16.msra.mxu3 %v426_v3 }
  0x12   :  { %182 = vmatpush.bf16.msra.mxu0 %v425_v4  ;;  %489 = vmatpush.bf16.msra.mxu1 %v425_v4 }
  0x13   :  { %490 = vmatpush.bf16.msra.mxu2 %v425_v4  ;;  %491 = vmatpush.bf16.msra.mxu3 %v425_v4 }
  0x16   :  { %183 = vmatpush.bf16.msra.mxu0 %v424_v5  ;;  %492 = vmatpush.bf16.msra.mxu1 %v424_v5 }
  0x17   :  { %493 = vmatpush.bf16.msra.mxu2 %v424_v5  ;;  %494 = vmatpush.bf16.msra.mxu3 %v424_v5 }
  0x1a   :  { %184 = vmatpush.bf16.msra.mxu0 %v423_v6  ;;  %495 = vmatpush.bf16.msra.mxu1 %v423_v6 }
  0x1b   :  { %496 = vmatpush.bf16.msra.mxu2 %v423_v6  ;;  %497 = vmatpush.bf16.msra.mxu3 %v423_v6 }
  0x1e   :  { %185 = vmatpush.bf16.msra.mxu0 %v422_v7  ;;  %498 = vmatpush.bf16.msra.mxu1 %v422_v7 }
  0x1f   :  { %499 = vmatpush.bf16.msra.mxu2 %v422_v7  ;;  %500 = vmatpush.bf16.msra.mxu3 %v422_v7 }
  0x21   :  { %186 = vmatmul.bf16.vlgmr.msra.gmra.mxu0 %v414_v8  ;;  %196 = vmatmul.bf16.vlgmr.msra.gmra.mxu1 %v416_v9 }
  0x22   :  { %206 = vmatmul.bf16.vlgmr.msra.gmra.mxu2 %v418_v10  ;;  %216 = vmatmul.bf16.vlgmr.msra.gmra.mxu3 %v420_v11 }
  0x31   :  { %191 = vmatmul.bf16.gmra.mxu0 %v415_v12  ;;  %201 = vmatmul.bf16.gmra.mxu1 %v417_v13 }
  0x32   :  { %211 = vmatmul.bf16.gmra.mxu2 %v419_v14  ;;  %221 = vmatmul.bf16.gmra.mxu3 %v421_v15 }
  0x9e   :  { %v187_v16 = vpop.f32.mrf.mxu0  ;;  %v197_v17 = vpop.f32.mrf.mxu1 }
  0x9f   :  { %v282_v19 = vadd.f32 %v501_v18, %v187_v16  ;;  %v286_v20 = vadd.f32 %v501_v18, %v197_v17 }
  0xa1   :  { %v298_v27 = vmax.f32 %v282_v19, 0.0  ;;  %v302_v28 = vmax.f32 %v286_v20, 0.0 }
  0xa5   :  { %v207_v21 = vpop.f32.mrf.mxu2  ;;  %v217_v22 = vpop.f32.mrf.mxu3 }
  0xa6   :  { %v189_v23 = vpop.f32.mrf.mxu0  ;;  %v199_v24 = vpop.f32.mrf.mxu1  ;;  %v290_v33 = vadd.f32 %v501_v18, %v207_v21  ;;  %v294_v34 = vadd.f32 %v501_v18, %v217_v22 }
  0xa7   :  { %v283_v25 = vadd.f32 %v501_v18, %v189_v23  ;;  %v287_v26 = vadd.f32 %v501_v18, %v199_v24 }
  0xa8   :  { %v306_v41 = vmax.f32 %v290_v33, 0.0  ;;  %v310_v42 = vmax.f32 %v294_v34, 0.0 }
  0xa9   :  { %v299_v29 = vmax.f32 %v283_v25, 0.0  ;;  %v303_v30 = vmax.f32 %v287_v26, 0.0 }
  0xab   :  { %v433_v31 = vpack.c.bf16 %v299_v29, %v298_v27  ;;  %v443_v32 = vpack.c.bf16 %v303_v30, %v302_v28 }
  0xad   :  { %434 = vst [vmem:[%s600_s3] sm:$0xff] %v433_v31   ;;  %v209_v35 = vpop.f32.mrf.mxu2  ;;  %v219_v36 = vpop.f32.mrf.mxu3 }
  0xae   :  { %471 = vst [vmem:[%s600_s3 + $0x10] sm:$0xff] %v443_v32   ;;  %v291_v37 = vadd.f32 %v501_v18, %v209_v35  ;;  %v295_v38 = vadd.f32 %v501_v18, %v219_v36  ;;  %v192_v39 = vpop.f32.mrf.mxu0  ;;  %v202_v40 = vpop.f32.mrf.mxu1 }
  0xaf   :  { %v284_v47 = vadd.f32 %v501_v18, %v192_v39  ;;  %v288_v48 = vadd.f32 %v501_v18, %v202_v40 }
  0xb0   :  { %v307_v43 = vmax.f32 %v291_v37, 0.0  ;;  %v311_v44 = vmax.f32 %v295_v38, 0.0 }
  0xb1   :  { %v300_v55 = vmax.f32 %v284_v47, 0.0  ;;  %v304_v56 = vmax.f32 %v288_v48, 0.0 }
  0xb2   :  { %v453_v45 = vpack.c.bf16 %v307_v43, %v306_v41  ;;  %v463_v46 = vpack.c.bf16 %v311_v44, %v310_v42 }
  0xb4   :  { %473 = vst [vmem:[%s600_s3 + $0x20] sm:$0xff] %v453_v45  }
  0xb5   :  { %475 = vst [vmem:[%s600_s3 + $0x30] sm:$0xff] %v463_v46   ;;  %v212_v49 = vpop.f32.mrf.mxu2  ;;  %v222_v50 = vpop.f32.mrf.mxu3 }
  0xb6   :  { %v194_v51 = vpop.f32.mrf.mxu0  ;;  %v204_v52 = vpop.f32.mrf.mxu1  ;;  %v292_v61 = vadd.f32 %v501_v18, %v212_v49  ;;  %v296_v62 = vadd.f32 %v501_v18, %v222_v50 }
  0xb7   :  { %v285_v53 = vadd.f32 %v501_v18, %v194_v51  ;;  %v289_v54 = vadd.f32 %v501_v18, %v204_v52 }
  0xb8   :  { %v308_v3 = vmax.f32 %v292_v61, 0.0  ;;  %v312_v4 = vmax.f32 %v296_v62, 0.0 }
  0xb9   :  { %v301_v57 = vmax.f32 %v285_v53, 0.0  ;;  %v305_v58 = vmax.f32 %v289_v54, 0.0 }
  0xbb   :  { %v438_v59 = vpack.c.bf16 %v301_v57, %v300_v55  ;;  %v448_v60 = vpack.c.bf16 %v305_v58, %v304_v56 }
  0xbd   :  { %470 = vst [vmem:[%s600_s3 + $0x8] sm:$0xff] %v438_v59   ;;  %v214_v63 = vpop.f32.mrf.mxu2  ;;  %v224_v0 = vpop.f32.mrf.mxu3 }
  0xbe   :  { %472 = vst [vmem:[%s600_s3 + $0x18] sm:$0xff] %v448_v60   ;;  %v293_v1 = vadd.f32 %v501_v18, %v214_v63  ;;  %v297_v2 = vadd.f32 %v501_v18, %v224_v0 }
  0xc0   :  { %v309_v5 = vmax.f32 %v293_v1, 0.0  ;;  %v313_v6 = vmax.f32 %v297_v2, 0.0 }
  0xc2   :  { %v458_v7 = vpack.c.bf16 %v309_v5, %v308_v3  ;;  %v468_v8 = vpack.c.bf16 %v313_v6, %v312_v4 }
  0xc4   :  { %474 = vst [vmem:[%s600_s3 + $0x28] sm:$0xff] %v458_v7  }
  0xc5   :  { %476 = vst [vmem:[%s600_s3 + $0x38] sm:$0xff] %v468_v8  }

// kernel: tsvae_forward.20
= control target key start
LH: loop header
LB: loop body
LE: loop exit
PB: predicated region body
PF: predicated region fallthrough
CT: control target
= control target key end

     0   :  { %s484_s1 = inlined_call_operand.vmem [shape: bf16[256,128], index: 1, kind: input, shape index: {}]   ;;  %s485_s0 = inlined_call_operand.vmem [shape: bf16[32,256], index: 0, kind: input, shape index: {}]   ;;  %s486_s2 = inlined_call_operand.vmem [shape: f32[1,128], index: 2, kind: input, shape index: {}]   ;;  %s487_s3 = inlined_call_operand.vmem [shape: bf16[32,128], index: 3, kind: output, shape index: {}]  }
   0x1   :  { %v346_v0 = vld [vmem:[%s484_s1 + $0x38] sm:$0xff]  ;;  %v345_v2 = vld [vmem:[%s484_s1 + $0x30] sm:$0xff]  ;;  %v344_v4 = vld [vmem:[%s484_s1 + $0x28] sm:$0xff] }
   0x2   :  { %v354_v1 = vld [vmem:[%s484_s1 + $0x78] sm:$0xff]  ;;  %178 = vmatpush.bf16.msra.mxu0 %v346_v0  ;;  %366 = vmatpush.bf16.msra.mxu2 %v346_v0  ;;  %v353_v3 = vld [vmem:[%s484_s1 + $0x70] sm:$0xff]  ;;  %v352_v5 = vld [vmem:[%s484_s1 + $0x68] sm:$0xff] }
   0x3   :  { %197 = vmatpush.bf16.msra.mxu1 %v354_v1  ;;  %374 = vmatpush.bf16.msra.mxu3 %v354_v1  ;;  %v343_v6 = vld [vmem:[%s484_s1 + $0x20] sm:$0xff]  ;;  %v342_v8 = vld [vmem:[%s484_s1 + $0x18] sm:$0xff]  ;;  %v341_v10 = vld [vmem:[%s484_s1 + $0x10] sm:$0xff] }
   0x4   :  { %v351_v7 = vld [vmem:[%s484_s1 + $0x60] sm:$0xff]  ;;  %v350_v9 = vld [vmem:[%s484_s1 + $0x58] sm:$0xff]  ;;  %v349_v11 = vld [vmem:[%s484_s1 + $0x50] sm:$0xff] }
   0x5   :  { %v340_v12 = vld [vmem:[%s484_s1 + $0x8] sm:$0xff]  ;;  %v339_v14 = vld [vmem:[%s484_s1] sm:$0xff]  ;;  %v265_v18 = vld [vmem:[%s485_s0 + $0x10] sm:$0xf] }
   0x6   :  { %179 = vmatpush.bf16.msra.mxu0 %v345_v2  ;;  %367 = vmatpush.bf16.msra.mxu2 %v345_v2  ;;  %v348_v13 = vld [vmem:[%s484_s1 + $0x48] sm:$0xff]  ;;  %v347_v15 = vld [vmem:[%s484_s1 + $0x40] sm:$0xff]  ;;  %v338_v19 = vld [vmem:[%s485_s0 + $0x14] sm:$0xf0] }
   0x7   :  { %198 = vmatpush.bf16.msra.mxu1 %v353_v3  ;;  %375 = vmatpush.bf16.msra.mxu3 %v353_v3  ;;  %v257_v16 = vld [vmem:[%s485_s0] sm:$0xf]  ;;  %v336_v17 = vld [vmem:[%s485_s0 + $0x4] sm:$0xf0]  ;;  %v335_v20 = vld [vmem:[%s485_s0 + $0x4] sm:$0xf]  ;;  %v266_v25 = vor.u32 %v338_v19, %v265_v18 }
   0x8   :  { %v259_v21 = vld [vmem:[%s485_s0 + $0x8] sm:$0xf0]  ;;  %v337_v22 = vld [vmem:[%s485_s0 + $0x14] sm:$0xf]  ;;  %v267_v23 = vld [vmem:[%s485_s0 + $0x18] sm:$0xf0]  ;;  %v258_v24 = vor.u32 %v336_v17, %v257_v16 }
   0x9   :  { %v262_v26 = vor.u32 %v335_v20, %v259_v21  ;;  %v270_v27 = vor.u32 %v337_v22, %v267_v23  ;;  %v382_v31 = vld [vmem:[%s486_s2] ss:$0 sm:$0xff] }
   0xa   :  { %180 = vmatpush.bf16.msra.mxu0 %v344_v4  ;;  %368 = vmatpush.bf16.msra.mxu2 %v344_v4 }
   0xb   :  { %199 = vmatpush.bf16.msra.mxu1 %v352_v5  ;;  %376 = vmatpush.bf16.msra.mxu3 %v352_v5 }
   0xe   :  { %181 = vmatpush.bf16.msra.mxu0 %v343_v6  ;;  %369 = vmatpush.bf16.msra.mxu2 %v343_v6 }
   0xf   :  { %200 = vmatpush.bf16.msra.mxu1 %v351_v7  ;;  %377 = vmatpush.bf16.msra.mxu3 %v351_v7 }
  0x12   :  { %182 = vmatpush.bf16.msra.mxu0 %v342_v8  ;;  %370 = vmatpush.bf16.msra.mxu2 %v342_v8 }
  0x13   :  { %201 = vmatpush.bf16.msra.mxu1 %v350_v9  ;;  %378 = vmatpush.bf16.msra.mxu3 %v350_v9 }
  0x16   :  { %183 = vmatpush.bf16.msra.mxu0 %v341_v10  ;;  %371 = vmatpush.bf16.msra.mxu2 %v341_v10 }
  0x17   :  { %202 = vmatpush.bf16.msra.mxu1 %v349_v11  ;;  %379 = vmatpush.bf16.msra.mxu3 %v349_v11 }
  0x1a   :  { %184 = vmatpush.bf16.msra.mxu0 %v340_v12  ;;  %372 = vmatpush.bf16.msra.mxu2 %v340_v12 }
  0x1b   :  { %203 = vmatpush.bf16.msra.mxu1 %v348_v13  ;;  %380 = vmatpush.bf16.msra.mxu3 %v348_v13 }
  0x1e   :  { %185 = vmatpush.bf16.msra.mxu0 %v339_v14  ;;  %373 = vmatpush.bf16.msra.mxu2 %v339_v14 }
  0x1f   :  { %204 = vmatpush.bf16.msra.mxu1 %v347_v15  ;;  %381 = vmatpush.bf16.msra.mxu3 %v347_v15 }
  0x21   :  { %186 = vmatmul.bf16.vlgmr.msra.gmra.mxu0 %v258_v24  ;;  %191 = vmatmul.bf16.vlgmr.msra.gmra.mxu2 %v266_v25 }
  0x22   :  { %205 = vmatmul.bf16.vlgmr.msra.gmra.mxu1 %v262_v26  ;;  %210 = vmatmul.bf16.vlgmr.msra.gmra.mxu3 %v270_v27 }
  0x9e   :  { %v187_v28 = vpop.f32.mrf.mxu0 }
  0x9f   :  { %v206_v29 = vpop.f32.mrf.mxu1 }
  0xa0   :  { %v207_v30 = vadd.f32 %v206_v29, %v187_v28 }
  0xa2   :  { %v235_v36 = vadd.f32 %v382_v31, %v207_v30 }
  0xa4   :  { %v192_v32 = vpop.f32.mrf.mxu2  ;;  %v239_v40 = vmax.f32 %v235_v36, 0.0 }
  0xa5   :  { %v211_v33 = vpop.f32.mrf.mxu3 }
  0xa6   :  { %v189_v34 = vpop.f32.mrf.mxu0  ;;  %v212_v38 = vadd.f32 %v211_v33, %v192_v32 }
  0xa7   :  { %v208_v35 = vpop.f32.mrf.mxu1 }
  0xa8   :  { %v209_v37 = vadd.f32 %v208_v35, %v189_v34  ;;  %v237_v44 = vadd.f32 %v382_v31, %v212_v38 }
  0xaa   :  { %v236_v39 = vadd.f32 %v382_v31, %v209_v37  ;;  %v241_v48 = vmax.f32 %v237_v44, 0.0 }
  0xac   :  { %v240_v41 = vmax.f32 %v236_v39, 0.0  ;;  %v194_v42 = vpop.f32.mrf.mxu2 }
  0xad   :  { %v213_v43 = vpop.f32.mrf.mxu3 }
  0xae   :  { %v358_v45 = vpack.c.bf16 %v240_v41, %v239_v40  ;;  %v214_v46 = vadd.f32 %v213_v43, %v194_v42 }
  0xb0   :  { %359 = vst [vmem:[%s487_s3] sm:$0xff] %v358_v45   ;;  %v238_v47 = vadd.f32 %v382_v31, %v214_v46 }
  0xb2   :  { %v242_v49 = vmax.f32 %v238_v47, 0.0 }
  0xb4   :  { %v363_v50 = vpack.c.bf16 %v242_v49, %v241_v48 }
  0xb6   :  { %365 = vst [vmem:[%s487_s3 + $0x8] sm:$0xff] %v363_v50  }

// kernel: tsvae_forward.21
= control target key start
LH: loop header
LB: loop body
LE: loop exit
PB: predicated region body
PF: predicated region fallthrough
CT: control target
= control target key end

     0   :  { %s657_s1 = inlined_call_operand.vmem [shape: bf16[384,128], index: 1, kind: input, shape index: {}]   ;;  %s658_s0 = inlined_call_operand.vmem [shape: bf16[32,384], index: 0, kind: input, shape index: {}]   ;;  %s659_s2 = inlined_call_operand.vmem [shape: f32[1,128], index: 2, kind: input, shape index: {}]   ;;  %s660_s3 = inlined_call_operand.vmem [shape: bf16[32,128], index: 3, kind: output, shape index: {}]  }
   0x1   :  { %v483_v0 = vld [vmem:[%s657_s1 + $0x38] sm:$0xff]  ;;  %v482_v3 = vld [vmem:[%s657_s1 + $0x30] sm:$0xff]  ;;  %v481_v6 = vld [vmem:[%s657_s1 + $0x28] sm:$0xff] }
   0x2   :  { %v491_v1 = vld [vmem:[%s657_s1 + $0x78] sm:$0xff]  ;;  %258 = vmatpush.bf16.msra.mxu0 %v483_v0  ;;  %v490_v4 = vld [vmem:[%s657_s1 + $0x70] sm:$0xff]  ;;  %511 = vmatpush.bf16.msra.mxu3 %v483_v0  ;;  %v489_v7 = vld [vmem:[%s657_s1 + $0x68] sm:$0xff] }
   0x3   :  { %v499_v2 = vld [vmem:[%s657_s1 + $0xb8] sm:$0xff]  ;;  %277 = vmatpush.bf16.msra.mxu1 %v491_v1  ;;  %v498_v5 = vld [vmem:[%s657_s1 + $0xb0] sm:$0xff]  ;;  %v497_v8 = vld [vmem:[%s657_s1 + $0xa8] sm:$0xff] }
   0x4   :  { %296 = vmatpush.bf16.msra.mxu2 %v499_v2  ;;  %v480_v9 = vld [vmem:[%s657_s1 + $0x20] sm:$0xff]  ;;  %v479_v12 = vld [vmem:[%s657_s1 + $0x18] sm:$0xff]  ;;  %v478_v15 = vld [vmem:[%s657_s1 + $0x10] sm:$0xff] }
   0x5   :  { %v488_v10 = vld [vmem:[%s657_s1 + $0x60] sm:$0xff]  ;;  %v487_v13 = vld [vmem:[%s657_s1 + $0x58] sm:$0xff]  ;;  %v486_v16 = vld [vmem:[%s657_s1 + $0x50] sm:$0xff] }
   0x6   :  { %259 = vmatpush.bf16.msra.mxu0 %v482_v3  ;;  %512 = vmatpush.bf16.msra.mxu3 %v482_v3  ;;  %v496_v11 = vld [vmem:[%s657_s1 + $0xa0] sm:$0xff]  ;;  %v495_v14 = vld [vmem:[%s657_s1 + $0x98] sm:$0xff]  ;;  %v494_v17 = vld [vmem:[%s657_s1 + $0x90] sm:$0xff] }
   0x7   :  { %278 = vmatpush.bf16.msra.mxu1 %v490_v4  ;;  %v477_v18 = vld [vmem:[%s657_s1 + $0x8] sm:$0xff]  ;;  %v476_v21 = vld [vmem:[%s657_s1] sm:$0xff]  ;;  %v354_v27 = vld [vmem:[%s658_s0 + $0xc] sm:$0xf0] }
   0x8   :  { %297 = vmatpush.bf16.msra.mxu2 %v498_v5  ;;  %v485_v19 = vld [vmem:[%s657_s1 + $0x48] sm:$0xff]  ;;  %v484_v22 = vld [vmem:[%s657_s1 + $0x40] sm:$0xff]  ;;  %v472_v29 = vld [vmem:[%s658_s0 + $0x10] sm:$0xf0] }
   0x9   :  { %v493_v20 = vld [vmem:[%s657_s1 + $0x88] sm:$0xff]  ;;  %v492_v23 = vld [vmem:[%s657_s1 + $0x80] sm:$0xff]  ;;  %v364_v30 = vld [vmem:[%s658_s0 + $0x18] sm:$0xf] }
   0xa   :  { %260 = vmatpush.bf16.msra.mxu0 %v481_v6  ;;  %513 = vmatpush.bf16.msra.mxu3 %v481_v6  ;;  %v352_v24 = vld [vmem:[%s658_s0] sm:$0xf]  ;;  %v471_v25 = vld [vmem:[%s658_s0 + $0x8] sm:$0xf0]  ;;  %v470_v26 = vld [vmem:[%s658_s0 + $0x4] sm:$0xf] }
   0xb   :  { %279 = vmatpush.bf16.msra.mxu1 %v489_v7  ;;  %v360_v28 = vld [vmem:[%s658_s0 + $0x8] sm:$0xf]  ;;  %v474_v31 = vld [vmem:[%s658_s0 + $0x20] sm:$0xf0]  ;;  %v353_v32 = vor.u32 %v471_v25, %v352_v24  ;;  %v357_v33 = vor.u32 %v470_v26, %v354_v27  ;;  %v473_v36 = vld [vmem:[%s658_s0 + $0x1c] sm:$0xf] }
   0xc   :  { %298 = vmatpush.bf16.msra.mxu2 %v497_v8  ;;  %v361_v34 = vor.u32 %v472_v29, %v360_v28  ;;  %v365_v35 = vor.u32 %v474_v31, %v364_v30  ;;  %v366_v37 = vld [vmem:[%s658_s0 + $0x24] sm:$0xf0]  ;;  %v372_v38 = vld [vmem:[%s658_s0 + $0x20] sm:$0xf]  ;;  %v475_v39 = vld [vmem:[%s658_s0 + $0x28] sm:$0xf0] }
   0xd   :  { %v369_v40 = vor.u32 %v473_v36, %v366_v37  ;;  %v373_v41 = vor.u32 %v475_v39, %v372_v38  ;;  %v519_v49 = vld [vmem:[%s659_s2] ss:$0 sm:$0xff] }
   0xe   :  { %261 = vmatpush.bf16.msra.mxu0 %v480_v9  ;;  %514 = vmatpush.bf16.msra.mxu3 %v480_v9 }
   0xf   :  { %280 = vmatpush.bf16.msra.mxu1 %v488_v10 }
  0x10   :  { %299 = vmatpush.bf16.msra.mxu2 %v496_v11 }
  0x12   :  { %262 = vmatpush.bf16.msra.mxu0 %v479_v12  ;;  %515 = vmatpush.bf16.msra.mxu3 %v479_v12 }
  0x13   :  { %281 = vmatpush.bf16.msra.mxu1 %v487_v13 }
  0x14   :  { %300 = vmatpush.bf16.msra.mxu2 %v495_v14 }
  0x16   :  { %263 = vmatpush.bf16.msra.mxu0 %v478_v15  ;;  %516 = vmatpush.bf16.msra.mxu3 %v478_v15 }
  0x17   :  { %282 = vmatpush.bf16.msra.mxu1 %v486_v16 }
  0x18   :  { %301 = vmatpush.bf16.msra.mxu2 %v494_v17 }
  0x1a   :  { %264 = vmatpush.bf16.msra.mxu0 %v477_v18  ;;  %517 = vmatpush.bf16.msra.mxu3 %v477_v18 }
  0x1b   :  { %283 = vmatpush.bf16.msra.mxu1 %v485_v19 }
  0x1c   :  { %302 = vmatpush.bf16.msra.mxu2 %v493_v20 }
  0x1e   :  { %265 = vmatpush.bf16.msra.mxu0 %v476_v21  ;;  %518 = vmatpush.bf16.msra.mxu3 %v476_v21 }
  0x1f   :  { %284 = vmatpush.bf16.msra.mxu1 %v484_v22 }
  0x20   :  { %303 = vmatpush.bf16.msra.mxu2 %v492_v23 }
  0x21   :  { %266 = vmatmul.bf16.vlgmr.msra.gmra.mxu0 %v353_v32  ;;  %271 = vmatmul.bf16.vlgmr.msra.gmra.mxu3 %v365_v35 }
  0x22   :  { %285 = vmatmul.bf16.vlgmr.msra.gmra.mxu1 %v357_v33 }
  0x23   :  { %304 = vmatmul.bf16.vlgmr.msra.gmra.mxu2 %v361_v34 }
  0x32   :  { %290 = vmatmul.bf16.gmra.mxu1 %v369_v40 }
  0x33   :  { %309 = vmatmul.bf16.gmra.mxu2 %v373_v41 }
  0x9e   :  { %v267_v43 = vpop.f32.mrf.mxu0 }
  0x9f   :  { %v286_v42 = vpop.f32.mrf.mxu1 }
  0xa0   :  { %v287_v46 = vadd.f32 %v286_v42, %v267_v43 }
  0xa4   :  { %v272_v56 = vpop.f32.mrf.mxu3 }
  0xa6   :  { %v305_v44 = vpop.f32.mrf.mxu2  ;;  %v269_v47 = vpop.f32.mrf.mxu0 }
  0xa7   :  { %v288_v45 = vpop.f32.mrf.mxu1  ;;  %v306_v48 = vadd.f32 %v305_v44, %v287_v46 }
  0xa8   :  { %v289_v50 = vadd.f32 %v288_v45, %v269_v47 }
  0xa9   :  { %v334_v54 = vadd.f32 %v519_v49, %v306_v48 }
  0xac   :  { %v274_v61 = vpop.f32.mrf.mxu3 }
  0xae   :  { %v307_v51 = vpop.f32.mrf.mxu2 }
  0xaf   :  { %v308_v52 = vadd.f32 %v307_v51, %v289_v50  ;;  %v291_v53 = vpop.f32.mrf.mxu1 }
  0xb0   :  { %v292_v59 = vadd.f32 %v291_v53, %v272_v56 }
  0xb1   :  { %v335_v55 = vadd.f32 %v519_v49, %v308_v52 }
  0xb3   :  { %v503_v57 = vpack.c.bf16 %v335_v55, %v334_v54 }
  0xb5   :  { %504 = vst [vmem:[%s660_s3] sm:$0xff] %v503_v57  }
  0xb6   :  { %v310_v58 = vpop.f32.mrf.mxu2 }
  0xb7   :  { %v293_v60 = vpop.f32.mrf.mxu1  ;;  %v311_v62 = vadd.f32 %v310_v58, %v292_v59 }
  0xb8   :  { %v294_v63 = vadd.f32 %v293_v60, %v274_v61 }
  0xb9   :  { %v336_v2 = vadd.f32 %v519_v49, %v311_v62 }
  0xbe   :  { %v312_v0 = vpop.f32.mrf.mxu2 }
  0xbf   :  { %v313_v1 = vadd.f32 %v312_v0, %v294_v63 }
  0xc1   :  { %v337_v3 = vadd.f32 %v519_v49, %v313_v1 }
  0xc3   :  { %v508_v4 = vpack.c.bf16 %v337_v3, %v336_v2 }
  0xc5   :  { %510 = vst [vmem:[%s660_s3 + $0x8] sm:$0xff] %v508_v4  }

// kernel: tsvae_forward.25
= control target key start
LH: loop header
LB: loop body
LE: loop exit
PB: predicated region body
PF: predicated region fallthrough
CT: control target
= control target key end

     0   :  { %s328_s1 = inlined_call_operand.vmem [shape: bf16[128,128], index: 1, kind: input, shape index: {}]   ;;  %s329_s2 = inlined_call_operand.vmem [shape: f32[1,128], index: 2, kind: input, shape index: {}]   ;;  %s330_s0 = inlined_call_operand.vmem [shape: bf16[32,128], index: 0, kind: input, shape index: {}]   ;;  %s331_s3 = inlined_call_operand.vmem [shape: bf16[32,128], index: 3, kind: input, shape index: {}]   ;;  %s332_s4 = inlined_call_operand.vmem [shape: bf16[32,128], index: 4, kind: output, shape index: {}]  }
   0x1   :  { %v228_v0 = vld [vmem:[%s328_s1 + $0x38] sm:$0xff]  ;;  %v227_v1 = vld [vmem:[%s328_s1 + $0x30] sm:$0xff]  ;;  %v226_v2 = vld [vmem:[%s328_s1 + $0x28] sm:$0xff] }
   0x2   :  { %109 = vmatpush.bf16.msra.mxu0 %v228_v0  ;;  %249 = vmatpush.bf16.msra.mxu1 %v228_v0  ;;  %v225_v3 = vld [vmem:[%s328_s1 + $0x20] sm:$0xff]  ;;  %v224_v4 = vld [vmem:[%s328_s1 + $0x18] sm:$0xff]  ;;  %v223_v5 = vld [vmem:[%s328_s1 + $0x10] sm:$0xff] }
   0x3   :  { %v222_v6 = vld [vmem:[%s328_s1 + $0x8] sm:$0xff]  ;;  %v221_v7 = vld [vmem:[%s328_s1] sm:$0xff] }
   0x4   :  { %v219_v8 = vld [vmem:[%s330_s0] sm:$0xff]  ;;  %v220_v9 = vld [vmem:[%s330_s0 + $0x8] sm:$0xff] }
   0x5   :  { %v257_v12 = vld [vmem:[%s329_s2] ss:$0 sm:$0xff]  ;;  %v247_v14 = vld [vmem:[%s331_s3 + $0x8] sm:$0xff]  }
   0x6   :  { %110 = vmatpush.bf16.msra.mxu0 %v227_v1  ;;  %250 = vmatpush.bf16.msra.mxu1 %v227_v1  ;;  %v230_v13 = vld [vmem:[%s331_s3] sm:$0xff]   ;;  %v235_v18 = vunpack.c.l.bf16 %v247_v14  ;;  %v236_v20 = vunpack.c.h.bf16 %v247_v14 }
   0x7   :  { %v231_v16 = vunpack.c.l.bf16 %v230_v13  ;;  %v232_v19 = vunpack.c.h.bf16 %v230_v13 }
   0xa   :  { %111 = vmatpush.bf16.msra.mxu0 %v226_v2  ;;  %251 = vmatpush.bf16.msra.mxu1 %v226_v2 }
   0xe   :  { %112 = vmatpush.bf16.msra.mxu0 %v225_v3  ;;  %252 = vmatpush.bf16.msra.mxu1 %v225_v3 }
  0x12   :  { %113 = vmatpush.bf16.msra.mxu0 %v224_v4  ;;  %253 = vmatpush.bf16.msra.mxu1 %v224_v4 }
  0x16   :  { %114 = vmatpush.bf16.msra.mxu0 %v223_v5  ;;  %254 = vmatpush.bf16.msra.mxu1 %v223_v5 }
  0x1a   :  { %115 = vmatpush.bf16.msra.mxu0 %v222_v6  ;;  %255 = vmatpush.bf16.msra.mxu1 %v222_v6 }
  0x1e   :  { %116 = vmatpush.bf16.msra.mxu0 %v221_v7  ;;  %256 = vmatpush.bf16.msra.mxu1 %v221_v7 }
  0x21   :  { %117 = vmatmul.bf16.vlgmr.msra.gmra.mxu0 %v219_v8  ;;  %122 = vmatmul.bf16.vlgmr.msra.gmra.mxu1 %v220_v9 }
  0x9e   :  { %v118_v10 = vpop.f32.mrf.mxu0  ;;  %v123_v11 = vpop.f32.mrf.mxu1 }
  0x9f   :  { %v147_v15 = vadd.f32 %v257_v12, %v118_v10  ;;  %v149_v17 = vadd.f32 %v257_v12, %v123_v11 }
  0xa1   :  { %v159_v23 = vadd.f32 %v231_v16, %v147_v15  ;;  %v161_v24 = vadd.f32 %v235_v18, %v149_v17 }
  0xa3   :  { %v163_v29 = vmax.f32 %v159_v23, 0.0  ;;  %v165_v30 = vmax.f32 %v161_v24, 0.0 }
  0xa6   :  { %v120_v21 = vpop.f32.mrf.mxu0  ;;  %v125_v22 = vpop.f32.mrf.mxu1 }
  0xa7   :  { %v148_v25 = vadd.f32 %v257_v12, %v120_v21  ;;  %v150_v26 = vadd.f32 %v257_v12, %v125_v22 }
  0xa9   :  { %v160_v27 = vadd.f32 %v232_v19, %v148_v25  ;;  %v162_v28 = vadd.f32 %v236_v20, %v150_v26 }
  0xab   :  { %v164_v31 = vmax.f32 %v160_v27, 0.0  ;;  %v166_v32 = vmax.f32 %v162_v28, 0.0 }
  0xad   :  { %v240_v33 = vpack.c.bf16 %v164_v31, %v163_v29  ;;  %v245_v34 = vpack.c.bf16 %v166_v32, %v165_v30 }
  0xaf   :  { %241 = vst [vmem:[%s332_s4] sm:$0xff] %v240_v33  }
  0xb0   :  { %248 = vst [vmem:[%s332_s4 + $0x8] sm:$0xff] %v245_v34  }

// kernel: tsvae_forward.22
= control target key start
LH: loop header
LB: loop body
LE: loop exit
PB: predicated region body
PF: predicated region fallthrough
CT: control target
= control target key end

     0   :  { %s617_s1 = inlined_call_operand.vmem [shape: bf16[384,128], index: 1, kind: input, shape index: {}]   ;;  %s618_s0 = inlined_call_operand.vmem [shape: bf16[32,384], index: 0, kind: input, shape index: {}]   ;;  %s619_s2 = inlined_call_operand.vmem [shape: f32[1,128], index: 2, kind: input, shape index: {}]   ;;  %s620_s3 = inlined_call_operand.vmem [shape: bf16[32,128], index: 3, kind: output, shape index: {}]  }
   0x1   :  { %v455_v0 = vld [vmem:[%s617_s1 + $0x38] sm:$0xff]  ;;  %v454_v3 = vld [vmem:[%s617_s1 + $0x30] sm:$0xff]  ;;  %v453_v6 = vld [vmem:[%s617_s1 + $0x28] sm:$0xff] }
   0x2   :  { %v463_v1 = vld [vmem:[%s617_s1 + $0x78] sm:$0xff]  ;;  %256 = vmatpush.bf16.msra.mxu0 %v455_v0  ;;  %v462_v4 = vld [vmem:[%s617_s1 + $0x70] sm:$0xff]  ;;  %483 = vmatpush.bf16.msra.mxu3 %v455_v0  ;;  %v461_v7 = vld [vmem:[%s617_s1 + $0x68] sm:$0xff] }
   0x3   :  { %v471_v2 = vld [vmem:[%s617_s1 + $0xb8] sm:$0xff]  ;;  %275 = vmatpush.bf16.msra.mxu1 %v463_v1  ;;  %v470_v5 = vld [vmem:[%s617_s1 + $0xb0] sm:$0xff]  ;;  %v469_v8 = vld [vmem:[%s617_s1 + $0xa8] sm:$0xff] }
   0x4   :  { %294 = vmatpush.bf16.msra.mxu2 %v471_v2  ;;  %v452_v9 = vld [vmem:[%s617_s1 + $0x20] sm:$0xff]  ;;  %v451_v12 = vld [vmem:[%s617_s1 + $0x18] sm:$0xff]  ;;  %v450_v15 = vld [vmem:[%s617_s1 + $0x10] sm:$0xff] }
   0x5   :  { %v460_v10 = vld [vmem:[%s617_s1 + $0x60] sm:$0xff]  ;;  %v459_v13 = vld [vmem:[%s617_s1 + $0x58] sm:$0xff]  ;;  %v458_v16 = vld [vmem:[%s617_s1 + $0x50] sm:$0xff] }
   0x6   :  { %257 = vmatpush.bf16.msra.mxu0 %v454_v3  ;;  %484 = vmatpush.bf16.msra.mxu3 %v454_v3  ;;  %v468_v11 = vld [vmem:[%s617_s1 + $0xa0] sm:$0xff]  ;;  %v467_v14 = vld [vmem:[%s617_s1 + $0x98] sm:$0xff]  ;;  %v466_v17 = vld [vmem:[%s617_s1 + $0x90] sm:$0xff] }
   0x7   :  { %276 = vmatpush.bf16.msra.mxu1 %v462_v4  ;;  %v22_v18 = vld [vmem:[%s618_s0] sm:$0xff]  ;;  %v24_v19 = vld [vmem:[%s618_s0 + $0xc] sm:$0xff]  ;;  %v23_v20 = vld [vmem:[%s618_s0 + $0x8] sm:$0xf] }
   0x8   :  { %295 = vmatpush.bf16.msra.mxu2 %v470_v5  ;;  %v25_v21 = vld [vmem:[%s618_s0 + $0x14] sm:$0xf]  ;;  %v26_v22 = vld [vmem:[%s618_s0 + $0x18] sm:$0xff]  ;;  %v28_v23 = vld [vmem:[%s618_s0 + $0x24] sm:$0xff]  ;;  %v30_v24 = vunpack.c.l.bf16 %v22_v18  ;;  %v33_v25 = vunpack.c.l.bf16 %v24_v19  ;;  %v31_v26 = vunpack.c.h.bf16 %v22_v18  ;;  %v34_v27 = vunpack.c.h.bf16 %v24_v19 }
   0x9   :  { %v449_v28 = vld [vmem:[%s617_s1 + $0x8] sm:$0xff]  ;;  %v32_v30 = vunpack.c.l.bf16 %v23_v20  ;;  %v35_v31 = vunpack.c.l.bf16 %v25_v21  ;;  %v36_v32 = vunpack.c.l.bf16 %v26_v22  ;;  %v39_v33 = vunpack.c.l.bf16 %v28_v23  ;;  %v448_v39 = vld [vmem:[%s617_s1] sm:$0xff] }
   0xa   :  { %258 = vmatpush.bf16.msra.mxu0 %v453_v6  ;;  %485 = vmatpush.bf16.msra.mxu3 %v453_v6  ;;  %v457_v29 = vld [vmem:[%s617_s1 + $0x48] sm:$0xff]  ;;  %v42_v35 = vmax.f32 %v30_v24, 0.0  ;;  %v45_v36 = vmax.f32 %v33_v25, 0.0  ;;  %v43_v37 = vmax.f32 %v31_v26, 0.0  ;;  %v46_v38 = vmax.f32 %v34_v27, 0.0  ;;  %v456_v40 = vld [vmem:[%s617_s1 + $0x40] sm:$0xff] }
   0xb   :  { %277 = vmatpush.bf16.msra.mxu1 %v461_v7  ;;  %v465_v34 = vld [vmem:[%s617_s1 + $0x88] sm:$0xff]  ;;  %v44_v41 = vmax.f32 %v32_v30, 0.0  ;;  %v47_v42 = vmax.f32 %v35_v31, 0.0  ;;  %v48_v43 = vmax.f32 %v36_v32, 0.0  ;;  %v51_v44 = vmax.f32 %v39_v33, 0.0  ;;  %v464_v45 = vld [vmem:[%s617_s1 + $0x80] sm:$0xff] }
   0xc   :  { %296 = vmatpush.bf16.msra.mxu2 %v469_v8  ;;  %v54_v46 = vpack.c.bf16 %v45_v36, %v42_v35  ;;  %v55_v47 = vpack.c.bf16 %v46_v38, %v43_v37  ;;  %v27_v50 = vld [vmem:[%s618_s0 + $0x20] sm:$0xf]  ;;  %v29_v51 = vld [vmem:[%s618_s0 + $0x2c] sm:$0xf]  ;;  %v37_v52 = vunpack.c.h.bf16 %v26_v22  ;;  %v40_v53 = vunpack.c.h.bf16 %v28_v23 }
   0xd   :  { %v56_v48 = vpack.c.bf16 %v47_v42, %v44_v41  ;;  %v57_v49 = vpack.c.bf16 %v51_v44, %v48_v43  ;;  %v38_v54 = vunpack.c.l.bf16 %v27_v50  ;;  %v41_v55 = vunpack.c.l.bf16 %v29_v51  ;;  %v491_v5 = vld [vmem:[%s619_s2] ss:$0 sm:$0xff] }
   0xe   :  { %259 = vmatpush.bf16.msra.mxu0 %v452_v9  ;;  %486 = vmatpush.bf16.msra.mxu3 %v452_v9  ;;  %v49_v56 = vmax.f32 %v37_v52, 0.0  ;;  %v52_v57 = vmax.f32 %v40_v53, 0.0 }
   0xf   :  { %278 = vmatpush.bf16.msra.mxu1 %v460_v10  ;;  %v50_v58 = vmax.f32 %v38_v54, 0.0  ;;  %v53_v59 = vmax.f32 %v41_v55, 0.0 }
  0x10   :  { %297 = vmatpush.bf16.msra.mxu2 %v468_v11  ;;  %v58_v60 = vpack.c.bf16 %v52_v57, %v49_v56 }
  0x11   :  { %v59_v61 = vpack.c.bf16 %v53_v59, %v50_v58 }
  0x12   :  { %260 = vmatpush.bf16.msra.mxu0 %v451_v12  ;;  %487 = vmatpush.bf16.msra.mxu3 %v451_v12 }
  0x13   :  { %279 = vmatpush.bf16.msra.mxu1 %v459_v13 }
  0x14   :  { %298 = vmatpush.bf16.msra.mxu2 %v467_v14 }
  0x16   :  { %261 = vmatpush.bf16.msra.mxu0 %v450_v15  ;;  %488 = vmatpush.bf16.msra.mxu3 %v450_v15 }
  0x17   :  { %280 = vmatpush.bf16.msra.mxu1 %v458_v16 }
  0x18   :  { %299 = vmatpush.bf16.msra.mxu2 %v466_v17 }
  0x1a   :  { %262 = vmatpush.bf16.msra.mxu0 %v449_v28  ;;  %489 = vmatpush.bf16.msra.mxu3 %v449_v28 }
  0x1b   :  { %281 = vmatpush.bf16.msra.mxu1 %v457_v29 }
  0x1c   :  { %300 = vmatpush.bf16.msra.mxu2 %v465_v34 }
  0x1e   :  { %263 = vmatpush.bf16.msra.mxu0 %v448_v39  ;;  %490 = vmatpush.bf16.msra.mxu3 %v448_v39 }
  0x1f   :  { %282 = vmatpush.bf16.msra.mxu1 %v456_v40 }
  0x20   :  { %301 = vmatpush.bf16.msra.mxu2 %v464_v45 }
  0x21   :  { %264 = vmatmul.bf16.vlgmr.msra.gmra.mxu0 %v54_v46  ;;  %269 = vmatmul.bf16.vlgmr.msra.gmra.mxu3 %v57_v49 }
  0x22   :  { %283 = vmatmul.bf16.vlgmr.msra.gmra.mxu1 %v55_v47 }
  0x23   :  { %302 = vmatmul.bf16.vlgmr.msra.gmra.mxu2 %v56_v48 }
  0x32   :  { %288 = vmatmul.bf16.gmra.mxu1 %v58_v60 }
  0x33   :  { %307 = vmatmul.bf16.gmra.mxu2 %v59_v61 }
  0x9e   :  { %v265_v63 = vpop.f32.mrf.mxu0 }
  0x9f   :  { %v284_v62 = vpop.f32.mrf.mxu1 }
  0xa0   :  { %v285_v1 = vadd.f32 %v284_v62, %v265_v63 }
  0xa4   :  { %v270_v12 = vpop.f32.mrf.mxu3 }
  0xa6   :  { %v303_v0 = vpop.f32.mrf.mxu2  ;;  %v267_v3 = vpop.f32.mrf.mxu0 }
  0xa7   :  { %v286_v2 = vpop.f32.mrf.mxu1  ;;  %v304_v4 = vadd.f32 %v303_v0, %v285_v1 }
  0xa8   :  { %v287_v6 = vadd.f32 %v286_v2, %v267_v3 }
  0xa9   :  { %v332_v8 = vadd.f32 %v491_v5, %v304_v4 }
  0xab   :  { %v336_v13 = vmax.f32 %v332_v8, 0.0 }
  0xac   :  { %v272_v20 = vpop.f32.mrf.mxu3 }
  0xae   :  { %v305_v7 = vpop.f32.mrf.mxu2 }
  0xaf   :  { %v306_v9 = vadd.f32 %v305_v7, %v287_v6  ;;  %v289_v10 = vpop.f32.mrf.mxu1 }
  0xb0   :  { %v290_v17 = vadd.f32 %v289_v10, %v270_v12 }
  0xb1   :  { %v333_v11 = vadd.f32 %v491_v5, %v306_v9 }
  0xb3   :  { %v337_v14 = vmax.f32 %v333_v11, 0.0 }
  0xb5   :  { %v475_v15 = vpack.c.bf16 %v337_v14, %v336_v13 }
  0xb6   :  { %v308_v16 = vpop.f32.mrf.mxu2 }
  0xb7   :  { %476 = vst [vmem:[%s620_s3] sm:$0xff] %v475_v15   ;;  %v291_v18 = vpop.f32.mrf.mxu1  ;;  %v309_v19 = vadd.f32 %v308_v16, %v290_v17 }
  0xb8   :  { %v292_v21 = vadd.f32 %v291_v18, %v272_v20 }
  0xb9   :  { %v334_v23 = vadd.f32 %v491_v5, %v309_v19 }
  0xbb   :  { %v338_v26 = vmax.f32 %v334_v23, 0.0 }
  0xbe   :  { %v310_v22 = vpop.f32.mrf.mxu2 }
  0xbf   :  { %v311_v24 = vadd.f32 %v310_v22, %v292_v21 }
  0xc1   :  { %v335_v25 = vadd.f32 %v491_v5, %v311_v24 }
  0xc3   :  { %v339_v27 = vmax.f32 %v335_v25, 0.0 }
  0xc5   :  { %v480_v28 = vpack.c.bf16 %v339_v27, %v338_v26 }
  0xc7   :  { %482 = vst [vmem:[%s620_s3 + $0x8] sm:$0xff] %v480_v28  }

// kernel: tsvae_forward.23
= control target key start
LH: loop header
LB: loop body
LE: loop exit
PB: predicated region body
PF: predicated region fallthrough
CT: control target
= control target key end

     0   :  { %s324_s1 = inlined_call_operand.vmem [shape: bf16[128,128], index: 1, kind: input, shape index: {}]   ;;  %s325_s2 = inlined_call_operand.vmem [shape: f32[1,128], index: 2, kind: input, shape index: {}]   ;;  %s326_s0 = inlined_call_operand.vmem [shape: bf16[32,128], index: 0, kind: input, shape index: {}]   ;;  %s327_s3 = inlined_call_operand.vmem [shape: bf16[32,128], index: 3, kind: input, shape index: {}]   ;;  %s328_s4 = inlined_call_operand.vmem [shape: bf16[32,128], index: 4, kind: output, shape index: {}]  }
   0x1   :  { %v224_v0 = vld [vmem:[%s324_s1 + $0x38] sm:$0xff]  ;;  %v223_v1 = vld [vmem:[%s324_s1 + $0x30] sm:$0xff]  ;;  %v222_v2 = vld [vmem:[%s324_s1 + $0x28] sm:$0xff] }
   0x2   :  { %109 = vmatpush.bf16.msra.mxu0 %v224_v0  ;;  %245 = vmatpush.bf16.msra.mxu1 %v224_v0  ;;  %v221_v3 = vld [vmem:[%s324_s1 + $0x20] sm:$0xff]  ;;  %v220_v4 = vld [vmem:[%s324_s1 + $0x18] sm:$0xff]  ;;  %v219_v5 = vld [vmem:[%s324_s1 + $0x10] sm:$0xff] }
   0x3   :  { %v218_v6 = vld [vmem:[%s324_s1 + $0x8] sm:$0xff]  ;;  %v217_v7 = vld [vmem:[%s324_s1] sm:$0xff] }
   0x4   :  { %v215_v8 = vld [vmem:[%s326_s0] sm:$0xff]  ;;  %v216_v9 = vld [vmem:[%s326_s0 + $0x8] sm:$0xff] }
   0x5   :  { %v253_v12 = vld [vmem:[%s325_s2] ss:$0 sm:$0xff]  ;;  %v243_v14 = vld [vmem:[%s327_s3 + $0x8] sm:$0xff]  }
   0x6   :  { %110 = vmatpush.bf16.msra.mxu0 %v223_v1  ;;  %246 = vmatpush.bf16.msra.mxu1 %v223_v1  ;;  %v226_v13 = vld [vmem:[%s327_s3] sm:$0xff]   ;;  %v231_v16 = vunpack.c.l.bf16 %v243_v14  ;;  %v232_v20 = vunpack.c.h.bf16 %v243_v14 }
   0x7   :  { %v227_v15 = vunpack.c.l.bf16 %v226_v13  ;;  %v228_v19 = vunpack.c.h.bf16 %v226_v13 }
   0xa   :  { %111 = vmatpush.bf16.msra.mxu0 %v222_v2  ;;  %247 = vmatpush.bf16.msra.mxu1 %v222_v2 }
   0xe   :  { %112 = vmatpush.bf16.msra.mxu0 %v221_v3  ;;  %248 = vmatpush.bf16.msra.mxu1 %v221_v3 }
  0x12   :  { %113 = vmatpush.bf16.msra.mxu0 %v220_v4  ;;  %249 = vmatpush.bf16.msra.mxu1 %v220_v4 }
  0x16   :  { %114 = vmatpush.bf16.msra.mxu0 %v219_v5  ;;  %250 = vmatpush.bf16.msra.mxu1 %v219_v5 }
  0x1a   :  { %115 = vmatpush.bf16.msra.mxu0 %v218_v6  ;;  %251 = vmatpush.bf16.msra.mxu1 %v218_v6 }
  0x1e   :  { %116 = vmatpush.bf16.msra.mxu0 %v217_v7  ;;  %252 = vmatpush.bf16.msra.mxu1 %v217_v7 }
  0x21   :  { %117 = vmatmul.bf16.vlgmr.msra.gmra.mxu0 %v215_v8  ;;  %122 = vmatmul.bf16.vlgmr.msra.gmra.mxu1 %v216_v9 }
  0x9e   :  { %v118_v10 = vpop.f32.mrf.mxu0  ;;  %v123_v11 = vpop.f32.mrf.mxu1 }
  0x9f   :  { %v147_v17 = vadd.f32 %v253_v12, %v118_v10  ;;  %v149_v18 = vadd.f32 %v253_v12, %v123_v11 }
  0xa1   :  { %v159_v25 = vadd.f32 %v227_v15, %v147_v17  ;;  %v161_v26 = vadd.f32 %v231_v16, %v149_v18 }
  0xa6   :  { %v120_v21 = vpop.f32.mrf.mxu0  ;;  %v125_v22 = vpop.f32.mrf.mxu1 }
  0xa7   :  { %v148_v23 = vadd.f32 %v253_v12, %v120_v21  ;;  %v150_v24 = vadd.f32 %v253_v12, %v125_v22 }
  0xa9   :  { %v160_v27 = vadd.f32 %v228_v19, %v148_v23  ;;  %v162_v28 = vadd.f32 %v232_v20, %v150_v24 }
  0xab   :  { %v236_v29 = vpack.c.bf16 %v160_v27, %v159_v25  ;;  %v241_v30 = vpack.c.bf16 %v162_v28, %v161_v26 }
  0xad   :  { %237 = vst [vmem:[%s328_s4] sm:$0xff] %v236_v29  }
  0xae   :  { %244 = vst [vmem:[%s328_s4 + $0x8] sm:$0xff] %v241_v30  }

// kernel: tsvae_forward.26
= control target key start
LH: loop header
LB: loop body
LE: loop exit
PB: predicated region body
PF: predicated region fallthrough
CT: control target
= control target key end

     0   :  { %s209_s1 = inlined_call_operand.vmem [shape: bf16[128,128], index: 1, kind: input, shape index: {}]   ;;  %s210_s2 = inlined_call_operand.vmem [shape: f32[1,128], index: 2, kind: input, shape index: {}]   ;;  %s211_s0 = inlined_call_operand.vmem [shape: bf16[8,128], index: 0, kind: input, shape index: {}]   ;;  %s212_s3 = inlined_call_operand.vmem [shape: bf16[8,128], index: 3, kind: output, shape index: {}]  }
   0x1   :  { %v154_v0 = vld [vmem:[%s209_s1 + $0x38] sm:$0xff]  ;;  %v153_v1 = vld [vmem:[%s209_s1 + $0x30] sm:$0xff]  ;;  %v152_v2 = vld [vmem:[%s209_s1 + $0x28] sm:$0xff] }
   0x2   :  { %85 = vmatpush.bf16.msra.mxu0 %v154_v0  ;;  %v151_v3 = vld [vmem:[%s209_s1 + $0x20] sm:$0xff]  ;;  %v150_v4 = vld [vmem:[%s209_s1 + $0x18] sm:$0xff]  ;;  %v149_v5 = vld [vmem:[%s209_s1 + $0x10] sm:$0xff] }
   0x3   :  { %v148_v6 = vld [vmem:[%s209_s1 + $0x8] sm:$0xff]  ;;  %v147_v7 = vld [vmem:[%s209_s1] sm:$0xff] }
   0x4   :  { %v19_v8 = vld [vmem:[%s211_s0] sm:$0xf] }
   0x5   :  { %v155_v9 = vld [vmem:[%s210_s2] ss:$0 sm:$0xff] }
   0x6   :  { %86 = vmatpush.bf16.msra.mxu0 %v153_v1 }
   0xa   :  { %87 = vmatpush.bf16.msra.mxu0 %v152_v2 }
   0xe   :  { %88 = vmatpush.bf16.msra.mxu0 %v151_v3 }
  0x12   :  { %89 = vmatpush.bf16.msra.mxu0 %v150_v4 }
  0x16   :  { %90 = vmatpush.bf16.msra.mxu0 %v149_v5 }
  0x1a   :  { %91 = vmatpush.bf16.msra.mxu0 %v148_v6 }
  0x1e   :  { %92 = vmatpush.bf16.msra.mxu0 %v147_v7 }
  0x21   :  { %93 = vmatmul.bf16.vlgmr.msra.gmra.mxu0 %v19_v8 }
  0x9e   :  { %v94_v10 = vpop.f32.mrf.mxu0 }
  0x9f   :  { %v108_v11 = vadd.f32 %v155_v9, %v94_v10 }
  0xa1   :  { %v109_v12 = vpack.c.bf16 %v108_v11, %v108_v11 }
  0xa3   :  { %110 = vst [vmem:[%s212_s3] sm:$0xf] %v109_v12 }
  0xa6   :  { %v96_v13 = vpop.f32.mrf.mxu0 }

// kernel: tsvae_forward.27
= control target key start
LH: loop header
LB: loop body
LE: loop exit
PB: predicated region body
PF: predicated region fallthrough
CT: control target
= control target key end

     0   :  { %s864_s21 = smov 0   ;;  %s980_s0 = inlined_call_operand.vmem [shape: bf16[2,16,32], index: 0, kind: input, shape index: {}]   ;;  %s981_s1 = inlined_call_operand.vmem [shape: f32[2,1,32], index: 1, kind: input, shape index: {}]   ;;  %s982_s2 = inlined_call_operand.vmem [shape: f32[2,1,32], index: 2, kind: input, shape index: {}]   ;;  %s983_s3 = inlined_call_operand.vmem [shape: f32[2,1,32], index: 3, kind: input, shape index: {}]   ;;  %s984_s4 = inlined_call_operand.vmem [shape: f32[32,32], index: 4, kind: input, shape index: {}]   ;;  %s985_s5 = inlined_call_operand.vmem [shape: f32[1,32], index: 5, kind: input, shape index: {}]   ;;  %s986_s6 = inlined_call_operand.vmem [shape: f32[32,32], index: 6, kind: input, shape index: {}]   ;;  %s987_s7 = inlined_call_operand.vmem [shape: f32[1,32], index: 7, kind: input, shape index: {}]   ;;  %s988_s8 = inlined_call_operand.vmem [shape: f32[32,32], index: 8, kind: input, shape index: {}]   ;;  %s989_s9 = inlined_call_operand.vmem [shape: f32[1,32], index: 9, kind: input, shape index: {}]   ;;  %s990_s10 = inlined_call_operand.vmem [shape: f32[32,32], index: 10, kind: input, shape index: {}]   ;;  %s991_s11 = inlined_call_operand.vmem [shape: f32[1,32], index: 11, kind: input, shape index: {}]   ;;  %s992_s12 = inlined_call_operand.vmem [shape: bf16[2,16,32], index: 12, kind: output, shape index: {}]  }
   0x1 LB: > { %s745_s22 = sadd.s32 4294967295, %s797_s21   ;;  %p749_p0 = scmp.ge.s32.totalorder %s797_s21, 1  ;;  %s797_s21 = sphi %s864_s21, %s22_s21  }
   0x2   : > { %p386_p1 = scmp.lt.s32.totalorder %s797_s21, 3 }
   0x4   : > { %p387_p2 = pnand %p749_p0, %p386_p1 }
   0x5   : > { %p437_p3 = scmp.lt.s32.totalorder (!%p387_p2), %s745_s22, 1 }
   0x6   : > { %390 = sbr.rel (%p387_p2) target bundleno = 567 (0x237), region = 68 }
   0xb   : > { %v514_v0 = vld [vmem:[%s986_s6 + $0x18] sm:$0xff]  ;;  %v513_v1 = vld [vmem:[%s986_s6 + $0x10] sm:$0xff]  ;;  %v512_v4 = vld [vmem:[%s986_s6 + $0x8] sm:$0xff]  ;;  %s994_s22 = smov (!%p437_p3, %s745_s22), 1  ;;  %vm480_vm0 = vcmask 261120   ;;  %vm592_vm1 = vcmask 1040384  }
   0xc   : > { %531 = vmatpush.msra.mxu2 %v514_v0  ;;  %v475_v2 = vld [vmem:[%s984_s4 + $0x18] sm:$0xff]  ;;  %v474_v3 = vld [vmem:[%s984_s4 + $0x10] sm:$0xff]  ;;  %v473_v5 = vld [vmem:[%s984_s4 + $0x8] sm:$0xff]  ;;  %s450_s23 = scalar_lea.vmem %s983_s3, %s994_s22  ;;  %s765_s24 = sshll.u32 %s994_s22, 3  ;;  %vm585_vm2 = vcmask 7168   ;;  %vm660_vm3 = vcmask 257024  }
   0xd   : > { %499 = vmatpush.msra.mxu0 %v475_v2  ;;  %v511_v6 = vld [vmem:[%s986_s6] sm:$0xff]  ;;  %s441_s29 = scalar_lea.vmem %s980_s0, %s765_s24  ;;  %s444_s14 = scalar_lea.vmem %s981_s1, %s994_s22  ;;  %v542_v18 = vld [vmem:[%s988_s8 + $0x18] sm:$0xff]  ;;  %v541_v19 = vld [vmem:[%s988_s8 + $0x10] sm:$0xff] }
   0xe   : > { %532 = vmatpush.msra.mxu2 %v513_v1  ;;  %v510_v7 = vld [vmem:[%s450_s23] sm:$0x1]  ;;  %s447_s17 = scalar_lea.vmem %s982_s2, %s994_s22  ;;  %v540_v20 = vld [vmem:[%s988_s8 + $0x8] sm:$0xff]  ;;  %v622_v38 = vld [vmem:[%s990_s10 + $0x18] sm:$0xff] }
   0xf   : > { %500 = vmatpush.msra.mxu0 %v474_v3  ;;  %v472_v8 = vld [vmem:[%s984_s4] sm:$0xff]  ;;  %v621_v39 = vld [vmem:[%s990_s10 + $0x10] sm:$0xff]  ;;  %645 = vmatpush.msra.mxu1 %v622_v38  ;;  %v620_v40 = vld [vmem:[%s990_s10 + $0x8] sm:$0xff] }
  0x10   : > { %533 = vmatpush.msra.mxu2 %v512_v4  ;;  %v916_v9 = vld [vmem:[%s441_s29] sm:$0xff]  }
  0x11   : > { %501 = vmatpush.msra.mxu0 %v473_v5  ;;  %v779_v10 = vld [vmem:[%s444_s14] ss:$0 sm:$0xff]  ;;  %v769_v11 = vunpack.c.l.bf16 %v916_v9  ;;  %v770_v14 = vunpack.c.h.bf16 %v916_v9  ;;  %646 = vmatpush.msra.mxu1 %v621_v39  ;;  %s455_s14 = scalar_lea.vmem %s992_s12, %s765_s24 }
  0x12   : > { %534 = vmatpush.msra.mxu2 %v511_v6  ;;  %v780_v12 = vld [vmem:[%s447_s17] ss:$0 sm:$0xff] }
  0x13   : > { %756 = vmatmul.msk.f32.vlgmr.msra.gmra.mxu2 %vm480_vm0, %v510_v7  ;;  %502 = vmatpush.msra.mxu0 %v472_v8  ;;  %v464_v13 = vsub.f32 %v769_v11, %v779_v10  ;;  %v465_v16 = vsub.f32 %v770_v14, %v779_v10  ;;  %v539_v21 = vld [vmem:[%s988_s8] sm:$0xff] }
  0x14   : > { %556 = vmatpush.msrb.mxu2 %v542_v18  ;;  %v781_v22 = vld [vmem:[%s985_s5] ss:$0 sm:$0xff]  ;;  %647 = vmatpush.msra.mxu1 %v620_v40 }
  0x15   : > { %v470_v15 = vmul.f32 %v780_v12, %v464_v13  ;;  %v471_v17 = vmul.f32 %v780_v12, %v465_v16  ;;  %v515_v23 = vld [vmem:[%s987_s7] sm:$0x1] }
  0x16   : > { %557 = vmatpush.msrb.mxu2 %v541_v19  ;;  %v543_v35 = vld [vmem:[%s989_s9] sm:$0x1] }
  0x17   : > { %754 = vmatmul.msk.f32.vlgmr.msra.gmra.mxu0 %vm480_vm0, %v470_v15  ;;  %v619_v53 = vld [vmem:[%s990_s10] sm:$0xff] }
  0x18   : > { %558 = vmatpush.msrb.mxu2 %v540_v20  ;;  %648 = vmatpush.msra.mxu1 %v619_v53  ;;  %v782_v56 = vld [vmem:[%s991_s11] ss:$0 sm:$0xff] }
  0x1a   : > { %559 = vmatpush.msrb.mxu2 %v539_v21 }
  0x1b   : > { %757 = vmatmul.msk.f32.vlgmr.msrb.gmra.mxu2 %vm480_vm0, %v510_v7 }
  0x1f   : > { %755 = vmatmul.msk.f32.gmra.mxu0 %vm480_vm0, %v471_v17 }
  0x94   : > { %v504_v24 = vpop.f32.mrf.mxu0 }
  0x95   : > { %v505_v26 = vadd.f32 %v781_v22, %v504_v24 }
  0x96   : > { %v536_v25 = vpop.f32.mrf.mxu2 }
  0x97   : > { %v537_v27 = vadd.f32 %v536_v25, %v515_v23 }
  0x99   : > { %v564_v28 = vperm.slane %v537_v27, 0 }
  0x9b   : > { %v565_v29 = vmul.f32 %v564_v28, %v505_v26 }
  0x9c   : > { %v507_v30 = vpop.f32.mrf.mxu0 }
  0x9d   : > { %v567_v31 = vsel %vm480_vm0, %v565_v29, 0.0  ;;  %v508_v32 = vadd.f32 %v781_v22, %v507_v30 }
  0x9e   : > { %568 = vadd.xlane.f32.xlu0 %v567_v31  ;;  %v561_v36 = vpop.f32.mrf.mxu2 }
  0x9f   : > { %v566_v33 = vmul.f32 %v564_v28, %v508_v32  ;;  %v562_v37 = vadd.f32 %v561_v36, %v543_v35 }
  0xa1   : > { %v570_v34 = vsel %vm480_vm0, %v566_v33, 0.0  ;;  %758 = vmatpush.msk.msra.mxu3 %vm592_vm1, %v562_v37 }
  0xa6   : > { %571 = vadd.xlane.f32.xlu0 %v570_v34 }
 0x111   : > { %v569_v41 = vpop.xlane.xlu0 %568 }
 0x112   : > { %v573_v42 = vsub.f32 %v569_v41, %v569_v41 }
 0x114   : > { %v575_v43 = vmul.f32 1.442695, %v573_v42 }
 0x116   : > { %783 = vpow2.f32 %v575_v43 }
 0x119   : > { %v572_v44 = vpop.xlane.xlu0 %571 }
 0x11a   : > { %v574_v45 = vsub.f32 %v572_v44, %v572_v44 }
 0x11c   : > { %v784_v46 = vpop.eup %783  ;;  %v577_v47 = vmul.f32 1.442695, %v574_v45 }
 0x11d   : > { %785 = vrcp.f32 %v784_v46 }
 0x11e   : > { %787 = vpow2.f32 %v577_v47 }
 0x123   : > { %v786_v48 = vpop.eup %785 }
 0x124   : > { %v788_v49 = vpop.eup %787  ;;  %v583_v50 = vmul.f32 %v786_v48, %v784_v46 }
 0x125   : > { %789 = vrcp.f32 %v788_v49 }
 0x126   : > { %759 = vmatmul.msk.f32.vlgmr.msra.gmra.mxu3 %vm585_vm2, %v583_v50 }
 0x12b   : > { %v790_v51 = vpop.eup %789 }
 0x12c   : > { %v584_v52 = vmul.f32 %v790_v51, %v788_v49 }
 0x12e   : > { %760 = vmatmul.msk.f32.gmra.mxu3 %vm585_vm2, %v584_v52 }
 0x1a9   : > { %v613_v54 = vpop.f32.mrf.mxu3 }
 0x1aa   : > { %761 = vmatmul.msk.f32.vlgmr.msra.gmra.mxu1 %vm480_vm0, %v613_v54 }
 0x1b1   : > { %v616_v55 = vpop.f32.mrf.mxu3 }
 0x1b2   : > { %762 = vmatmul.msk.f32.gmra.mxu1 %vm480_vm0, %v616_v55 }
 0x227   : > { %v650_v57 = vpop.f32.mrf.mxu1 }
 0x228   : > { %v651_v58 = vadd.f32 %v782_v56, %v650_v57 }
 0x22a   : > { %v656_v59 = vadd.f32 %v769_v11, %v651_v58 }
 0x22c   : > { %v658_v60 = vpack.c.bf16 %v656_v59, %v656_v59 }
 0x22e   : > { %661 = vst.msk [vmem:[%s455_s14] sm:$0xf] %vm660_vm3, %v658_v60 }
 0x22f   : > { %v653_v61 = vpop.f32.mrf.mxu1 }
 0x230   : > { %v654_v62 = vadd.f32 %v782_v56, %v653_v61 }
 0x232   : > { %v657_v63 = vadd.f32 %v770_v14, %v654_v62 }
 0x234   : > { %v659_v0 = vpack.c.bf16 %v657_v63, %v657_v63 }
 0x236   : > { %662 = vst.msk [vmem:[%s455_s14 + $0x4] sm:$0xf] %vm660_vm3, %v659_v0 }
 0x237 PF: > { %s22_s21 = sadd.s32 1, %s797_s21  }
 0x238   : > { %p19_p4 = scmp.ge.s32.totalorder %s22_s21, 4  }
 0x23a   :  { %21 = sbr.rel (!%p19_p4) target bundleno = 1 (0x1), region = 107 }

// kernel: tsvae_forward.29
= control target key start
LH: loop header
LB: loop body
LE: loop exit
PB: predicated region body
PF: predicated region fallthrough
CT: control target
= control target key end

     0   :  { %s289_s1 = inlined_call_operand.vmem [shape: bf16[128,128], index: 1, kind: input, shape index: {}]   ;;  %s290_s2 = inlined_call_operand.vmem [shape: f32[1,128], index: 2, kind: input, shape index: {}]   ;;  %s291_s0 = inlined_call_operand.vmem [shape: bf16[32,128], index: 0, kind: input, shape index: {}]   ;;  %s292_s3 = inlined_call_operand.vmem [shape: bf16[32,128], index: 3, kind: output, shape index: {}]  }
   0x1   :  { %v209_v0 = vld [vmem:[%s289_s1 + $0x38] sm:$0xff]  ;;  %v208_v1 = vld [vmem:[%s289_s1 + $0x30] sm:$0xff]  ;;  %v207_v2 = vld [vmem:[%s289_s1 + $0x28] sm:$0xff] }
   0x2   :  { %106 = vmatpush.bf16.msra.mxu0 %v209_v0  ;;  %221 = vmatpush.bf16.msra.mxu1 %v209_v0  ;;  %v206_v3 = vld [vmem:[%s289_s1 + $0x20] sm:$0xff]  ;;  %v205_v4 = vld [vmem:[%s289_s1 + $0x18] sm:$0xff]  ;;  %v204_v5 = vld [vmem:[%s289_s1 + $0x10] sm:$0xff] }
   0x3   :  { %v203_v6 = vld [vmem:[%s289_s1 + $0x8] sm:$0xff]  ;;  %v202_v7 = vld [vmem:[%s289_s1] sm:$0xff] }
   0x4   :  { %v200_v8 = vld [vmem:[%s291_s0] sm:$0xff]  ;;  %v201_v9 = vld [vmem:[%s291_s0 + $0x8] sm:$0xff] }
   0x5   :  { %v229_v12 = vld [vmem:[%s290_s2] ss:$0 sm:$0xff] }
   0x6   :  { %107 = vmatpush.bf16.msra.mxu0 %v208_v1  ;;  %222 = vmatpush.bf16.msra.mxu1 %v208_v1 }
   0xa   :  { %108 = vmatpush.bf16.msra.mxu0 %v207_v2  ;;  %223 = vmatpush.bf16.msra.mxu1 %v207_v2 }
   0xe   :  { %109 = vmatpush.bf16.msra.mxu0 %v206_v3  ;;  %224 = vmatpush.bf16.msra.mxu1 %v206_v3 }
  0x12   :  { %110 = vmatpush.bf16.msra.mxu0 %v205_v4  ;;  %225 = vmatpush.bf16.msra.mxu1 %v205_v4 }
  0x16   :  { %111 = vmatpush.bf16.msra.mxu0 %v204_v5  ;;  %226 = vmatpush.bf16.msra.mxu1 %v204_v5 }
  0x1a   :  { %112 = vmatpush.bf16.msra.mxu0 %v203_v6  ;;  %227 = vmatpush.bf16.msra.mxu1 %v203_v6 }
  0x1e   :  { %113 = vmatpush.bf16.msra.mxu0 %v202_v7  ;;  %228 = vmatpush.bf16.msra.mxu1 %v202_v7 }
  0x21   :  { %114 = vmatmul.bf16.vlgmr.msra.gmra.mxu0 %v200_v8  ;;  %119 = vmatmul.bf16.vlgmr.msra.gmra.mxu1 %v201_v9 }
  0x9e   :  { %v115_v10 = vpop.f32.mrf.mxu0  ;;  %v120_v11 = vpop.f32.mrf.mxu1 }
  0x9f   :  { %v144_v15 = vadd.f32 %v229_v12, %v115_v10  ;;  %v146_v16 = vadd.f32 %v229_v12, %v120_v11 }
  0xa6   :  { %v117_v13 = vpop.f32.mrf.mxu0  ;;  %v122_v14 = vpop.f32.mrf.mxu1 }
  0xa7   :  { %v145_v17 = vadd.f32 %v229_v12, %v117_v13  ;;  %v147_v18 = vadd.f32 %v229_v12, %v122_v14 }
  0xa9   :  { %v213_v19 = vpack.c.bf16 %v145_v17, %v144_v15  ;;  %v218_v20 = vpack.c.bf16 %v147_v18, %v146_v16 }
  0xab   :  { %214 = vst [vmem:[%s292_s3] sm:$0xff] %v213_v19  }
  0xac   :  { %220 = vst [vmem:[%s292_s3 + $0x8] sm:$0xff] %v218_v20  }

// kernel: tsvae_forward.30
= control target key start
LH: loop header
LB: loop body
LE: loop exit
PB: predicated region body
PF: predicated region fallthrough
CT: control target
= control target key end

     0   :  { %11 = vsyncpa [#allocation5], 0  ;;  %vm40_vm0 = vcmask 130048   ;;  %s655_s0 = inlined_call_operand.vmem [shape: f32[32,16], index: 0, kind: input, shape index: {}]   ;;  %s656_s1 = inlined_call_operand.vmem [shape: f32[32,16], index: 1, kind: input, shape index: {}]   ;;  %s657_s2 = inlined_call_operand.vmem [shape: f32[1,32], index: 2, kind: input, shape index: {}]   ;;  %s658_s3 = inlined_call_operand.vmem [shape: f32[32,16], index: 3, kind: output, shape index: {0}]   ;;  %s659_s4 = inlined_call_operand.hbm [shape: f32[1,1], index: 4, kind: output, shape index: {1}]   ;;  %s660_s5 = inlined_call_operand.hbm [shape: f32[1,1], index: 5, kind: output, shape index: {2}]  }
   0x1   :  { %v34_v0 = vld [vmem:[%s656_s1 + $0x18] sm:$0xff]  ;;  %v33_v1 = vld [vmem:[%s656_s1 + $0x10] sm:$0xff]  ;;  %v539_v3 = vld [vmem:[%s655_s0 + $0x8] sm:$0xff] }
   0x2   :  { %402 = vmatpush.xpose.msk.msra.mxu0 %vm40_vm0, %v34_v0  ;;  %418 = vmatpush.xpose.msk.msra.mxu2 %vm40_vm0, %v34_v0  ;;  %v534_v2 = vld [vmem:[%s655_s0 + $0x18] sm:$0xff]  ;;  %v37_v5 = vmul.f32 %v539_v3, %v539_v3 }
   0x3   :  { %422 = vmatpush.msra.mxu3 %v34_v0  ;;  %263 = vmatpush.msra.mxu1 %v34_v0  ;;  %v39_v4 = vmul.f32 %v534_v2, %v534_v2 }
   0x4   :  { %12 = vsyncpa [#allocation7], 0  ;;  %v44_v7 = vsel %vm40_vm0, %v37_v5, 0.0  ;;  %v32_v8 = vld [vmem:[%s656_s1 + $0x8] sm:$0xff]  ;;  %v555_v9 = vld [vmem:[%s655_s0] sm:$0xff]  ;;  %vm123_vm1 = vcmask 261120   ;;  %v121_v41 = vlaneseq }
   0x5   :  { %423 = vmatpush.msra.mxu3 %v33_v1  ;;  %264 = vmatpush.msra.mxu1 %v33_v1  ;;  %v50_v6 = vsel %vm40_vm0, %v39_v4, 0.0  ;;  %v560_v10 = vld [vmem:[%s655_s0 + $0x10] sm:$0xff]  ;;  %v36_v11 = vmul.f32 %v555_v9, %v555_v9  ;;  %v31_v13 = vld [vmem:[%s656_s1] sm:$0xff]  ;;  %vm23_vm10 = vcmask 253952   ;;  %vm25_vm15 = vcmask 0   ;;  %s491_s17 = smov [#allocation6]  }
   0x6   :  { %403 = vmatpush.xpose.msk.msra.mxu0 %vm40_vm0, %v33_v1  ;;  %419 = vmatpush.xpose.msk.msra.mxu2 %vm40_vm0, %v33_v1  ;;  %v38_v12 = vmul.f32 %v560_v10, %v560_v10  ;;  %v433_v17 = vld [vmem:[%s657_s2] ss:$0 sm:$0xff]  ;;  %v590_v43 = vand.u32 127, %v121_v41  ;;  %s384_s18 = sshll.u32 %s491_s17, 4  ;;  %s386_s21 = sshll.u32 %s660_s5, 4  ;;  %s385_s18 = int_to_ptr.vmem [resolvable:$true] %s384_s18  ;;  %s387_s21 = int_to_ptr.hbm [resolvable:$true] %s386_s21 }
   0x7   :  { %51 = vadd.xlane.f32.xlu1 %v50_v6  ;;  %45 = vadd.xlane.f32.xlu0 %v44_v7  ;;  %v41_v14 = vsel %vm40_vm0, %v36_v11, 0.0  ;;  %s492_s22 = smov [#allocation4]   ;;  %s375_s26 = sshll.u32 %s659_s4, 4  ;;  %s376_s26 = int_to_ptr.hbm [resolvable:$true] %s375_s26 }
   0x8   :  { %424 = vmatpush.msra.mxu3 %v32_v8  ;;  %265 = vmatpush.msra.mxu1 %v32_v8  ;;  %v47_v15 = vsel %vm40_vm0, %v38_v12, 0.0  ;;  %s373_s23 = sshll.u32 %s492_s22, 4  ;;  %s374_s23 = int_to_ptr.vmem [resolvable:$true] %s373_s23 }
   0xa   :  { %404 = vmatpush.xpose.msk.msra.mxu0 %vm40_vm0, %v32_v8  ;;  %420 = vmatpush.xpose.msk.msra.mxu2 %vm40_vm0, %v32_v8 }
   0xb   :  { %425 = vmatpush.msra.mxu3 %v31_v13  ;;  %266 = vmatpush.msra.mxu1 %v31_v13 }
   0xe   :  { %405 = vmatpush.xpose.msk.msra.mxu0 %vm40_vm0, %v31_v13  ;;  %421 = vmatpush.xpose.msk.msra.mxu2 %vm40_vm0, %v31_v13 }
   0xf   :  { %42 = vadd.xlane.f32.xlu1 %v41_v14  ;;  %48 = vadd.xlane.f32.xlu0 %v47_v15 }
  0x11   :  { %406 = vmatmul.msk.f32.vlgmr.msra.gmra.mxu0 %vm40_vm0, %v555_v9  ;;  %408 = vmatmul.msk.f32.vlgmr.msra.gmra.mxu2 %vm40_vm0, %v560_v10 }
  0x19   :  { %407 = vmatmul.msk.f32.gmra.mxu0 %vm40_vm0, %v539_v3  ;;  %409 = vmatmul.msk.f32.gmra.mxu2 %vm40_vm0, %v534_v2 }
  0x7a   :  { %v52_v16 = vpop.xlane.xlu1 %51  ;;  %v46_v19 = vpop.xlane.xlu0 %45 }
  0x7b   :  { %v110_v26 = vadd.f32 %v433_v17, %v46_v19  ;;  %v112_v33 = vadd.f32 %v433_v17, %v52_v16  ;;  %v490_v19 = vmov 0.0  }
  0x7c   :  { %24 = vst.msk [vmem:[#allocation2] sm:$0x1] %vm23_vm10, %v490_v19 }
  0x7d   :  { %26 = vst.msk [vmem:[#allocation3] sm:$0x1] %vm25_vm15, %v490_v19 }
  0x82   :  { %v43_v18 = vpop.xlane.xlu1 %42  ;;  %v49_v28 = vpop.xlane.xlu0 %48 }
  0x83   :  { %v109_v20 = vadd.f32 %v433_v17, %v43_v18  ;;  %v111_v32 = vadd.f32 %v433_v17, %v49_v28 }
  0x8e   :  { %v94_v21 = vpop.f32.mrf.mxu0 }
  0x8f   :  { %v113_v22 = vmul.f32 2.0, %v94_v21 }
  0x91   :  { %v117_v23 = vsub.f32 %v109_v20, %v113_v22 }
  0x93   :  { %v124_v24 = vsel %vm123_vm1, %v117_v23, inf }
  0x94   :  { %v100_v25 = vpop.f32.mrf.mxu2  ;;  %125 = vmin.xlane.f32.xlu1 %v124_v24 }
  0x95   :  { %v115_v30 = vmul.f32 2.0, %v100_v25 }
  0x96   :  { %v97_v27 = vpop.f32.mrf.mxu0 }
  0x97   :  { %v114_v29 = vmul.f32 2.0, %v97_v27  ;;  %v119_v37 = vsub.f32 %v111_v32, %v115_v30 }
  0x99   :  { %v118_v31 = vsub.f32 %v110_v26, %v114_v29  ;;  %v130_v40 = vsel %vm123_vm1, %v119_v37, inf }
  0x9b   :  { %v127_v34 = vsel %vm123_vm1, %v118_v31, inf }
  0x9c   :  { %v103_v35 = vpop.f32.mrf.mxu2  ;;  %128 = vmin.xlane.f32.xlu2 %v127_v34 }
  0x9d   :  { %v116_v36 = vmul.f32 2.0, %v103_v35 }
  0x9f   :  { %v120_v38 = vsub.f32 %v112_v33, %v116_v36 }
  0xa1   :  { %v133_v39 = vsel %vm123_vm1, %v120_v38, inf }
  0xa2   :  { %134 = vmin.xlane.f32.xlu0 %v133_v39 }
  0xa4   :  { %131 = vmin.xlane.f32.xlu2 %v130_v40 }
 0x107   :  { %v126_v42 = vpop.xlane.xlu1 %125 }
 0x108   :  { %vm136_vm2 = vcmp.le.f32.partialorder %v117_v23, %v126_v42 }
 0x109   :  { %v140_v47 = vsel %vm136_vm2, %v590_v43, 32 }
 0x10a   :  { %v144_v51 = vsel %vm123_vm1, %v140_v47, 2147483647 }
 0x10b   :  { %v146_v57 = vshra.s32 %v144_v51, 16  ;;  %v145_v7 = vand.u32 65535, %v144_v51 }
 0x10d   :  { %v148_v62 = vcvt.s32.f32 %v146_v57  ;;  %v147_v16 = vcvt.s32.f32 %v145_v7 }
 0x10f   :  { %v129_v44 = vpop.xlane.xlu2 %128 }
 0x110   :  { %vm137_vm3 = vcmp.le.f32.partialorder %v118_v31, %v129_v44 }
 0x111   :  { %v141_v45 = vsel %vm137_vm3, %v590_v43, 32 }
 0x112   :  { %v159_v46 = vsel %vm123_vm1, %v141_v45, 2147483647 }
 0x113   :  { %v161_v48 = vshra.s32 %v159_v46, 16  ;;  %v160_v63 = vand.u32 65535, %v159_v46 }
 0x115   :  { %v135_v49 = vpop.xlane.xlu0 %134  ;;  %v163_v50 = vcvt.s32.f32 %v161_v48  ;;  %v162_v1 = vcvt.s32.f32 %v160_v63 }
 0x116   :  { %vm139_vm4 = vcmp.le.f32.partialorder %v120_v38, %v135_v49 }
 0x117   :  { %v143_v52 = vsel %vm139_vm4, %v590_v43, 32  ;;  %164 = vmin.xlane.f32.xlu2 %v163_v50  ;;  %v132_v53 = vpop.xlane.xlu2 %131 }
 0x118   :  { %v189_v54 = vsel %vm123_vm1, %v143_v52, 2147483647  ;;  %vm138_vm5 = vcmp.le.f32.partialorder %v119_v37, %v132_v53 }
 0x119   :  { %v142_v55 = vsel %vm138_vm5, %v590_v43, 32  ;;  %v191_v56 = vshra.s32 %v189_v54, 16  ;;  %v190_v5 = vand.u32 65535, %v189_v54 }
 0x11a   :  { %v174_v58 = vsel %vm123_vm1, %v142_v55, 2147483647 }
 0x11b   :  { %v193_v59 = vcvt.s32.f32 %v191_v56  ;;  %v176_v60 = vshra.s32 %v174_v58, 16  ;;  %v175_v6 = vand.u32 65535, %v174_v58  ;;  %v192_v11 = vcvt.s32.f32 %v190_v5  ;;  %v313_v56 = vld [vmem:[#allocation2] sm:$0x1] }
 0x11d   :  { %194 = vmin.xlane.f32.xlu1 %v193_v59  ;;  %v178_v61 = vcvt.s32.f32 %v176_v60  ;;  %v177_v15 = vcvt.s32.f32 %v175_v6 }
 0x11f   :  { %179 = vmin.xlane.f32.xlu0 %v178_v61  ;;  %149 = vmin.xlane.f32.xlu2 %v148_v62 }
 0x18a   :  { %v165_v0 = vpop.xlane.xlu2 %164 }
 0x18b   :  { %vm166_vm6 = vcmp.eq.f32.partialorder %v163_v50, %v165_v0  ;;  %v171_v20 = vcvt.f32.s32 %v165_v0 }
 0x18c   :  { %v167_v4 = vsel %vm166_vm6, %v162_v1, inf }
 0x18d   :  { %168 = vmin.xlane.f32.xlu0 %v167_v4  ;;  %v172_v22 = vshll.u32 %v171_v20, 16 }
 0x190   :  { %v195_v8 = vpop.xlane.xlu1 %194 }
 0x191   :  { %vm196_vm7 = vcmp.eq.f32.partialorder %v193_v59, %v195_v8  ;;  %v201_v25 = vcvt.f32.s32 %v195_v8 }
 0x192   :  { %v180_v12 = vpop.xlane.xlu0 %179  ;;  %v150_v13 = vpop.xlane.xlu2 %149  ;;  %v197_v14 = vsel %vm196_vm7, %v192_v11, inf }
 0x193   :  { %198 = vmin.xlane.f32.xlu2 %v197_v14  ;;  %vm181_vm8 = vcmp.eq.f32.partialorder %v178_v61, %v180_v12  ;;  %vm151_vm9 = vcmp.eq.f32.partialorder %v148_v62, %v150_v13  ;;  %v186_v26 = vcvt.f32.s32 %v180_v12  ;;  %v156_v27 = vcvt.f32.s32 %v150_v13 }
 0x194   :  { %v182_v17 = vsel %vm181_vm8, %v177_v15, inf  ;;  %v152_v18 = vsel %vm151_vm9, %v147_v16, inf  ;;  %v202_v31 = vshll.u32 %v201_v25, 16 }
 0x195   :  { %183 = vmin.xlane.f32.xlu1 %v182_v17  ;;  %153 = vmin.xlane.f32.xlu0 %v152_v18  ;;  %v187_v33 = vshll.u32 %v186_v26, 16  ;;  %v157_v36 = vshll.u32 %v156_v27, 16 }
 0x200   :  { %v169_v21 = vpop.xlane.xlu0 %168 }
 0x201   :  { %v170_v23 = vcvt.f32.s32 %v169_v21 }
 0x203   :  { %v173_v24 = vadd.s32 %v172_v22, %v170_v23 }
 0x205   :  { %vm205_vm11 = vcmp.eq.s32.totalorder %v590_v43, %v173_v24 }
 0x206   :  { %v199_v28 = vpop.xlane.xlu2 %198  ;;  %v411_v29 = vsel %vm205_vm11, 1.0, %v490_v19 }
 0x207   :  { %v200_v30 = vcvt.f32.s32 %v199_v28  ;;  %415 = vmatmul.msk.f32.vlgmr.msra.gmra.mxu3 %vm123_vm1, %v411_v29  ;;  %v319_v44 = vsel %vm123_vm1, %v411_v29, 0.0 }
 0x208   :  { %v184_v32 = vpop.xlane.xlu1 %183  ;;  %v154_v34 = vpop.xlane.xlu0 %153 }
 0x209   :  { %v185_v35 = vcvt.f32.s32 %v184_v32  ;;  %v203_v37 = vadd.s32 %v202_v31, %v200_v30  ;;  %v155_v38 = vcvt.f32.s32 %v154_v34 }
 0x20b   :  { %v188_v39 = vadd.s32 %v187_v33, %v185_v35  ;;  %v158_v40 = vadd.s32 %v157_v36, %v155_v38  ;;  %vm207_vm14 = vcmp.eq.s32.totalorder %v590_v43, %v203_v37  ;;  %v288_v36 = vld [vmem:[#allocation3] sm:$0x1] }
 0x20c   :  { %v413_v47 = vsel %vm207_vm14, 1.0, %v490_v19 }
 0x20d   :  { %vm206_vm12 = vcmp.eq.s32.totalorder %v590_v43, %v188_v39  ;;  %vm204_vm13 = vcmp.eq.s32.totalorder %v590_v43, %v158_v40  ;;  %v323_v50 = vsel %vm123_vm1, %v413_v47, 0.0 }
 0x20e   :  { %v412_v41 = vsel %vm206_vm12, 1.0, %v490_v19  ;;  %v410_v42 = vsel %vm204_vm13, 1.0, %v490_v19 }
 0x20f   :  { %416 = vmatmul.msk.f32.gmra.mxu3 %vm123_vm1, %v412_v41  ;;  %414 = vmatmul.msk.f32.vlgmr.msra.gmra.mxu1 %vm123_vm1, %v410_v42  ;;  %v318_v45 = vsel %vm123_vm1, %v410_v42, 0.0  ;;  %v321_v48 = vsel %vm123_vm1, %v412_v41, 0.0 }
 0x210   :  { %v320_v46 = vadd.f32 %v319_v44, %v318_v45 }
 0x212   :  { %v322_v49 = vadd.f32 %v321_v48, %v320_v46 }
 0x214   :  { %v324_v51 = vadd.f32 %v323_v50, %v322_v49 }
 0x216   :  { %v325_v43 = vrot.slane %v324_v51, 4 }
 0x217   :  { %417 = vmatmul.msk.f32.gmra.mxu3 %vm123_vm1, %v413_v47 }
 0x218   :  { %v326_v52 = vadd.f32 %v325_v43, %v324_v51 }
 0x21a   :  { %v327_v53 = vrot.slane %v326_v52, 2 }
 0x21c   :  { %v328_v54 = vadd.f32 %v327_v53, %v326_v52 }
 0x21e   :  { %v329_v55 = vrot.slane %v328_v54, 1 }
 0x220   :  { %v330_v57 = vadd.f32 %v329_v55, %v328_v54 }
 0x222   :  { %v331_v58 = vadd.f32 %v330_v57, %v313_v56 }
 0x224   :  { %333 = vst.msk [vmem:[#allocation2] sm:$0x1] %vm23_vm10, %v331_v58 }
 0x22b   :  { %v345_v59 = vld [vmem:[#allocation2] sm:$0x1] }
 0x22c   :  { %v346_v60 = vmul.f32 0.03125, %v345_v59 }
 0x22e   :  { %v347_v61 = vadd.f32 1e-10, %v346_v60 }
 0x230   :  { %434 = vlog2.f32 %v347_v61 }
 0x236   :  { %v435_v62 = vpop.eup %434 }
 0x237   :  { %v349_v63 = vmul.f32 0.6931472, %v435_v62 }
 0x239   :  { %v350_v0 = vmul.f32 %v349_v63, %v346_v60 }
 0x23b   :  { %v351_v1 = vsel %vm23_vm10, %v350_v0, 0.0 }
 0x23c   :  { %352 = vadd.xlane.f32.xlu2 %v351_v1 }
 0x28a   :  { %v271_v4 = vpop.f32.mrf.mxu3 }
 0x28b   :  { %335 = vst.msk [vmem:[%s658_s3 + $0x8] sm:$0xff] %vm40_vm0, %v271_v4  ;;  %v281_v8 = vsub.f32 %v271_v4, %v539_v3 }
 0x28c   :  { %v268_v5 = vpop.f32.mrf.mxu1 }
 0x28d   :  { %334 = vst.msk [vmem:[%s658_s3] sm:$0xff] %vm40_vm0, %v268_v5  ;;  %v280_v6 = vsub.f32 %v268_v5, %v555_v9  ;;  %v290_v13 = vmul.f32 %v281_v8, %v281_v8 }
 0x28f   :  { %v289_v12 = vmul.f32 %v280_v6, %v280_v6  ;;  %v294_v17 = vsel %vm40_vm0, %v290_v13, 0.0 }
 0x291   :  { %v293_v15 = vsel %vm40_vm0, %v289_v12, 0.0 }
 0x292   :  { %v274_v7 = vpop.f32.mrf.mxu3  ;;  %v295_v3 = vadd.f32 %v294_v17, %v293_v15 }
 0x293   :  { %v282_v11 = vsub.f32 %v274_v7, %v560_v10  ;;  %336 = vst.msk [vmem:[%s658_s3 + $0x10] sm:$0xff] %vm40_vm0, %v274_v7 }
 0x295   :  { %v291_v14 = vmul.f32 %v282_v11, %v282_v11 }
 0x297   :  { %v296_v9 = vsel %vm40_vm0, %v291_v14, 0.0 }
 0x298   :  { %v297_v20 = vadd.f32 %v296_v9, %v295_v3 }
 0x29a   :  { %v277_v16 = vpop.f32.mrf.mxu3 }
 0x29b   :  { %v283_v18 = vsub.f32 %v277_v16, %v534_v2  ;;  %337 = vst.msk [vmem:[%s658_s3 + $0x18] sm:$0xff] %vm40_vm0, %v277_v16 }
 0x29d   :  { %v292_v10 = vmul.f32 %v283_v18, %v283_v18 }
 0x29f   :  { %v298_v21 = vsel %vm40_vm0, %v292_v10, 0.0 }
 0x2a0   :  { %v299_v22 = vadd.f32 %v298_v21, %v297_v20 }
 0x2a2   :  { %300 = vadd.xlane.f32.xlu1 %v299_v22 }
 0x2af   :  { %v353_v23 = vpop.xlane.xlu2 %352 }
 0x2b0   :  { %v354_v24 = vrot.slane %v353_v23, 4 }
 0x2b2   :  { %v355_v25 = vadd.f32 %v354_v24, %v353_v23 }
 0x2b4   :  { %v356_v2 = vrot.slane %v355_v25, 2 }
 0x2b6   :  { %v357_v29 = vadd.f32 %v356_v2, %v355_v25 }
 0x2b8   :  { %v358_v32 = vrot.slane %v357_v29, 1 }
 0x2ba   :  { %v359_v35 = vadd.f32 %v358_v32, %v357_v29 }
 0x315   :  { %v301_v26 = vpop.xlane.xlu1 %300 }
 0x316   :  { %v302_v27 = vrot.slane %v301_v26, 4 }
 0x318   :  { %v303_v28 = vadd.f32 %v302_v27, %v301_v26 }
 0x31a   :  { %v304_v30 = vrot.slane %v303_v28, 2 }
 0x31c   :  { %v305_v31 = vadd.f32 %v304_v30, %v303_v28 }
 0x31e   :  { %v306_v33 = vrot.slane %v305_v31, 1 }
 0x320   :  { %v307_v34 = vadd.f32 %v306_v33, %v305_v31 }
 0x322   :  { %426 = vpush %v307_v34 }
 0x323   :  { %428 = vpush %v359_v35 }
 0x353   :  { %s427_s3 = spop %426 }
 0x354   :  { %v309_v37 = vstv %s427_s3  ;;  %s429_s16 = spop %428 }
 0x355   :  { %v310_v19 = vadd.f32 %v309_v37, %v288_v36  ;;  %v361_v38 = vstv %s429_s16 }
 0x356   :  { %v362_v39 = vsub.f32 0.0, %v361_v38 }
 0x357   :  { %312 = vst.msk [vmem:[#allocation3] sm:$0x1] %vm25_vm15, %v310_v19 }
 0x358   :  { %v363_v40 = vmul.f32 1.442695, %v362_v39 }
 0x35a   :  { %436 = vpow2.f32 %v363_v40 }
 0x35e   :  { %v341_v41 = vld [vmem:[#allocation3] sm:$0x1] }
 0x35f   :  { %v342_v42 = vmul.f32 0.001953125, %v341_v41 }
 0x360   :  { %v437_v44 = vpop.eup %436 }
 0x361   :  { %365 = vst.msk [vmem:[#allocation6] sm:$0x1] %vm25_vm15, %v437_v44  ;;  %v343_v45 = vmul.f32 1.25, %v342_v42 }
 0x362   :  { %389 = dma.vmem_to_hbm [thread:$0]  %s385_s18, 16, %s387_s21, [#allocation7]  }
 0x363   :  { %344 = vst.msk [vmem:[#allocation4] sm:$0x1] %vm25_vm15, %v343_v45 }
 0x364   :  { %378 = dma.vmem_to_hbm [thread:$0]  %s374_s23, 16, %s376_s26, [#allocation5]  }
 0x365   :  { %486 = dma.done.wait [#allocation5], 16  }
 0x366   :  { %487 = vsyncadd [#allocation5], 4294967280 }
 0x367   :  { %488 = dma.done.wait [#allocation7], 16  }
 0x368   :  { %489 = vsyncadd [#allocation7], 4294967280 }
 0x369   :  { %400 = vsyncpa [#allocation5], 1 }
 0x36a   :  { %401 = vsyncpa [#allocation7], 1 }

// kernel: tsvae_forward.31
= control target key start
LH: loop header
LB: loop body
LE: loop exit
PB: predicated region body
PF: predicated region fallthrough
CT: control target
= control target key end

     0   :  { %s480_s1 = inlined_call_operand.vmem [shape: bf16[256,128], index: 1, kind: input, shape index: {}]   ;;  %s481_s0 = inlined_call_operand.vmem [shape: bf16[32,256], index: 0, kind: input, shape index: {}]   ;;  %s482_s2 = inlined_call_operand.vmem [shape: f32[1,128], index: 2, kind: input, shape index: {}]   ;;  %s483_s3 = inlined_call_operand.vmem [shape: bf16[32,128], index: 3, kind: output, shape index: {}]  }
   0x1   :  { %v342_v0 = vld [vmem:[%s480_s1 + $0x38] sm:$0xff]  ;;  %v341_v2 = vld [vmem:[%s480_s1 + $0x30] sm:$0xff]  ;;  %v340_v4 = vld [vmem:[%s480_s1 + $0x28] sm:$0xff] }
   0x2   :  { %v350_v1 = vld [vmem:[%s480_s1 + $0x78] sm:$0xff]  ;;  %178 = vmatpush.bf16.msra.mxu0 %v342_v0  ;;  %362 = vmatpush.bf16.msra.mxu2 %v342_v0  ;;  %v349_v3 = vld [vmem:[%s480_s1 + $0x70] sm:$0xff]  ;;  %v348_v5 = vld [vmem:[%s480_s1 + $0x68] sm:$0xff] }
   0x3   :  { %197 = vmatpush.bf16.msra.mxu1 %v350_v1  ;;  %370 = vmatpush.bf16.msra.mxu3 %v350_v1  ;;  %v339_v6 = vld [vmem:[%s480_s1 + $0x20] sm:$0xff]  ;;  %v338_v8 = vld [vmem:[%s480_s1 + $0x18] sm:$0xff]  ;;  %v337_v10 = vld [vmem:[%s480_s1 + $0x10] sm:$0xff] }
   0x4   :  { %v347_v7 = vld [vmem:[%s480_s1 + $0x60] sm:$0xff]  ;;  %v346_v9 = vld [vmem:[%s480_s1 + $0x58] sm:$0xff]  ;;  %v345_v11 = vld [vmem:[%s480_s1 + $0x50] sm:$0xff] }
   0x5   :  { %v336_v12 = vld [vmem:[%s480_s1 + $0x8] sm:$0xff]  ;;  %v335_v14 = vld [vmem:[%s480_s1] sm:$0xff]  ;;  %v261_v18 = vld [vmem:[%s481_s0 + $0x10] sm:$0xf] }
   0x6   :  { %179 = vmatpush.bf16.msra.mxu0 %v341_v2  ;;  %363 = vmatpush.bf16.msra.mxu2 %v341_v2  ;;  %v344_v13 = vld [vmem:[%s480_s1 + $0x48] sm:$0xff]  ;;  %v343_v15 = vld [vmem:[%s480_s1 + $0x40] sm:$0xff]  ;;  %v334_v19 = vld [vmem:[%s481_s0 + $0x14] sm:$0xf0] }
   0x7   :  { %198 = vmatpush.bf16.msra.mxu1 %v349_v3  ;;  %371 = vmatpush.bf16.msra.mxu3 %v349_v3  ;;  %v253_v16 = vld [vmem:[%s481_s0] sm:$0xf]  ;;  %v332_v17 = vld [vmem:[%s481_s0 + $0x4] sm:$0xf0]  ;;  %v331_v20 = vld [vmem:[%s481_s0 + $0x4] sm:$0xf]  ;;  %v262_v25 = vor.u32 %v334_v19, %v261_v18 }
   0x8   :  { %v255_v21 = vld [vmem:[%s481_s0 + $0x8] sm:$0xf0]  ;;  %v333_v22 = vld [vmem:[%s481_s0 + $0x14] sm:$0xf]  ;;  %v263_v23 = vld [vmem:[%s481_s0 + $0x18] sm:$0xf0]  ;;  %v254_v24 = vor.u32 %v332_v17, %v253_v16 }
   0x9   :  { %v258_v26 = vor.u32 %v331_v20, %v255_v21  ;;  %v266_v27 = vor.u32 %v333_v22, %v263_v23  ;;  %v378_v33 = vld [vmem:[%s482_s2] ss:$0 sm:$0xff] }
   0xa   :  { %180 = vmatpush.bf16.msra.mxu0 %v340_v4  ;;  %364 = vmatpush.bf16.msra.mxu2 %v340_v4 }
   0xb   :  { %199 = vmatpush.bf16.msra.mxu1 %v348_v5  ;;  %372 = vmatpush.bf16.msra.mxu3 %v348_v5 }
   0xe   :  { %181 = vmatpush.bf16.msra.mxu0 %v339_v6  ;;  %365 = vmatpush.bf16.msra.mxu2 %v339_v6 }
   0xf   :  { %200 = vmatpush.bf16.msra.mxu1 %v347_v7  ;;  %373 = vmatpush.bf16.msra.mxu3 %v347_v7 }
  0x12   :  { %182 = vmatpush.bf16.msra.mxu0 %v338_v8  ;;  %366 = vmatpush.bf16.msra.mxu2 %v338_v8 }
  0x13   :  { %201 = vmatpush.bf16.msra.mxu1 %v346_v9  ;;  %374 = vmatpush.bf16.msra.mxu3 %v346_v9 }
  0x16   :  { %183 = vmatpush.bf16.msra.mxu0 %v337_v10  ;;  %367 = vmatpush.bf16.msra.mxu2 %v337_v10 }
  0x17   :  { %202 = vmatpush.bf16.msra.mxu1 %v345_v11  ;;  %375 = vmatpush.bf16.msra.mxu3 %v345_v11 }
  0x1a   :  { %184 = vmatpush.bf16.msra.mxu0 %v336_v12  ;;  %368 = vmatpush.bf16.msra.mxu2 %v336_v12 }
  0x1b   :  { %203 = vmatpush.bf16.msra.mxu1 %v344_v13  ;;  %376 = vmatpush.bf16.msra.mxu3 %v344_v13 }
  0x1e   :  { %185 = vmatpush.bf16.msra.mxu0 %v335_v14  ;;  %369 = vmatpush.bf16.msra.mxu2 %v335_v14 }
  0x1f   :  { %204 = vmatpush.bf16.msra.mxu1 %v343_v15  ;;  %377 = vmatpush.bf16.msra.mxu3 %v343_v15 }
  0x21   :  { %186 = vmatmul.bf16.vlgmr.msra.gmra.mxu0 %v254_v24  ;;  %191 = vmatmul.bf16.vlgmr.msra.gmra.mxu2 %v262_v25 }
  0x22   :  { %205 = vmatmul.bf16.vlgmr.msra.gmra.mxu1 %v258_v26  ;;  %210 = vmatmul.bf16.vlgmr.msra.gmra.mxu3 %v266_v27 }
  0x9e   :  { %v187_v28 = vpop.f32.mrf.mxu0 }
  0x9f   :  { %v206_v29 = vpop.f32.mrf.mxu1 }
  0xa0   :  { %v207_v32 = vadd.f32 %v206_v29, %v187_v28 }
  0xa2   :  { %v235_v37 = vadd.f32 %v378_v33, %v207_v32 }
  0xa4   :  { %v192_v30 = vpop.f32.mrf.mxu2 }
  0xa5   :  { %v211_v31 = vpop.f32.mrf.mxu3 }
  0xa6   :  { %v189_v34 = vpop.f32.mrf.mxu0  ;;  %v212_v39 = vadd.f32 %v211_v31, %v192_v30 }
  0xa7   :  { %v208_v35 = vpop.f32.mrf.mxu1 }
  0xa8   :  { %v209_v36 = vadd.f32 %v208_v35, %v189_v34  ;;  %v237_v44 = vadd.f32 %v378_v33, %v212_v39 }
  0xaa   :  { %v236_v38 = vadd.f32 %v378_v33, %v209_v36 }
  0xac   :  { %v354_v40 = vpack.c.bf16 %v236_v38, %v235_v37  ;;  %v194_v41 = vpop.f32.mrf.mxu2 }
  0xad   :  { %v213_v42 = vpop.f32.mrf.mxu3 }
  0xae   :  { %355 = vst [vmem:[%s483_s3] sm:$0xff] %v354_v40   ;;  %v214_v43 = vadd.f32 %v213_v42, %v194_v41 }
  0xb0   :  { %v238_v45 = vadd.f32 %v378_v33, %v214_v43 }
  0xb2   :  { %v359_v46 = vpack.c.bf16 %v238_v45, %v237_v44 }
  0xb4   :  { %361 = vst [vmem:[%s483_s3 + $0x8] sm:$0xff] %v359_v46  }

// kernel: tsvae_forward.36
= control target key start
LH: loop header
LB: loop body
LE: loop exit
PB: predicated region body
PF: predicated region fallthrough
CT: control target
= control target key end

     0   :  { %s661_s1 = inlined_call_operand.vmem [shape: bf16[384,128], index: 1, kind: input, shape index: {}]   ;;  %s662_s0 = inlined_call_operand.vmem [shape: bf16[32,384], index: 0, kind: input, shape index: {}]   ;;  %s663_s2 = inlined_call_operand.vmem [shape: f32[1,128], index: 2, kind: input, shape index: {}]   ;;  %s664_s3 = inlined_call_operand.vmem [shape: bf16[32,128], index: 3, kind: output, shape index: {}]  }
   0x1   :  { %v487_v0 = vld [vmem:[%s661_s1 + $0x38] sm:$0xff]  ;;  %v486_v3 = vld [vmem:[%s661_s1 + $0x30] sm:$0xff]  ;;  %v485_v6 = vld [vmem:[%s661_s1 + $0x28] sm:$0xff] }
   0x2   :  { %v495_v1 = vld [vmem:[%s661_s1 + $0x78] sm:$0xff]  ;;  %258 = vmatpush.bf16.msra.mxu0 %v487_v0  ;;  %v494_v4 = vld [vmem:[%s661_s1 + $0x70] sm:$0xff]  ;;  %515 = vmatpush.bf16.msra.mxu3 %v487_v0  ;;  %v493_v7 = vld [vmem:[%s661_s1 + $0x68] sm:$0xff] }
   0x3   :  { %v503_v2 = vld [vmem:[%s661_s1 + $0xb8] sm:$0xff]  ;;  %277 = vmatpush.bf16.msra.mxu1 %v495_v1  ;;  %v502_v5 = vld [vmem:[%s661_s1 + $0xb0] sm:$0xff]  ;;  %v501_v8 = vld [vmem:[%s661_s1 + $0xa8] sm:$0xff] }
   0x4   :  { %296 = vmatpush.bf16.msra.mxu2 %v503_v2  ;;  %v484_v9 = vld [vmem:[%s661_s1 + $0x20] sm:$0xff]  ;;  %v483_v12 = vld [vmem:[%s661_s1 + $0x18] sm:$0xff]  ;;  %v482_v15 = vld [vmem:[%s661_s1 + $0x10] sm:$0xff] }
   0x5   :  { %v492_v10 = vld [vmem:[%s661_s1 + $0x60] sm:$0xff]  ;;  %v491_v13 = vld [vmem:[%s661_s1 + $0x58] sm:$0xff]  ;;  %v490_v16 = vld [vmem:[%s661_s1 + $0x50] sm:$0xff] }
   0x6   :  { %259 = vmatpush.bf16.msra.mxu0 %v486_v3  ;;  %516 = vmatpush.bf16.msra.mxu3 %v486_v3  ;;  %v500_v11 = vld [vmem:[%s661_s1 + $0xa0] sm:$0xff]  ;;  %v499_v14 = vld [vmem:[%s661_s1 + $0x98] sm:$0xff]  ;;  %v498_v17 = vld [vmem:[%s661_s1 + $0x90] sm:$0xff] }
   0x7   :  { %278 = vmatpush.bf16.msra.mxu1 %v494_v4  ;;  %v481_v18 = vld [vmem:[%s661_s1 + $0x8] sm:$0xff]  ;;  %v480_v21 = vld [vmem:[%s661_s1] sm:$0xff]  ;;  %v358_v27 = vld [vmem:[%s662_s0 + $0xc] sm:$0xf0] }
   0x8   :  { %297 = vmatpush.bf16.msra.mxu2 %v502_v5  ;;  %v489_v19 = vld [vmem:[%s661_s1 + $0x48] sm:$0xff]  ;;  %v488_v22 = vld [vmem:[%s661_s1 + $0x40] sm:$0xff]  ;;  %v476_v29 = vld [vmem:[%s662_s0 + $0x10] sm:$0xf0] }
   0x9   :  { %v497_v20 = vld [vmem:[%s661_s1 + $0x88] sm:$0xff]  ;;  %v496_v23 = vld [vmem:[%s661_s1 + $0x80] sm:$0xff]  ;;  %v368_v30 = vld [vmem:[%s662_s0 + $0x18] sm:$0xf] }
   0xa   :  { %260 = vmatpush.bf16.msra.mxu0 %v485_v6  ;;  %517 = vmatpush.bf16.msra.mxu3 %v485_v6  ;;  %v356_v24 = vld [vmem:[%s662_s0] sm:$0xf]  ;;  %v475_v25 = vld [vmem:[%s662_s0 + $0x8] sm:$0xf0]  ;;  %v474_v26 = vld [vmem:[%s662_s0 + $0x4] sm:$0xf] }
   0xb   :  { %279 = vmatpush.bf16.msra.mxu1 %v493_v7  ;;  %v364_v28 = vld [vmem:[%s662_s0 + $0x8] sm:$0xf]  ;;  %v478_v31 = vld [vmem:[%s662_s0 + $0x20] sm:$0xf0]  ;;  %v357_v32 = vor.u32 %v475_v25, %v356_v24  ;;  %v361_v33 = vor.u32 %v474_v26, %v358_v27  ;;  %v477_v36 = vld [vmem:[%s662_s0 + $0x1c] sm:$0xf] }
   0xc   :  { %298 = vmatpush.bf16.msra.mxu2 %v501_v8  ;;  %v365_v34 = vor.u32 %v476_v29, %v364_v28  ;;  %v369_v35 = vor.u32 %v478_v31, %v368_v30  ;;  %v370_v37 = vld [vmem:[%s662_s0 + $0x24] sm:$0xf0]  ;;  %v376_v38 = vld [vmem:[%s662_s0 + $0x20] sm:$0xf]  ;;  %v479_v39 = vld [vmem:[%s662_s0 + $0x28] sm:$0xf0] }
   0xd   :  { %v373_v40 = vor.u32 %v477_v36, %v370_v37  ;;  %v377_v41 = vor.u32 %v479_v39, %v376_v38  ;;  %v523_v49 = vld [vmem:[%s663_s2] ss:$0 sm:$0xff] }
   0xe   :  { %261 = vmatpush.bf16.msra.mxu0 %v484_v9  ;;  %518 = vmatpush.bf16.msra.mxu3 %v484_v9 }
   0xf   :  { %280 = vmatpush.bf16.msra.mxu1 %v492_v10 }
  0x10   :  { %299 = vmatpush.bf16.msra.mxu2 %v500_v11 }
  0x12   :  { %262 = vmatpush.bf16.msra.mxu0 %v483_v12  ;;  %519 = vmatpush.bf16.msra.mxu3 %v483_v12 }
  0x13   :  { %281 = vmatpush.bf16.msra.mxu1 %v491_v13 }
  0x14   :  { %300 = vmatpush.bf16.msra.mxu2 %v499_v14 }
  0x16   :  { %263 = vmatpush.bf16.msra.mxu0 %v482_v15  ;;  %520 = vmatpush.bf16.msra.mxu3 %v482_v15 }
  0x17   :  { %282 = vmatpush.bf16.msra.mxu1 %v490_v16 }
  0x18   :  { %301 = vmatpush.bf16.msra.mxu2 %v498_v17 }
  0x1a   :  { %264 = vmatpush.bf16.msra.mxu0 %v481_v18  ;;  %521 = vmatpush.bf16.msra.mxu3 %v481_v18 }
  0x1b   :  { %283 = vmatpush.bf16.msra.mxu1 %v489_v19 }
  0x1c   :  { %302 = vmatpush.bf16.msra.mxu2 %v497_v20 }
  0x1e   :  { %265 = vmatpush.bf16.msra.mxu0 %v480_v21  ;;  %522 = vmatpush.bf16.msra.mxu3 %v480_v21 }
  0x1f   :  { %284 = vmatpush.bf16.msra.mxu1 %v488_v22 }
  0x20   :  { %303 = vmatpush.bf16.msra.mxu2 %v496_v23 }
  0x21   :  { %266 = vmatmul.bf16.vlgmr.msra.gmra.mxu0 %v357_v32  ;;  %271 = vmatmul.bf16.vlgmr.msra.gmra.mxu3 %v369_v35 }
  0x22   :  { %285 = vmatmul.bf16.vlgmr.msra.gmra.mxu1 %v361_v33 }
  0x23   :  { %304 = vmatmul.bf16.vlgmr.msra.gmra.mxu2 %v365_v34 }
  0x32   :  { %290 = vmatmul.bf16.gmra.mxu1 %v373_v40 }
  0x33   :  { %309 = vmatmul.bf16.gmra.mxu2 %v377_v41 }
  0x9e   :  { %v267_v43 = vpop.f32.mrf.mxu0 }
  0x9f   :  { %v286_v42 = vpop.f32.mrf.mxu1 }
  0xa0   :  { %v287_v45 = vadd.f32 %v286_v42, %v267_v43 }
  0xa4   :  { %v272_v56 = vpop.f32.mrf.mxu3 }
  0xa6   :  { %v305_v44 = vpop.f32.mrf.mxu2  ;;  %v269_v47 = vpop.f32.mrf.mxu0 }
  0xa7   :  { %v288_v46 = vpop.f32.mrf.mxu1  ;;  %v306_v48 = vadd.f32 %v305_v44, %v287_v45 }
  0xa8   :  { %v289_v50 = vadd.f32 %v288_v46, %v269_v47 }
  0xa9   :  { %v334_v52 = vadd.f32 %v523_v49, %v306_v48 }
  0xab   :  { %v338_v57 = vmax.f32 %v334_v52, 0.0 }
  0xac   :  { %v274_v0 = vpop.f32.mrf.mxu3 }
  0xae   :  { %v307_v51 = vpop.f32.mrf.mxu2 }
  0xaf   :  { %v308_v53 = vadd.f32 %v307_v51, %v289_v50  ;;  %v291_v54 = vpop.f32.mrf.mxu1 }
  0xb0   :  { %v292_v61 = vadd.f32 %v291_v54, %v272_v56 }
  0xb1   :  { %v335_v55 = vadd.f32 %v523_v49, %v308_v53 }
  0xb3   :  { %v339_v58 = vmax.f32 %v335_v55, 0.0 }
  0xb5   :  { %v507_v59 = vpack.c.bf16 %v339_v58, %v338_v57 }
  0xb6   :  { %v310_v60 = vpop.f32.mrf.mxu2 }
  0xb7   :  { %508 = vst [vmem:[%s664_s3] sm:$0xff] %v507_v59   ;;  %v293_v62 = vpop.f32.mrf.mxu1  ;;  %v311_v63 = vadd.f32 %v310_v60, %v292_v61 }
  0xb8   :  { %v294_v1 = vadd.f32 %v293_v62, %v274_v0 }
  0xb9   :  { %v336_v3 = vadd.f32 %v523_v49, %v311_v63 }
  0xbb   :  { %v340_v6 = vmax.f32 %v336_v3, 0.0 }
  0xbe   :  { %v312_v2 = vpop.f32.mrf.mxu2 }
  0xbf   :  { %v313_v4 = vadd.f32 %v312_v2, %v294_v1 }
  0xc1   :  { %v337_v5 = vadd.f32 %v523_v49, %v313_v4 }
  0xc3   :  { %v341_v7 = vmax.f32 %v337_v5, 0.0 }
  0xc5   :  { %v512_v8 = vpack.c.bf16 %v341_v7, %v340_v6 }
  0xc7   :  { %514 = vst [vmem:[%s664_s3 + $0x8] sm:$0xff] %v512_v8  }

// kernel: tsvae_forward.37
= control target key start
LH: loop header
LB: loop body
LE: loop exit
PB: predicated region body
PF: predicated region fallthrough
CT: control target
= control target key end

     0   :  { %s912_s1 = inlined_call_operand.vmem [shape: bf16[256,128], index: 1, kind: input, shape index: {}]   ;;  %s913_s0 = inlined_call_operand.vmem [shape: bf16[128,256], index: 0, kind: input, shape index: {}]   ;;  %s914_s2 = inlined_call_operand.vmem [shape: f32[1,128], index: 2, kind: input, shape index: {}]   ;;  %s915_s3 = inlined_call_operand.vmem [shape: bf16[128,128], index: 3, kind: output, shape index: {}]  }
   0x1   :  { %v630_v0 = vld [vmem:[%s912_s1 + $0x38] sm:$0xff]  ;;  %v629_v2 = vld [vmem:[%s912_s1 + $0x30] sm:$0xff]  ;;  %v628_v4 = vld [vmem:[%s912_s1 + $0x28] sm:$0xff] }
   0x2   :  { %v638_v1 = vld [vmem:[%s912_s1 + $0x78] sm:$0xff]  ;;  %274 = vmatpush.bf16.msra.mxu0 %v630_v0  ;;  %686 = vmatpush.bf16.msra.mxu2 %v630_v0  ;;  %v637_v3 = vld [vmem:[%s912_s1 + $0x70] sm:$0xff]  ;;  %v636_v5 = vld [vmem:[%s912_s1 + $0x68] sm:$0xff] }
   0x3   :  { %323 = vmatpush.bf16.msra.mxu1 %v638_v1  ;;  %694 = vmatpush.bf16.msra.mxu3 %v638_v1  ;;  %v627_v6 = vld [vmem:[%s912_s1 + $0x20] sm:$0xff]  ;;  %v626_v8 = vld [vmem:[%s912_s1 + $0x18] sm:$0xff]  ;;  %v625_v10 = vld [vmem:[%s912_s1 + $0x10] sm:$0xff] }
   0x4   :  { %v635_v7 = vld [vmem:[%s912_s1 + $0x60] sm:$0xff]  ;;  %v634_v9 = vld [vmem:[%s912_s1 + $0x58] sm:$0xff]  ;;  %v633_v11 = vld [vmem:[%s912_s1 + $0x50] sm:$0xff] }
   0x5   :  { %v624_v12 = vld [vmem:[%s912_s1 + $0x8] sm:$0xff]  ;;  %v623_v14 = vld [vmem:[%s912_s1] sm:$0xff]  ;;  %v489_v28 = vld [vmem:[%s913_s0 + $0x10] sm:$0xf] }
   0x6   :  { %275 = vmatpush.bf16.msra.mxu0 %v629_v2  ;;  %687 = vmatpush.bf16.msra.mxu2 %v629_v2  ;;  %v632_v13 = vld [vmem:[%s912_s1 + $0x48] sm:$0xff]  ;;  %v631_v15 = vld [vmem:[%s912_s1 + $0x40] sm:$0xff]  ;;  %v610_v29 = vld [vmem:[%s913_s0 + $0x14] sm:$0xf0] }
   0x7   :  { %324 = vmatpush.bf16.msra.mxu1 %v637_v3  ;;  %695 = vmatpush.bf16.msra.mxu3 %v637_v3  ;;  %v481_v16 = vld [vmem:[%s913_s0] sm:$0xf]  ;;  %v608_v17 = vld [vmem:[%s913_s0 + $0x4] sm:$0xf0]  ;;  %v607_v20 = vld [vmem:[%s913_s0 + $0x4] sm:$0xf]  ;;  %v490_v36 = vor.u32 %v610_v29, %v489_v28 }
   0x8   :  { %v513_v18 = vld [vmem:[%s913_s0 + $0x40] sm:$0xf]  ;;  %v616_v19 = vld [vmem:[%s913_s0 + $0x44] sm:$0xf0]  ;;  %v483_v21 = vld [vmem:[%s913_s0 + $0x8] sm:$0xf0]  ;;  %v482_v24 = vor.u32 %v608_v17, %v481_v16 }
   0x9   :  { %v615_v22 = vld [vmem:[%s913_s0 + $0x44] sm:$0xf]  ;;  %v515_v23 = vld [vmem:[%s913_s0 + $0x48] sm:$0xf0]  ;;  %v514_v25 = vor.u32 %v616_v19, %v513_v18  ;;  %v486_v26 = vor.u32 %v607_v20, %v483_v21  ;;  %v521_v30 = vld [vmem:[%s913_s0 + $0x50] sm:$0xf] }
   0xa   :  { %276 = vmatpush.bf16.msra.mxu0 %v628_v4  ;;  %688 = vmatpush.bf16.msra.mxu2 %v628_v4  ;;  %v518_v27 = vor.u32 %v615_v22, %v515_v23  ;;  %v618_v31 = vld [vmem:[%s913_s0 + $0x54] sm:$0xf0]  ;;  %v609_v32 = vld [vmem:[%s913_s0 + $0x14] sm:$0xf]  ;;  %v491_v33 = vld [vmem:[%s913_s0 + $0x18] sm:$0xf0] }
   0xb   :  { %325 = vmatpush.bf16.msra.mxu1 %v636_v5  ;;  %696 = vmatpush.bf16.msra.mxu3 %v636_v5  ;;  %v617_v34 = vld [vmem:[%s913_s0 + $0x54] sm:$0xf]  ;;  %v523_v35 = vld [vmem:[%s913_s0 + $0x58] sm:$0xf0]  ;;  %v522_v37 = vor.u32 %v618_v31, %v521_v30  ;;  %v494_v38 = vor.u32 %v609_v32, %v491_v33  ;;  %v497_v40 = vld [vmem:[%s913_s0 + $0x20] sm:$0xf] }
   0xc   :  { %v526_v39 = vor.u32 %v617_v34, %v523_v35  ;;  %v612_v41 = vld [vmem:[%s913_s0 + $0x24] sm:$0xf0]  ;;  %v529_v42 = vld [vmem:[%s913_s0 + $0x60] sm:$0xf]  ;;  %v611_v44 = vld [vmem:[%s913_s0 + $0x24] sm:$0xf] }
   0xd   :  { %v620_v43 = vld [vmem:[%s913_s0 + $0x64] sm:$0xf0]  ;;  %v499_v45 = vld [vmem:[%s913_s0 + $0x28] sm:$0xf0]  ;;  %v619_v46 = vld [vmem:[%s913_s0 + $0x64] sm:$0xf]  ;;  %v498_v48 = vor.u32 %v612_v41, %v497_v40 }
   0xe   :  { %277 = vmatpush.bf16.msra.mxu0 %v627_v6  ;;  %689 = vmatpush.bf16.msra.mxu2 %v627_v6  ;;  %v531_v47 = vld [vmem:[%s913_s0 + $0x68] sm:$0xf0]  ;;  %v530_v49 = vor.u32 %v620_v43, %v529_v42  ;;  %v502_v50 = vor.u32 %v611_v44, %v499_v45  ;;  %v505_v52 = vld [vmem:[%s913_s0 + $0x30] sm:$0xf]  ;;  %v614_v53 = vld [vmem:[%s913_s0 + $0x34] sm:$0xf0] }
   0xf   :  { %326 = vmatpush.bf16.msra.mxu1 %v635_v7  ;;  %697 = vmatpush.bf16.msra.mxu3 %v635_v7  ;;  %v534_v51 = vor.u32 %v619_v46, %v531_v47  ;;  %v537_v54 = vld [vmem:[%s913_s0 + $0x70] sm:$0xf]  ;;  %v622_v55 = vld [vmem:[%s913_s0 + $0x74] sm:$0xf0]  ;;  %v613_v56 = vld [vmem:[%s913_s0 + $0x34] sm:$0xf]  ;;  %v506_v60 = vor.u32 %v614_v53, %v505_v52 }
  0x10   :  { %v507_v57 = vld [vmem:[%s913_s0 + $0x38] sm:$0xf0]  ;;  %v621_v58 = vld [vmem:[%s913_s0 + $0x74] sm:$0xf]  ;;  %v538_v61 = vor.u32 %v622_v55, %v537_v54  ;;  %v870_v5 = vld [vmem:[%s914_s2] ss:$0 sm:$0xff] }
  0x11   :  { %v539_v59 = vld [vmem:[%s913_s0 + $0x78] sm:$0xf0]  ;;  %v510_v62 = vor.u32 %v613_v56, %v507_v57 }
  0x12   :  { %278 = vmatpush.bf16.msra.mxu0 %v626_v8  ;;  %690 = vmatpush.bf16.msra.mxu2 %v626_v8  ;;  %v542_v63 = vor.u32 %v621_v58, %v539_v59 }
  0x13   :  { %327 = vmatpush.bf16.msra.mxu1 %v634_v9  ;;  %698 = vmatpush.bf16.msra.mxu3 %v634_v9 }
  0x16   :  { %279 = vmatpush.bf16.msra.mxu0 %v625_v10  ;;  %691 = vmatpush.bf16.msra.mxu2 %v625_v10 }
  0x17   :  { %328 = vmatpush.bf16.msra.mxu1 %v633_v11  ;;  %699 = vmatpush.bf16.msra.mxu3 %v633_v11 }
  0x1a   :  { %280 = vmatpush.bf16.msra.mxu0 %v624_v12  ;;  %692 = vmatpush.bf16.msra.mxu2 %v624_v12 }
  0x1b   :  { %329 = vmatpush.bf16.msra.mxu1 %v632_v13  ;;  %700 = vmatpush.bf16.msra.mxu3 %v632_v13 }
  0x1e   :  { %281 = vmatpush.bf16.msra.mxu0 %v623_v14  ;;  %693 = vmatpush.bf16.msra.mxu2 %v623_v14 }
  0x1f   :  { %330 = vmatpush.bf16.msra.mxu1 %v631_v15  ;;  %701 = vmatpush.bf16.msra.mxu3 %v631_v15 }
  0x21   :  { %282 = vmatmul.bf16.vlgmr.msra.gmra.mxu0 %v482_v24  ;;  %302 = vmatmul.bf16.vlgmr.msra.gmra.mxu2 %v514_v25 }
  0x22   :  { %331 = vmatmul.bf16.vlgmr.msra.gmra.mxu1 %v486_v26  ;;  %351 = vmatmul.bf16.vlgmr.msra.gmra.mxu3 %v518_v27 }
  0x31   :  { %287 = vmatmul.bf16.gmra.mxu0 %v490_v36  ;;  %307 = vmatmul.bf16.gmra.mxu2 %v522_v37 }
  0x32   :  { %336 = vmatmul.bf16.gmra.mxu1 %v494_v38  ;;  %356 = vmatmul.bf16.gmra.mxu3 %v526_v39 }
  0x41   :  { %292 = vmatmul.bf16.gmra.mxu0 %v498_v48  ;;  %312 = vmatmul.bf16.gmra.mxu2 %v530_v49 }
  0x42   :  { %341 = vmatmul.bf16.gmra.mxu1 %v502_v50  ;;  %361 = vmatmul.bf16.gmra.mxu3 %v534_v51 }
  0x51   :  { %297 = vmatmul.bf16.gmra.mxu0 %v506_v60  ;;  %317 = vmatmul.bf16.gmra.mxu2 %v538_v61 }
  0x52   :  { %346 = vmatmul.bf16.gmra.mxu1 %v510_v62  ;;  %366 = vmatmul.bf16.gmra.mxu3 %v542_v63 }
  0x9e   :  { %v283_v0 = vpop.f32.mrf.mxu0 }
  0x9f   :  { %v332_v1 = vpop.f32.mrf.mxu1 }
  0xa0   :  { %v333_v4 = vadd.f32 %v332_v1, %v283_v0 }
  0xa2   :  { %v427_v9 = vadd.f32 %v870_v5, %v333_v4 }
  0xa4   :  { %v303_v2 = vpop.f32.mrf.mxu2 }
  0xa5   :  { %v352_v3 = vpop.f32.mrf.mxu3 }
  0xa6   :  { %v285_v6 = vpop.f32.mrf.mxu0  ;;  %v353_v11 = vadd.f32 %v352_v3, %v303_v2 }
  0xa7   :  { %v334_v7 = vpop.f32.mrf.mxu1 }
  0xa8   :  { %v335_v8 = vadd.f32 %v334_v7, %v285_v6  ;;  %v435_v18 = vadd.f32 %v870_v5, %v353_v11 }
  0xaa   :  { %v428_v10 = vadd.f32 %v870_v5, %v335_v8 }
  0xac   :  { %v642_v12 = vpack.c.bf16 %v428_v10, %v427_v9  ;;  %v305_v13 = vpop.f32.mrf.mxu2 }
  0xad   :  { %v354_v14 = vpop.f32.mrf.mxu3 }
  0xae   :  { %643 = vst [vmem:[%s915_s3] sm:$0xff] %v642_v12   ;;  %v355_v15 = vadd.f32 %v354_v14, %v305_v13  ;;  %v288_v16 = vpop.f32.mrf.mxu0 }
  0xaf   :  { %v337_v17 = vpop.f32.mrf.mxu1 }
  0xb0   :  { %v436_v19 = vadd.f32 %v870_v5, %v355_v15  ;;  %v338_v23 = vadd.f32 %v337_v17, %v288_v16 }
  0xb2   :  { %v662_v20 = vpack.c.bf16 %v436_v19, %v435_v18  ;;  %v429_v27 = vadd.f32 %v870_v5, %v338_v23 }
  0xb4   :  { %682 = vst [vmem:[%s915_s3 + $0x20] sm:$0xff] %v662_v20   ;;  %v308_v21 = vpop.f32.mrf.mxu2 }
  0xb5   :  { %v357_v22 = vpop.f32.mrf.mxu3 }
  0xb6   :  { %v290_v24 = vpop.f32.mrf.mxu0  ;;  %v358_v29 = vadd.f32 %v357_v22, %v308_v21 }
  0xb7   :  { %v339_v25 = vpop.f32.mrf.mxu1 }
  0xb8   :  { %v340_v26 = vadd.f32 %v339_v25, %v290_v24  ;;  %v437_v36 = vadd.f32 %v870_v5, %v358_v29 }
  0xba   :  { %v430_v28 = vadd.f32 %v870_v5, %v340_v26 }
  0xbc   :  { %v647_v30 = vpack.c.bf16 %v430_v28, %v429_v27  ;;  %v310_v31 = vpop.f32.mrf.mxu2 }
  0xbd   :  { %v359_v32 = vpop.f32.mrf.mxu3 }
  0xbe   :  { %679 = vst [vmem:[%s915_s3 + $0x8] sm:$0xff] %v647_v30   ;;  %v360_v33 = vadd.f32 %v359_v32, %v310_v31  ;;  %v293_v34 = vpop.f32.mrf.mxu0 }
  0xbf   :  { %v342_v35 = vpop.f32.mrf.mxu1 }
  0xc0   :  { %v438_v37 = vadd.f32 %v870_v5, %v360_v33  ;;  %v343_v41 = vadd.f32 %v342_v35, %v293_v34 }
  0xc2   :  { %v667_v38 = vpack.c.bf16 %v438_v37, %v437_v36  ;;  %v431_v45 = vadd.f32 %v870_v5, %v343_v41 }
  0xc4   :  { %683 = vst [vmem:[%s915_s3 + $0x28] sm:$0xff] %v667_v38   ;;  %v313_v39 = vpop.f32.mrf.mxu2 }
  0xc5   :  { %v362_v40 = vpop.f32.mrf.mxu3 }
  0xc6   :  { %v295_v42 = vpop.f32.mrf.mxu0  ;;  %v363_v47 = vadd.f32 %v362_v40, %v313_v39 }
  0xc7   :  { %v344_v43 = vpop.f32.mrf.mxu1 }
  0xc8   :  { %v345_v44 = vadd.f32 %v344_v43, %v295_v42  ;;  %v439_v54 = vadd.f32 %v870_v5, %v363_v47 }
  0xca   :  { %v432_v46 = vadd.f32 %v870_v5, %v345_v44 }
  0xcc   :  { %v652_v48 = vpack.c.bf16 %v432_v46, %v431_v45  ;;  %v315_v49 = vpop.f32.mrf.mxu2 }
  0xcd   :  { %v364_v50 = vpop.f32.mrf.mxu3 }
  0xce   :  { %680 = vst [vmem:[%s915_s3 + $0x10] sm:$0xff] %v652_v48   ;;  %v365_v51 = vadd.f32 %v364_v50, %v315_v49  ;;  %v298_v52 = vpop.f32.mrf.mxu0 }
  0xcf   :  { %v347_v53 = vpop.f32.mrf.mxu1 }
  0xd0   :  { %v440_v55 = vadd.f32 %v870_v5, %v365_v51  ;;  %v348_v59 = vadd.f32 %v347_v53, %v298_v52 }
  0xd2   :  { %v672_v56 = vpack.c.bf16 %v440_v55, %v439_v54  ;;  %v433_v63 = vadd.f32 %v870_v5, %v348_v59 }
  0xd4   :  { %684 = vst [vmem:[%s915_s3 + $0x30] sm:$0xff] %v672_v56   ;;  %v318_v57 = vpop.f32.mrf.mxu2 }
  0xd5   :  { %v367_v58 = vpop.f32.mrf.mxu3 }
  0xd6   :  { %v300_v60 = vpop.f32.mrf.mxu0  ;;  %v368_v1 = vadd.f32 %v367_v58, %v318_v57 }
  0xd7   :  { %v349_v61 = vpop.f32.mrf.mxu1 }
  0xd8   :  { %v350_v62 = vadd.f32 %v349_v61, %v300_v60  ;;  %v441_v7 = vadd.f32 %v870_v5, %v368_v1 }
  0xda   :  { %v434_v0 = vadd.f32 %v870_v5, %v350_v62 }
  0xdc   :  { %v657_v2 = vpack.c.bf16 %v434_v0, %v433_v63  ;;  %v320_v3 = vpop.f32.mrf.mxu2 }
  0xdd   :  { %v369_v4 = vpop.f32.mrf.mxu3 }
  0xde   :  { %681 = vst [vmem:[%s915_s3 + $0x18] sm:$0xff] %v657_v2   ;;  %v370_v6 = vadd.f32 %v369_v4, %v320_v3 }
  0xe0   :  { %v442_v8 = vadd.f32 %v870_v5, %v370_v6 }
  0xe2   :  { %v677_v9 = vpack.c.bf16 %v442_v8, %v441_v7 }
  0xe4   :  { %685 = vst [vmem:[%s915_s3 + $0x38] sm:$0xff] %v677_v9  }

</bundles_post_ra>
